<compile_context>
chip_gen: v7x
topology: tpu7x:2x2x1
jax: 0.10.0
libtpu: 0.0.40
codegen_flags: <defaults>
</compile_context>

<pallas_src>
import functools
import math

import jax
import jax.numpy as jnp
from jax.experimental import pallas as pl
from jax.experimental.pallas import tpu as pltpu


_MASK_VALUE = -1e30
_LN_EPS = 1e-5


# ---------------------------------------------------------------------------
# Shared math helpers (used inside the kernels AND by the pure-JAX reference
# so the numerics match).
# ---------------------------------------------------------------------------

def _layer_norm(x, gamma, beta, eps=_LN_EPS):
    mu = jnp.mean(x, axis=-1, keepdims=True)
    xc = x - mu
    var = jnp.mean(xc * xc, axis=-1, keepdims=True)
    inv = jax.lax.rsqrt(var + eps)
    return xc * inv * gamma + beta


def _gelu_tanh(x):
    # GELU(approximate='tanh'); grouped as x + x*(0.044715*x*x) to save a vmul.
    c = 0.7978845608028654  # sqrt(2/pi)
    return 0.5 * x * (1.0 + jnp.tanh(c * (x + x * (0.044715 * (x * x)))))


# ---------------------------------------------------------------------------
# Kernel 1: ln_1 + qkv projection.  x tile (1, tt, C) f32 -> qkv (1, tt, 3C) bf16
# ---------------------------------------------------------------------------

def _ln_qkv_kernel(x_ref, g_ref, b_ref, w_ref, bias_ref, o_ref):
    x = x_ref[0]                                              # (tt, C) f32
    ln = _layer_norm(x, g_ref[...], b_ref[...])               # f32 (VPU/EUP)
    qkv = jnp.dot(ln.astype(jnp.bfloat16), w_ref[...],        # bf16 MXU, f32 acc
                  preferred_element_type=jnp.float32)
    o_ref[0] = (qkv + bias_ref[...]).astype(o_ref.dtype)      # store bf16


# ---------------------------------------------------------------------------
# Kernel 2: causal attention core for one batch element.
# Reads the full (T, 3C) qkv slab, loops over heads in-kernel (static Python
# loop -> static column slices, cheap in VMEM), writes a dense (T, C) tile.
# TODO(synk): for long T (>~1k) replace with a flash-style KV-block loop
# (online softmax with m/l/acc scratch, causal block skip) so the (T, T)
# scores never materialize — required for v7x's 64 MiB VMEM at production T.
# ---------------------------------------------------------------------------

def _causal_attention_kernel(qkv_ref, o_ref, *, num_heads):
    qkv = qkv_ref[0]                                          # (T, 3C) bf16
    t, c3 = qkv.shape
    c = c3 // 3
    hd = c // num_heads
    scale = 1.0 / math.sqrt(hd)

    row = jax.lax.broadcasted_iota(jnp.int32, (t, t), 0)
    col = jax.lax.broadcasted_iota(jnp.int32, (t, t), 1)
    causal = col <= row

    outs = []
    for h in range(num_heads):                                # unrolled at trace
        q = qkv[:, h * hd:(h + 1) * hd]                       # (T, hd) bf16
        k = qkv[:, c + h * hd:c + (h + 1) * hd]
        v = qkv[:, 2 * c + h * hd:2 * c + (h + 1) * hd]
        s = jax.lax.dot_general(                              # q @ k^T, f32 accum
            q, k, dimension_numbers=(((1,), (1,)), ((), ())),
            preferred_element_type=jnp.float32) * scale
        s = jnp.where(causal, s, _MASK_VALUE)                 # causal mask
        m = jnp.max(s, axis=-1, keepdims=True)
        e = jnp.exp(s - m)
        denom = jnp.sum(e, axis=-1, keepdims=True)
        p = e * pl.reciprocal(denom, approx=True)             # EUP, not VALU
        # attn_dropout: identity in eval mode.
        outs.append(jnp.dot(p.astype(jnp.bfloat16), v,
                            preferred_element_type=jnp.float32))
    # lane-dense (T, C) store (C is a multiple of 128 in practice)
    o_ref[0] = jnp.concatenate(outs, axis=-1).astype(o_ref.dtype)


# ---------------------------------------------------------------------------
# Kernel 3: attention c_proj + residual + ln_2 + MLP + residual.
# TODO(synk): at production C/H on v7x (64 MiB VMEM) stream w_fc / w_mproj
# over an extra "arbitrary" H grid axis with an f32 accumulator instead of
# keeping all three weights resident.
# ---------------------------------------------------------------------------

def _proj_mlp_kernel(x_ref, a_ref, wap_ref, bap_ref, g2_ref, b2_ref,
                     wfc_ref, bfc_ref, wmp_ref, bmp_ref, o_ref):
    x = x_ref[0]                                              # (tt, C) f32 residual
    # attention c_proj + residual (resid_dropout = identity in eval mode)
    y_attn = jnp.dot(a_ref[0], wap_ref[...],                  # bf16 x bf16, f32 acc
                     preferred_element_type=jnp.float32) + bap_ref[...]
    x1 = x + y_attn
    # ln_2 (f32) then MLP: c_fc -> GELU(tanh) -> c_proj
    ln = _layer_norm(x1, g2_ref[...], b2_ref[...])
    h = jnp.dot(ln.astype(jnp.bfloat16), wfc_ref[...],
                preferred_element_type=jnp.float32) + bfc_ref[...]
    h = _gelu_tanh(h)                                         # GELU in f32
    y_mlp = jnp.dot(h.astype(jnp.bfloat16), wmp_ref[...],
                    preferred_element_type=jnp.float32) + bmp_ref[...]
    # TODO(synk): training-mode dropout would need pltpu.prng_random_bits masks.
    o_ref[0] = (x1 + y_mlp).astype(o_ref.dtype)


# ---------------------------------------------------------------------------
# Wrapper helpers
# ---------------------------------------------------------------------------

@functools.lru_cache(maxsize=None)
def _vmem_limit_bytes():
    """Per-generation scoped-VMEM limit: below physical on v7x (64 MiB),
    above the 32 MiB default on v5e/v6e (128 MiB physical)."""
    try:
        info = pltpu.get_tpu_info()
        phys = int(getattr(info, "vmem_capacity_bytes", 0) or 0)
        if phys > 0:
            return max(32 * 1024 * 1024,
                       min(phys - 16 * 1024 * 1024, 100 * 1024 * 1024))
    except Exception:  # hardware-info query only; never wraps kernel compilation
        pass
    return 48 * 1024 * 1024


def _pick_time_tile(T, B, max_tile):
    """Largest multiple-of-8 divisor of T (<= max_tile), preferring >= 4 total
    grid steps so both v7x TensorCores get >= 2 pipelined steps each."""
    cands = [t for t in range(8, min(T, max_tile) + 1, 8) if T % t == 0]
    if not cands:
        return T  # full-T block is always legal (block dim == array dim)
    good = [t for t in cands if B * (T // t) >= 4]
    return max(good) if good else max(cands)


def prepare_params(raw):
    """One-time packing at parameter-load time: bf16 MXU weights (already
    transposed to (in, out)) and f32 row vectors for biases / LN affine."""
    f32, bf16 = jnp.float32, jnp.bfloat16
    C = raw["g1"].shape[-1]
    H = raw["b_fc"].shape[-1]
    return {
        "g1": jnp.asarray(raw["g1"], f32).reshape(1, C),
        "b1": jnp.asarray(raw["b1"], f32).reshape(1, C),
        "w_attn_t": jnp.asarray(raw["w_attn_t"], bf16),       # (C, 3C)
        "b_attn": jnp.asarray(raw["b_attn"], f32).reshape(1, 3 * C),
        "w_aproj_t": jnp.asarray(raw["w_aproj_t"], bf16),     # (C, C)
        "b_aproj": jnp.asarray(raw["b_aproj"], f32).reshape(1, C),
        "g2": jnp.asarray(raw["g2"], f32).reshape(1, C),
        "b2": jnp.asarray(raw["b2"], f32).reshape(1, C),
        "w_fc_t": jnp.asarray(raw["w_fc_t"], bf16),           # (C, H)
        "b_fc": jnp.asarray(raw["b_fc"], f32).reshape(1, H),
        "w_mproj_t": jnp.asarray(raw["w_mproj_t"], bf16),     # (H, C)
        "b_mproj": jnp.asarray(raw["b_mproj"], f32).reshape(1, C),
    }


@functools.partial(jax.jit, static_argnames=("num_heads", "block_t"))
def _forward_impl(x, p, *, num_heads, block_t):
    B, T, C = x.shape
    assert C % num_heads == 0
    hd = C // num_heads
    H = p["w_fc_t"].shape[1]
    f32, bf16 = jnp.float32, jnp.bfloat16

    tt = _pick_time_tile(T, B, block_t)
    n_t = T // tt
    vmem = _vmem_limit_bytes()
    params_2d = pltpu.CompilerParams(
        dimension_semantics=("parallel", "parallel"), vmem_limit_bytes=vmem)
    params_1d = pltpu.CompilerParams(
        dimension_semantics=("parallel",), vmem_limit_bytes=vmem)

    x = x.astype(f32)

    # ---- K1: ln_1 + qkv projection -> bf16 (B, T, 3C), layout K2 consumes ----
    qkv = pl.pallas_call(
        _ln_qkv_kernel,
        out_shape=jax.ShapeDtypeStruct((B, T, 3 * C), bf16),
        grid_spec=pltpu.PrefetchScalarGridSpec(
            num_scalar_prefetch=0,
            grid=(B, n_t),
            in_specs=[
                pl.BlockSpec((1, tt, C), lambda b, t: (b, t, 0)),
                pl.BlockSpec((1, C), lambda b, t: (0, 0)),
                pl.BlockSpec((1, C), lambda b, t: (0, 0)),
                pl.BlockSpec((C, 3 * C), lambda b, t: (0, 0)),
                pl.BlockSpec((1, 3 * C), lambda b, t: (0, 0)),
            ],
            out_specs=pl.BlockSpec((1, tt, 3 * C), lambda b, t: (b, t, 0)),
        ),
        compiler_params=params_2d,
        cost_estimate=pl.CostEstimate(
            flops=2 * B * T * C * 3 * C,
            transcendentals=B * T,
            bytes_accessed=4 * B * T * C + 2 * B * T * 3 * C + 2 * C * 3 * C),
    )(x, p["g1"], p["b1"], p["w_attn_t"], p["b_attn"])

    # ---- K2: causal attention core per batch, in-kernel head loop ----------
    attn = pl.pallas_call(
        functools.partial(_causal_attention_kernel, num_heads=num_heads),
        out_shape=jax.ShapeDtypeStruct((B, T, C), bf16),
        grid_spec=pltpu.PrefetchScalarGridSpec(
            num_scalar_prefetch=0,
            grid=(B,),
            in_specs=[pl.BlockSpec((1, T, 3 * C), lambda b: (b, 0, 0))],
            out_specs=pl.BlockSpec((1, T, C), lambda b: (b, 0, 0)),
        ),
        compiler_params=params_1d,
        cost_estimate=pl.CostEstimate(
            flops=4 * B * num_heads * T * T * hd,
            transcendentals=B * num_heads * T * T,
            bytes_accessed=2 * B * T * 3 * C + 2 * B * T * C),
    )(qkv)

    # ---- K3: c_proj + residual + ln_2 + MLP + residual ----------------------
    out = pl.pallas_call(
        _proj_mlp_kernel,
        out_shape=jax.ShapeDtypeStruct((B, T, C), f32),
        grid_spec=pltpu.PrefetchScalarGridSpec(
            num_scalar_prefetch=0,
            grid=(B, n_t),
            in_specs=[
                pl.BlockSpec((1, tt, C), lambda b, t: (b, t, 0)),  # residual x
                pl.BlockSpec((1, tt, C), lambda b, t: (b, t, 0)),  # attn core out
                pl.BlockSpec((C, C), lambda b, t: (0, 0)),         # W_proj(attn)^T
                pl.BlockSpec((1, C), lambda b, t: (0, 0)),         # b_proj(attn)
                pl.BlockSpec((1, C), lambda b, t: (0, 0)),         # ln_2 gamma
                pl.BlockSpec((1, C), lambda b, t: (0, 0)),         # ln_2 beta
                pl.BlockSpec((C, H), lambda b, t: (0, 0)),         # W_fc^T
                pl.BlockSpec((1, H), lambda b, t: (0, 0)),         # b_fc
                pl.BlockSpec((H, C), lambda b, t: (0, 0)),         # W_proj(mlp)^T
                pl.BlockSpec((1, C), lambda b, t: (0, 0)),         # b_proj(mlp)
            ],
            out_specs=pl.BlockSpec((1, tt, C), lambda b, t: (b, t, 0)),
        ),
        compiler_params=params_2d,
        cost_estimate=pl.CostEstimate(
            flops=2 * B * T * C * C + 4 * B * T * C * H,
            transcendentals=B * T * H + B * T,
            bytes_accessed=(4 * B * T * C + 2 * B * T * C + 4 * B * T * C
                            + 2 * (C * C + 2 * C * H))),
    )(x, attn, p["w_aproj_t"], p["b_aproj"], p["g2"], p["b2"],
      p["w_fc_t"], p["b_fc"], p["w_mproj_t"], p["b_mproj"])

    return out


def transformer_block_forward(x, params, *, num_heads, block_t=128):
    """TransformerBlock forward (eval mode).  x: (B, T, C) float32.
    `params` must come from prepare_params()."""
    return _forward_impl(x, params, num_heads=num_heads, block_t=block_t)


# ---------------------------------------------------------------------------
# Pure-JAX reference with matching numerics (bf16 MXU operands + bf16
# qkv/attention intermediates, f32 accumulation).
# ---------------------------------------------------------------------------

def reference_block(x, pp, *, num_heads):
    B, T, C = x.shape
    hd = C // num_heads
    bf16 = jnp.bfloat16

    def mm(a, w):
        return jnp.dot(a.astype(bf16), w.astype(bf16),
                       preferred_element_type=jnp.float32)

    ln1 = _layer_norm(x, pp["g1"], pp["b1"])
    qkv = (mm(ln1, pp["w_attn_t"]) + pp["b_attn"]).astype(bf16)
    q, k, v = jnp.split(qkv, 3, axis=-1)
    qh = q.reshape(B, T, num_heads, hd).transpose(0, 2, 1, 3)
    kh = k.reshape(B, T, num_heads, hd).transpose(0, 2, 1, 3)
    vh = v.reshape(B, T, num_heads, hd).transpose(0, 2, 1, 3)
    s = jnp.einsum("bhtd,bhsd->bhts", qh, kh,
                   preferred_element_type=jnp.float32) * (1.0 / math.sqrt(hd))
    row = jax.lax.broadcasted_iota(jnp.int32, (T, T), 0)
    col = jax.lax.broadcasted_iota(jnp.int32, (T, T), 1)
    s = jnp.where((col <= row)[None, None], s, _MASK_VALUE)
    m = jnp.max(s, axis=-1, keepdims=True)
    e = jnp.exp(s - m)
    probs = e / jnp.sum(e, axis=-1, keepdims=True)
    o = jnp.einsum("bhts,bhsd->bhtd", probs.astype(bf16), vh,
                   preferred_element_type=jnp.float32)
    attn = o.transpose(0, 2, 1, 3).reshape(B, T, C).astype(bf16)
    x1 = x + mm(attn, pp["w_aproj_t"]) + pp["b_aproj"]
    ln2 = _layer_norm(x1, pp["g2"], pp["b2"])
    h = _gelu_tanh(mm(ln2, pp["w_fc_t"]) + pp["b_fc"])
    return x1 + mm(h, pp["w_mproj_t"]) + pp["b_mproj"]


def _torch_style_linear_init(key, out_features, in_features):
    """Deterministic init matching nn.Linear's U(-1/sqrt(in), 1/sqrt(in))."""
    kw, kb = jax.random.split(key)
    bound = 1.0 / math.sqrt(in_features)
    w = jax.random.uniform(kw, (out_features, in_features),
                           minval=-bound, maxval=bound, dtype=jnp.float32)
    b = jax.random.uniform(kb, (out_features,),
                           minval=-bound, maxval=bound, dtype=jnp.float32)
    return w, b


if __name__ == "__main__":
    # Small but lane-dense demo config: C multiple of 128; the adaptive tile
    # picker gives a (B=2, n_t=2) grid for K1/K3 -> 4 steps (pipelining and
    # both v7x cores busy).
    B, T, C = 2, 128, 128
    num_heads = 4
    ff_mult = 4
    H = int(ff_mult * C)

    key = jax.random.PRNGKey(0)
    ks = jax.random.split(key, 9)

    x = jax.random.normal(ks[0], (B, T, C), dtype=jnp.float32)

    # nn.Linear weights are (out, in); the kernels consume the transpose (in, out).
    w_attn, b_attn = _torch_style_linear_init(ks[1], 3 * C, C)
    w_aproj, b_aproj = _torch_style_linear_init(ks[2], C, C)
    w_fc, b_fc = _torch_style_linear_init(ks[3], H, C)
    w_mproj, b_mproj = _torch_style_linear_init(ks[4], C, H)
    # LayerNorm affine params (randomized to exercise the affine path).
    g1 = 1.0 + 0.1 * jax.random.normal(ks[5], (C,), dtype=jnp.float32)
    b1 = 0.1 * jax.random.normal(ks[6], (C,), dtype=jnp.float32)
    g2 = 1.0 + 0.1 * jax.random.normal(ks[7], (C,), dtype=jnp.float32)
    b2 = 0.1 * jax.random.normal(ks[8], (C,), dtype=jnp.float32)

    raw = {
        "g1": g1, "b1": b1,
        "w_attn_t": w_attn.T, "b_attn": b_attn,
        "w_aproj_t": w_aproj.T, "b_aproj": b_aproj,
        "g2": g2, "b2": b2,
        "w_fc_t": w_fc.T, "b_fc": b_fc,
        "w_mproj_t": w_mproj.T, "b_mproj": b_mproj,
    }
    params = prepare_params(raw)   # one-time bf16 cast / bias reshape

    y = transformer_block_forward(x, params, num_heads=num_heads)
    jax.block_until_ready(y)

    y_ref = reference_block(x, params, num_heads=num_heads)
    max_err = float(jnp.max(jnp.abs(y - y_ref)))
    assert jnp.allclose(y, y_ref, atol=2e-2, rtol=2e-2), (
        f"mismatch vs reference, max abs err = {max_err}")
    print("KERNEL_OK")
</pallas_src>

<mosaic_0001>
module attributes {stable_mosaic.version = 11 : i64} {
  func.func @_proj_mlp_kernel(%arg0: i32, %arg1: i32, %arg2: memref<1x64x128xf32, #tpu.memory_space<vmem>>, %arg3: memref<1x64x128xbf16, #tpu.memory_space<vmem>>, %arg4: memref<128x128xbf16, #tpu.memory_space<vmem>>, %arg5: memref<1x128xf32, #tpu.memory_space<vmem>>, %arg6: memref<1x128xf32, #tpu.memory_space<vmem>>, %arg7: memref<1x128xf32, #tpu.memory_space<vmem>>, %arg8: memref<128x512xbf16, #tpu.memory_space<vmem>>, %arg9: memref<1x512xf32, #tpu.memory_space<vmem>>, %arg10: memref<512x128xbf16, #tpu.memory_space<vmem>>, %arg11: memref<1x128xf32, #tpu.memory_space<vmem>>, %arg12: memref<1x64x128xf32, #tpu.memory_space<vmem>>) attributes {dimension_semantics = [#tpu.dimension_semantics<parallel>, #tpu.dimension_semantics<parallel>], iteration_bounds = array<i64: 2, 2>, scalar_prefetch = 0 : i64, scratch_operands = 0 : i64, tpu.core_type = #tpu.core_type<tc>, window_params = [{transform_indices = @transform_0, window_bounds = array<i64: 1, 64, 128>}, {transform_indices = @transform_1, window_bounds = array<i64: 1, 64, 128>}, {pipeline_mode = #tpu.pipeline_mode<synchronous>, transform_indices = @transform_2, window_bounds = array<i64: 128, 128>}, {pipeline_mode = #tpu.pipeline_mode<synchronous>, transform_indices = @transform_3, window_bounds = array<i64: 1, 128>}, {pipeline_mode = #tpu.pipeline_mode<synchronous>, transform_indices = @transform_4, window_bounds = array<i64: 1, 128>}, {pipeline_mode = #tpu.pipeline_mode<synchronous>, transform_indices = @transform_5, window_bounds = array<i64: 1, 128>}, {pipeline_mode = #tpu.pipeline_mode<synchronous>, transform_indices = @transform_6, window_bounds = array<i64: 128, 512>}, {pipeline_mode = #tpu.pipeline_mode<synchronous>, transform_indices = @transform_7, window_bounds = array<i64: 1, 512>}, {pipeline_mode = #tpu.pipeline_mode<synchronous>, transform_indices = @transform_8, window_bounds = array<i64: 512, 128>}, {pipeline_mode = #tpu.pipeline_mode<synchronous>, transform_indices = @transform_9, window_bounds = array<i64: 1, 128>}, {transform_indices = @transform_10, window_bounds = array<i64: 1, 64, 128>}]} {
    %c0 = arith.constant 0 : index
    %c0_0 = arith.constant 0 : index
    %c0_1 = arith.constant 0 : index
    %0 = vector.load %arg2[%c0, %c0_0, %c0_1] : memref<1x64x128xf32, #tpu.memory_space<vmem>>, vector<1x64x128xf32>
    %1 = vector.shape_cast %0 : vector<1x64x128xf32> to vector<64x128xf32>
    %c0_2 = arith.constant 0 : index
    %c0_3 = arith.constant 0 : index
    %c0_4 = arith.constant 0 : index
    %2 = vector.load %arg3[%c0_2, %c0_3, %c0_4] : memref<1x64x128xbf16, #tpu.memory_space<vmem>>, vector<1x64x128xbf16>
    %3 = vector.shape_cast %2 : vector<1x64x128xbf16> to vector<64x128xbf16>
    %c0_5 = arith.constant 0 : index
    %c0_6 = arith.constant 0 : index
    %4 = vector.load %arg4[%c0_5, %c0_6] : memref<128x128xbf16, #tpu.memory_space<vmem>>, vector<128x128xbf16>
    %cst = arith.constant dense<0.000000e+00> : vector<64x128xf32>
    %5 = tpu.matmul %3, %4, %cst {dimension_numbers = #tpu.dot_dimension_numbers<[1], [0], [0], [1], [0, 0, 1, 1], [], []>} : vector<64x128xbf16>, vector<128x128xbf16>, vector<64x128xf32> -> vector<64x128xf32>
    %c0_7 = arith.constant 0 : index
    %c0_8 = arith.constant 0 : index
    %6 = vector.load %arg5[%c0_7, %c0_8] : memref<1x128xf32, #tpu.memory_space<vmem>>, vector<1x128xf32>
    %7 = vector.broadcast %6 : vector<1x128xf32> to vector<64x128xf32>
    %8 = arith.addf %5, %7 : vector<64x128xf32>
    %9 = arith.addf %1, %8 : vector<64x128xf32>
    %c0_9 = arith.constant 0 : index
    %c0_10 = arith.constant 0 : index
    %10 = vector.load %arg6[%c0_9, %c0_10] : memref<1x128xf32, #tpu.memory_space<vmem>>, vector<1x128xf32>
    %c0_11 = arith.constant 0 : index
    %c0_12 = arith.constant 0 : index
    %11 = vector.load %arg7[%c0_11, %c0_12] : memref<1x128xf32, #tpu.memory_space<vmem>>, vector<1x128xf32>
    %cst_13 = arith.constant dense<0.000000e+00> : vector<64xf32>
    %12 = vector.multi_reduction <add>, %9, %cst_13 [1] : vector<64x128xf32> to vector<64xf32>
    %13 = vector.shape_cast %12 : vector<64xf32> to vector<64x1xf32>
    %cst_14 = arith.constant 1.280000e+02 : f32
    %14 = vector.broadcast %cst_14 : f32 to vector<64x1xf32>
    %15 = arith.divf %13, %14 : vector<64x1xf32>
    %16 = vector.broadcast %15 : vector<64x1xf32> to vector<64x128xf32>
    %17 = arith.subf %9, %16 : vector<64x128xf32>
    %18 = arith.mulf %17, %17 : vector<64x128xf32>
    %cst_15 = arith.constant dense<0.000000e+00> : vector<64xf32>
    %19 = vector.multi_reduction <add>, %18, %cst_15 [1] : vector<64x128xf32> to vector<64xf32>
    %20 = vector.shape_cast %19 : vector<64xf32> to vector<64x1xf32>
    %cst_16 = arith.constant 1.280000e+02 : f32
    %21 = vector.broadcast %cst_16 : f32 to vector<64x1xf32>
    %22 = arith.divf %20, %21 : vector<64x1xf32>
    %cst_17 = arith.constant 9.99999974E-6 : f32
    %23 = vector.broadcast %cst_17 : f32 to vector<64x1xf32>
    %24 = arith.addf %22, %23 : vector<64x1xf32>
    %25 = math.rsqrt %24 : vector<64x1xf32>
    %26 = vector.broadcast %25 : vector<64x1xf32> to vector<64x128xf32>
    %27 = arith.mulf %17, %26 : vector<64x128xf32>
    %28 = vector.broadcast %10 : vector<1x128xf32> to vector<64x128xf32>
    %29 = arith.mulf %27, %28 : vector<64x128xf32>
    %30 = vector.broadcast %11 : vector<1x128xf32> to vector<64x128xf32>
    %31 = arith.addf %29, %30 : vector<64x128xf32>
    %32 = arith.truncf %31 : vector<64x128xf32> to vector<64x128xbf16>
    %c0_18 = arith.constant 0 : index
    %c0_19 = arith.constant 0 : index
    %33 = vector.load %arg8[%c0_18, %c0_19] : memref<128x512xbf16, #tpu.memory_space<vmem>>, vector<128x512xbf16>
    %cst_20 = arith.constant dense<0.000000e+00> : vector<64x512xf32>
    %34 = tpu.matmul %32, %33, %cst_20 {dimension_numbers = #tpu.dot_dimension_numbers<[1], [0], [0], [1], [0, 0, 1, 1], [], []>} : vector<64x128xbf16>, vector<128x512xbf16>, vector<64x512xf32> -> vector<64x512xf32>
    %c0_21 = arith.constant 0 : index
    %c0_22 = arith.constant 0 : index
    %35 = vector.load %arg9[%c0_21, %c0_22] : memref<1x512xf32, #tpu.memory_space<vmem>>, vector<1x512xf32>
    %36 = vector.broadcast %35 : vector<1x512xf32> to vector<64x512xf32>
    %37 = arith.addf %34, %36 : vector<64x512xf32>
    %cst_23 = arith.constant 5.000000e-01 : f32
    %38 = vector.broadcast %cst_23 : f32 to vector<64x512xf32>
    %39 = arith.mulf %38, %37 : vector<64x512xf32>
    %40 = arith.mulf %37, %37 : vector<64x512xf32>
    %cst_24 = arith.constant 4.471500e-02 : f32
    %41 = vector.broadcast %cst_24 : f32 to vector<64x512xf32>
    %42 = arith.mulf %41, %40 : vector<64x512xf32>
    %43 = arith.mulf %37, %42 : vector<64x512xf32>
    %44 = arith.addf %37, %43 : vector<64x512xf32>
    %cst_25 = arith.constant 0.797884583 : f32
    %45 = vector.broadcast %cst_25 : f32 to vector<64x512xf32>
    %46 = arith.mulf %45, %44 : vector<64x512xf32>
    %47 = math.tanh %46 : vector<64x512xf32>
    %cst_26 = arith.constant 1.000000e+00 : f32
    %48 = vector.broadcast %cst_26 : f32 to vector<64x512xf32>
    %49 = arith.addf %48, %47 : vector<64x512xf32>
    %50 = arith.mulf %39, %49 : vector<64x512xf32>
    %51 = arith.truncf %50 : vector<64x512xf32> to vector<64x512xbf16>
    %c0_27 = arith.constant 0 : index
    %c0_28 = arith.constant 0 : index
    %52 = vector.load %arg10[%c0_27, %c0_28] : memref<512x128xbf16, #tpu.memory_space<vmem>>, vector<512x128xbf16>
    %cst_29 = arith.constant dense<0.000000e+00> : vector<64x128xf32>
    %53 = tpu.matmul %51, %52, %cst_29 {dimension_numbers = #tpu.dot_dimension_numbers<[1], [0], [0], [1], [0, 0, 1, 1], [], []>} : vector<64x512xbf16>, vector<512x128xbf16>, vector<64x128xf32> -> vector<64x128xf32>
    %c0_30 = arith.constant 0 : index
    %c0_31 = arith.constant 0 : index
    %54 = vector.load %arg11[%c0_30, %c0_31] : memref<1x128xf32, #tpu.memory_space<vmem>>, vector<1x128xf32>
    %55 = vector.broadcast %54 : vector<1x128xf32> to vector<64x128xf32>
    %56 = arith.addf %53, %55 : vector<64x128xf32>
    %57 = arith.addf %9, %56 : vector<64x128xf32>
    %c0_32 = arith.constant 0 : index
    %c0_33 = arith.constant 0 : index
    %c0_34 = arith.constant 0 : index
    %58 = vector.load %arg12[%c0_32, %c0_33, %c0_34] : memref<1x64x128xf32, #tpu.memory_space<vmem>>, vector<1x64x128xf32>
    %59 = vector.shape_cast %58 : vector<1x64x128xf32> to vector<64x128xf32>
    %60 = vector.shape_cast %57 : vector<64x128xf32> to vector<1x64x128xf32>
    tpu.vector_store %arg12[%c0_32, %c0_33, %c0_34], %60 {strides = array<i32>} : memref<1x64x128xf32, #tpu.memory_space<vmem>>, vector<1x64x128xf32>,
    return
  }
  func.func @transform_0(%arg0: i32, %arg1: i32) -> (i32, i32, i32) {
    %c0_i32 = arith.constant 0 : i32
    %c0_i32_0 = arith.constant 0 : i32
    return %arg0, %arg1, %c0_i32 : i32, i32, i32
  }
  func.func @transform_1(%arg0: i32, %arg1: i32) -> (i32, i32, i32) {
    %c0_i32 = arith.constant 0 : i32
    %c0_i32_0 = arith.constant 0 : i32
    return %arg0, %arg1, %c0_i32 : i32, i32, i32
  }
  func.func @transform_2(%arg0: i32, %arg1: i32) -> (i32, i32) {
    %c0_i32 = arith.constant 0 : i32
    %c0_i32_0 = arith.constant 0 : i32
    %c0_i32_1 = arith.constant 0 : i32
    return %c0_i32, %c0_i32_0 : i32, i32
  }
  func.func @transform_3(%arg0: i32, %arg1: i32) -> (i32, i32) {
    %c0_i32 = arith.constant 0 : i32
    %c0_i32_0 = arith.constant 0 : i32
    %c0_i32_1 = arith.constant 0 : i32
    return %c0_i32, %c0_i32_0 : i32, i32
  }
  func.func @transform_4(%arg0: i32, %arg1: i32) -> (i32, i32) {
    %c0_i32 = arith.constant 0 : i32
    %c0_i32_0 = arith.constant 0 : i32
    %c0_i32_1 = arith.constant 0 : i32
    return %c0_i32, %c0_i32_0 : i32, i32
  }
  func.func @transform_5(%arg0: i32, %arg1: i32) -> (i32, i32) {
    %c0_i32 = arith.constant 0 : i32
    %c0_i32_0 = arith.constant 0 : i32
    %c0_i32_1 = arith.constant 0 : i32
    return %c0_i32, %c0_i32_0 : i32, i32
  }
  func.func @transform_6(%arg0: i32, %arg1: i32) -> (i32, i32) {
    %c0_i32 = arith.constant 0 : i32
    %c0_i32_0 = arith.constant 0 : i32
    %c0_i32_1 = arith.constant 0 : i32
    return %c0_i32, %c0_i32_0 : i32, i32
  }
  func.func @transform_7(%arg0: i32, %arg1: i32) -> (i32, i32) {
    %c0_i32 = arith.constant 0 : i32
    %c0_i32_0 = arith.constant 0 : i32
    %c0_i32_1 = arith.constant 0 : i32
    return %c0_i32, %c0_i32_0 : i32, i32
  }
  func.func @transform_8(%arg0: i32, %arg1: i32) -> (i32, i32) {
    %c0_i32 = arith.constant 0 : i32
    %c0_i32_0 = arith.constant 0 : i32
    %c0_i32_1 = arith.constant 0 : i32
    return %c0_i32, %c0_i32_0 : i32, i32
  }
  func.func @transform_9(%arg0: i32, %arg1: i32) -> (i32, i32) {
    %c0_i32 = arith.constant 0 : i32
    %c0_i32_0 = arith.constant 0 : i32
    %c0_i32_1 = arith.constant 0 : i32
    return %c0_i32, %c0_i32_0 : i32, i32
  }
  func.func @transform_10(%arg0: i32, %arg1: i32) -> (i32, i32, i32) {
    %c0_i32 = arith.constant 0 : i32
    %c0_i32_0 = arith.constant 0 : i32
    return %arg0, %arg1, %c0_i32 : i32, i32, i32
  }
}

module attributes {stable_mosaic.version = 11 : i64} {
  func.func @_ln_qkv_kernel(%arg0: i32, %arg1: i32, %arg2: memref<1x64x128xf32, #tpu.memory_space<vmem>>, %arg3: memref<1x128xf32, #tpu.memory_space<vmem>>, %arg4: memref<1x128xf32, #tpu.memory_space<vmem>>, %arg5: memref<128x384xbf16, #tpu.memory_space<vmem>>, %arg6: memref<1x384xf32, #tpu.memory_space<vmem>>, %arg7: memref<1x64x384xbf16, #tpu.memory_space<vmem>>) attributes {dimension_semantics = [#tpu.dimension_semantics<parallel>, #tpu.dimension_semantics<parallel>], iteration_bounds = array<i64: 2, 2>, scalar_prefetch = 0 : i64, scratch_operands = 0 : i64, tpu.core_type = #tpu.core_type<tc>, window_params = [{transform_indices = @transform_0, window_bounds = array<i64: 1, 64, 128>}, {pipeline_mode = #tpu.pipeline_mode<synchronous>, transform_indices = @transform_1, window_bounds = array<i64: 1, 128>}, {pipeline_mode = #tpu.pipeline_mode<synchronous>, transform_indices = @transform_2, window_bounds = array<i64: 1, 128>}, {pipeline_mode = #tpu.pipeline_mode<synchronous>, transform_indices = @transform_3, window_bounds = array<i64: 128, 384>}, {pipeline_mode = #tpu.pipeline_mode<synchronous>, transform_indices = @transform_4, window_bounds = array<i64: 1, 384>}, {transform_indices = @transform_5, window_bounds = array<i64: 1, 64, 384>}]} {
    %c0 = arith.constant 0 : index
    %c0_0 = arith.constant 0 : index
    %c0_1 = arith.constant 0 : index
    %0 = vector.load %arg2[%c0, %c0_0, %c0_1] : memref<1x64x128xf32, #tpu.memory_space<vmem>>, vector<1x64x128xf32>
    %1 = vector.shape_cast %0 : vector<1x64x128xf32> to vector<64x128xf32>
    %c0_2 = arith.constant 0 : index
    %c0_3 = arith.constant 0 : index
    %2 = vector.load %arg3[%c0_2, %c0_3] : memref<1x128xf32, #tpu.memory_space<vmem>>, vector<1x128xf32>
    %c0_4 = arith.constant 0 : index
    %c0_5 = arith.constant 0 : index
    %3 = vector.load %arg4[%c0_4, %c0_5] : memref<1x128xf32, #tpu.memory_space<vmem>>, vector<1x128xf32>
    %cst = arith.constant dense<0.000000e+00> : vector<64xf32>
    %4 = vector.multi_reduction <add>, %1, %cst [1] : vector<64x128xf32> to vector<64xf32>
    %5 = vector.shape_cast %4 : vector<64xf32> to vector<64x1xf32>
    %cst_6 = arith.constant 1.280000e+02 : f32
    %6 = vector.broadcast %cst_6 : f32 to vector<64x1xf32>
    %7 = arith.divf %5, %6 : vector<64x1xf32>
    %8 = vector.broadcast %7 : vector<64x1xf32> to vector<64x128xf32>
    %9 = arith.subf %1, %8 : vector<64x128xf32>
    %10 = arith.mulf %9, %9 : vector<64x128xf32>
    %cst_7 = arith.constant dense<0.000000e+00> : vector<64xf32>
    %11 = vector.multi_reduction <add>, %10, %cst_7 [1] : vector<64x128xf32> to vector<64xf32>
    %12 = vector.shape_cast %11 : vector<64xf32> to vector<64x1xf32>
    %cst_8 = arith.constant 1.280000e+02 : f32
    %13 = vector.broadcast %cst_8 : f32 to vector<64x1xf32>
    %14 = arith.divf %12, %13 : vector<64x1xf32>
    %cst_9 = arith.constant 9.99999974E-6 : f32
    %15 = vector.broadcast %cst_9 : f32 to vector<64x1xf32>
    %16 = arith.addf %14, %15 : vector<64x1xf32>
    %17 = math.rsqrt %16 : vector<64x1xf32>
    %18 = vector.broadcast %17 : vector<64x1xf32> to vector<64x128xf32>
    %19 = arith.mulf %9, %18 : vector<64x128xf32>
    %20 = vector.broadcast %2 : vector<1x128xf32> to vector<64x128xf32>
    %21 = arith.mulf %19, %20 : vector<64x128xf32>
    %22 = vector.broadcast %3 : vector<1x128xf32> to vector<64x128xf32>
    %23 = arith.addf %21, %22 : vector<64x128xf32>
    %24 = arith.truncf %23 : vector<64x128xf32> to vector<64x128xbf16>
    %c0_10 = arith.constant 0 : index
    %c0_11 = arith.constant 0 : index
    %25 = vector.load %arg5[%c0_10, %c0_11] : memref<128x384xbf16, #tpu.memory_space<vmem>>, vector<128x384xbf16>
    %cst_12 = arith.constant dense<0.000000e+00> : vector<64x384xf32>
    %26 = tpu.matmul %24, %25, %cst_12 {dimension_numbers = #tpu.dot_dimension_numbers<[1], [0], [0], [1], [0, 0, 1, 1], [], []>} : vector<64x128xbf16>, vector<128x384xbf16>, vector<64x384xf32> -> vector<64x384xf32>
    %c0_13 = arith.constant 0 : index
    %c0_14 = arith.constant 0 : index
    %27 = vector.load %arg6[%c0_13, %c0_14] : memref<1x384xf32, #tpu.memory_space<vmem>>, vector<1x384xf32>
    %28 = vector.broadcast %27 : vector<1x384xf32> to vector<64x384xf32>
    %29 = arith.addf %26, %28 : vector<64x384xf32>
    %30 = arith.truncf %29 : vector<64x384xf32> to vector<64x384xbf16>
    %c0_15 = arith.constant 0 : index
    %c0_16 = arith.constant 0 : index
    %c0_17 = arith.constant 0 : index
    %31 = vector.load %arg7[%c0_15, %c0_16, %c0_17] : memref<1x64x384xbf16, #tpu.memory_space<vmem>>, vector<1x64x384xbf16>
    %32 = vector.shape_cast %31 : vector<1x64x384xbf16> to vector<64x384xbf16>
    %33 = vector.shape_cast %30 : vector<64x384xbf16> to vector<1x64x384xbf16>
    tpu.vector_store %arg7[%c0_15, %c0_16, %c0_17], %33 {strides = array<i32>} : memref<1x64x384xbf16, #tpu.memory_space<vmem>>, vector<1x64x384xbf16>,
    return
  }
  func.func @transform_0(%arg0: i32, %arg1: i32) -> (i32, i32, i32) {
    %c0_i32 = arith.constant 0 : i32
    %c0_i32_0 = arith.constant 0 : i32
    return %arg0, %arg1, %c0_i32 : i32, i32, i32
  }
  func.func @transform_1(%arg0: i32, %arg1: i32) -> (i32, i32) {
    %c0_i32 = arith.constant 0 : i32
    %c0_i32_0 = arith.constant 0 : i32
    %c0_i32_1 = arith.constant 0 : i32
    return %c0_i32, %c0_i32_0 : i32, i32
  }
  func.func @transform_2(%arg0: i32, %arg1: i32) -> (i32, i32) {
    %c0_i32 = arith.constant 0 : i32
    %c0_i32_0 = arith.constant 0 : i32
    %c0_i32_1 = arith.constant 0 : i32
    return %c0_i32, %c0_i32_0 : i32, i32
  }
  func.func @transform_3(%arg0: i32, %arg1: i32) -> (i32, i32) {
    %c0_i32 = arith.constant 0 : i32
    %c0_i32_0 = arith.constant 0 : i32
    %c0_i32_1 = arith.constant 0 : i32
    return %c0_i32, %c0_i32_0 : i32, i32
  }
  func.func @transform_4(%arg0: i32, %arg1: i32) -> (i32, i32) {
    %c0_i32 = arith.constant 0 : i32
    %c0_i32_0 = arith.constant 0 : i32
    %c0_i32_1 = arith.constant 0 : i32
    return %c0_i32, %c0_i32_0 : i32, i32
  }
  func.func @transform_5(%arg0: i32, %arg1: i32) -> (i32, i32, i32) {
    %c0_i32 = arith.constant 0 : i32
    %c0_i32_0 = arith.constant 0 : i32
    return %arg0, %arg1, %c0_i32 : i32, i32, i32
  }
}

module attributes {stable_mosaic.version = 11 : i64} {
  func.func @_causal_attention_kernel(%arg0: i32, %arg1: memref<1x128x384xbf16, #tpu.memory_space<vmem>>, %arg2: memref<1x128x128xbf16, #tpu.memory_space<vmem>>) attributes {dimension_semantics = [#tpu.dimension_semantics<parallel>], iteration_bounds = array<i64: 2>, scalar_prefetch = 0 : i64, scratch_operands = 0 : i64, tpu.core_type = #tpu.core_type<tc>, window_params = [{transform_indices = @transform_0, window_bounds = array<i64: 1, 128, 384>}, {transform_indices = @transform_1, window_bounds = array<i64: 1, 128, 128>}]} {
    %c0 = arith.constant 0 : index
    %c0_0 = arith.constant 0 : index
    %c0_1 = arith.constant 0 : index
    %0 = vector.load %arg1[%c0, %c0_0, %c0_1] : memref<1x128x384xbf16, #tpu.memory_space<vmem>>, vector<1x128x384xbf16>
    %1 = vector.shape_cast %0 : vector<1x128x384xbf16> to vector<128x384xbf16>
    %2 = tpu.iota {dimensions = array<i32: 0>} : vector<128x128xi32>
    %3 = tpu.iota {dimensions = array<i32: 1>} : vector<128x128xi32>
    %4 = arith.cmpi sle, %3, %2 : vector<128x128xi32>
    %5 = vector.extract_strided_slice %1 {offsets = [0, 0], sizes = [128, 32], strides = [1, 1]} : vector<128x384xbf16> to vector<128x32xbf16>
    %6 = vector.extract_strided_slice %1 {offsets = [0, 128], sizes = [128, 32], strides = [1, 1]} : vector<128x384xbf16> to vector<128x32xbf16>
    %7 = vector.extract_strided_slice %1 {offsets = [0, 256], sizes = [128, 32], strides = [1, 1]} : vector<128x384xbf16> to vector<128x32xbf16>
    %cst = arith.constant dense<0.000000e+00> : vector<128x128xf32>
    %8 = tpu.matmul %5, %6, %cst {dimension_numbers = #tpu.dot_dimension_numbers<[1], [1], [0], [0], [0, 0, 1, 0], [], []>} : vector<128x32xbf16>, vector<128x32xbf16>, vector<128x128xf32> -> vector<128x128xf32>
    %cst_2 = arith.constant 0.176776692 : f32
    %9 = vector.broadcast %cst_2 : f32 to vector<128x128xf32>
    %10 = arith.mulf %8, %9 : vector<128x128xf32>
    %cst_3 = arith.constant -1.000000e+30 : f32
    %11 = vector.broadcast %cst_3 : f32 to vector<128x128xf32>
    %12 = arith.select %4, %10, %11 : vector<128x128xi1>, vector<128x128xf32>
    %cst_4 = arith.constant dense<0xFF800000> : vector<128xf32>
    %13 = vector.multi_reduction <maximumf>, %12, %cst_4 [1] : vector<128x128xf32> to vector<128xf32>
    %14 = vector.shape_cast %13 : vector<128xf32> to vector<128x1xf32>
    %15 = vector.broadcast %14 : vector<128x1xf32> to vector<128x128xf32>
    %16 = arith.subf %12, %15 : vector<128x128xf32>
    %17 = math.exp %16 : vector<128x128xf32>
    %cst_5 = arith.constant dense<0.000000e+00> : vector<128xf32>
    %18 = vector.multi_reduction <add>, %17, %cst_5 [1] : vector<128x128xf32> to vector<128xf32>
    %19 = vector.shape_cast %18 : vector<128xf32> to vector<128x1xf32>
    %20 = tpu.reciprocal %19 {approx = true} : vector<128x1xf32> -> vector<128x1xf32>
    %21 = vector.broadcast %20 : vector<128x1xf32> to vector<128x128xf32>
    %22 = arith.mulf %17, %21 : vector<128x128xf32>
    %23 = arith.truncf %22 : vector<128x128xf32> to vector<128x128xbf16>
    %cst_6 = arith.constant dense<0.000000e+00> : vector<128x32xf32>
    %24 = tpu.matmul %23, %7, %cst_6 {dimension_numbers = #tpu.dot_dimension_numbers<[1], [0], [0], [1], [0, 0, 1, 1], [], []>} : vector<128x128xbf16>, vector<128x32xbf16>, vector<128x32xf32> -> vector<128x32xf32>
    %25 = vector.extract_strided_slice %1 {offsets = [0, 32], sizes = [128, 32], strides = [1, 1]} : vector<128x384xbf16> to vector<128x32xbf16>
    %26 = vector.extract_strided_slice %1 {offsets = [0, 160], sizes = [128, 32], strides = [1, 1]} : vector<128x384xbf16> to vector<128x32xbf16>
    %27 = vector.extract_strided_slice %1 {offsets = [0, 288], sizes = [128, 32], strides = [1, 1]} : vector<128x384xbf16> to vector<128x32xbf16>
    %cst_7 = arith.constant dense<0.000000e+00> : vector<128x128xf32>
    %28 = tpu.matmul %25, %26, %cst_7 {dimension_numbers = #tpu.dot_dimension_numbers<[1], [1], [0], [0], [0, 0, 1, 0], [], []>} : vector<128x32xbf16>, vector<128x32xbf16>, vector<128x128xf32> -> vector<128x128xf32>
    %cst_8 = arith.constant 0.176776692 : f32
    %29 = vector.broadcast %cst_8 : f32 to vector<128x128xf32>
    %30 = arith.mulf %28, %29 : vector<128x128xf32>
    %cst_9 = arith.constant -1.000000e+30 : f32
    %31 = vector.broadcast %cst_9 : f32 to vector<128x128xf32>
    %32 = arith.select %4, %30, %31 : vector<128x128xi1>, vector<128x128xf32>
    %cst_10 = arith.constant dense<0xFF800000> : vector<128xf32>
    %33 = vector.multi_reduction <maximumf>, %32, %cst_10 [1] : vector<128x128xf32> to vector<128xf32>
    %34 = vector.shape_cast %33 : vector<128xf32> to vector<128x1xf32>
    %35 = vector.broadcast %34 : vector<128x1xf32> to vector<128x128xf32>
    %36 = arith.subf %32, %35 : vector<128x128xf32>
    %37 = math.exp %36 : vector<128x128xf32>
    %cst_11 = arith.constant dense<0.000000e+00> : vector<128xf32>
    %38 = vector.multi_reduction <add>, %37, %cst_11 [1] : vector<128x128xf32> to vector<128xf32>
    %39 = vector.shape_cast %38 : vector<128xf32> to vector<128x1xf32>
    %40 = tpu.reciprocal %39 {approx = true} : vector<128x1xf32> -> vector<128x1xf32>
    %41 = vector.broadcast %40 : vector<128x1xf32> to vector<128x128xf32>
    %42 = arith.mulf %37, %41 : vector<128x128xf32>
    %43 = arith.truncf %42 : vector<128x128xf32> to vector<128x128xbf16>
    %cst_12 = arith.constant dense<0.000000e+00> : vector<128x32xf32>
    %44 = tpu.matmul %43, %27, %cst_12 {dimension_numbers = #tpu.dot_dimension_numbers<[1], [0], [0], [1], [0, 0, 1, 1], [], []>} : vector<128x128xbf16>, vector<128x32xbf16>, vector<128x32xf32> -> vector<128x32xf32>
    %45 = vector.extract_strided_slice %1 {offsets = [0, 64], sizes = [128, 32], strides = [1, 1]} : vector<128x384xbf16> to vector<128x32xbf16>
    %46 = vector.extract_strided_slice %1 {offsets = [0, 192], sizes = [128, 32], strides = [1, 1]} : vector<128x384xbf16> to vector<128x32xbf16>
    %47 = vector.extract_strided_slice %1 {offsets = [0, 320], sizes = [128, 32], strides = [1, 1]} : vector<128x384xbf16> to vector<128x32xbf16>
    %cst_13 = arith.constant dense<0.000000e+00> : vector<128x128xf32>
    %48 = tpu.matmul %45, %46, %cst_13 {dimension_numbers = #tpu.dot_dimension_numbers<[1], [1], [0], [0], [0, 0, 1, 0], [], []>} : vector<128x32xbf16>, vector<128x32xbf16>, vector<128x128xf32> -> vector<128x128xf32>
    %cst_14 = arith.constant 0.176776692 : f32
    %49 = vector.broadcast %cst_14 : f32 to vector<128x128xf32>
    %50 = arith.mulf %48, %49 : vector<128x128xf32>
    %cst_15 = arith.constant -1.000000e+30 : f32
    %51 = vector.broadcast %cst_15 : f32 to vector<128x128xf32>
    %52 = arith.select %4, %50, %51 : vector<128x128xi1>, vector<128x128xf32>
    %cst_16 = arith.constant dense<0xFF800000> : vector<128xf32>
    %53 = vector.multi_reduction <maximumf>, %52, %cst_16 [1] : vector<128x128xf32> to vector<128xf32>
    %54 = vector.shape_cast %53 : vector<128xf32> to vector<128x1xf32>
    %55 = vector.broadcast %54 : vector<128x1xf32> to vector<128x128xf32>
    %56 = arith.subf %52, %55 : vector<128x128xf32>
    %57 = math.exp %56 : vector<128x128xf32>
    %cst_17 = arith.constant dense<0.000000e+00> : vector<128xf32>
    %58 = vector.multi_reduction <add>, %57, %cst_17 [1] : vector<128x128xf32> to vector<128xf32>
    %59 = vector.shape_cast %58 : vector<128xf32> to vector<128x1xf32>
    %60 = tpu.reciprocal %59 {approx = true} : vector<128x1xf32> -> vector<128x1xf32>
    %61 = vector.broadcast %60 : vector<128x1xf32> to vector<128x128xf32>
    %62 = arith.mulf %57, %61 : vector<128x128xf32>
    %63 = arith.truncf %62 : vector<128x128xf32> to vector<128x128xbf16>
    %cst_18 = arith.constant dense<0.000000e+00> : vector<128x32xf32>
    %64 = tpu.matmul %63, %47, %cst_18 {dimension_numbers = #tpu.dot_dimension_numbers<[1], [0], [0], [1], [0, 0, 1, 1], [], []>} : vector<128x128xbf16>, vector<128x32xbf16>, vector<128x32xf32> -> vector<128x32xf32>
    %65 = vector.extract_strided_slice %1 {offsets = [0, 96], sizes = [128, 32], strides = [1, 1]} : vector<128x384xbf16> to vector<128x32xbf16>
    %66 = vector.extract_strided_slice %1 {offsets = [0, 224], sizes = [128, 32], strides = [1, 1]} : vector<128x384xbf16> to vector<128x32xbf16>
    %67 = vector.extract_strided_slice %1 {offsets = [0, 352], sizes = [128, 32], strides = [1, 1]} : vector<128x384xbf16> to vector<128x32xbf16>
    %cst_19 = arith.constant dense<0.000000e+00> : vector<128x128xf32>
    %68 = tpu.matmul %65, %66, %cst_19 {dimension_numbers = #tpu.dot_dimension_numbers<[1], [1], [0], [0], [0, 0, 1, 0], [], []>} : vector<128x32xbf16>, vector<128x32xbf16>, vector<128x128xf32> -> vector<128x128xf32>
    %cst_20 = arith.constant 0.176776692 : f32
    %69 = vector.broadcast %cst_20 : f32 to vector<128x128xf32>
    %70 = arith.mulf %68, %69 : vector<128x128xf32>
    %cst_21 = arith.constant -1.000000e+30 : f32
    %71 = vector.broadcast %cst_21 : f32 to vector<128x128xf32>
    %72 = arith.select %4, %70, %71 : vector<128x128xi1>, vector<128x128xf32>
    %cst_22 = arith.constant dense<0xFF800000> : vector<128xf32>
    %73 = vector.multi_reduction <maximumf>, %72, %cst_22 [1] : vector<128x128xf32> to vector<128xf32>
    %74 = vector.shape_cast %73 : vector<128xf32> to vector<128x1xf32>
    %75 = vector.broadcast %74 : vector<128x1xf32> to vector<128x128xf32>
    %76 = arith.subf %72, %75 : vector<128x128xf32>
    %77 = math.exp %76 : vector<128x128xf32>
    %cst_23 = arith.constant dense<0.000000e+00> : vector<128xf32>
    %78 = vector.multi_reduction <add>, %77, %cst_23 [1] : vector<128x128xf32> to vector<128xf32>
    %79 = vector.shape_cast %78 : vector<128xf32> to vector<128x1xf32>
    %80 = tpu.reciprocal %79 {approx = true} : vector<128x1xf32> -> vector<128x1xf32>
    %81 = vector.broadcast %80 : vector<128x1xf32> to vector<128x128xf32>
    %82 = arith.mulf %77, %81 : vector<128x128xf32>
    %83 = arith.truncf %82 : vector<128x128xf32> to vector<128x128xbf16>
    %cst_24 = arith.constant dense<0.000000e+00> : vector<128x32xf32>
    %84 = tpu.matmul %83, %67, %cst_24 {dimension_numbers = #tpu.dot_dimension_numbers<[1], [0], [0], [1], [0, 0, 1, 1], [], []>} : vector<128x128xbf16>, vector<128x32xbf16>, vector<128x32xf32> -> vector<128x32xf32>
    %85 = tpu.concatenate %24, %44, %64, %84 in 1 : vector<128x32xf32>, vector<128x32xf32>, vector<128x32xf32>, vector<128x32xf32> -> vector<128x128xf32>
    %86 = arith.truncf %85 : vector<128x128xf32> to vector<128x128xbf16>
    %c0_25 = arith.constant 0 : index
    %c0_26 = arith.constant 0 : index
    %c0_27 = arith.constant 0 : index
    %87 = vector.load %arg2[%c0_25, %c0_26, %c0_27] : memref<1x128x128xbf16, #tpu.memory_space<vmem>>, vector<1x128x128xbf16>
    %88 = vector.shape_cast %87 : vector<1x128x128xbf16> to vector<128x128xbf16>
    %89 = vector.shape_cast %86 : vector<128x128xbf16> to vector<1x128x128xbf16>
    tpu.vector_store %arg2[%c0_25, %c0_26, %c0_27], %89 {strides = array<i32>} : memref<1x128x128xbf16, #tpu.memory_space<vmem>>, vector<1x128x128xbf16>,
    return
  }
  func.func @transform_0(%arg0: i32) -> (i32, i32, i32) {
    %c0_i32 = arith.constant 0 : i32
    %c0_i32_0 = arith.constant 0 : i32
    %c0_i32_1 = arith.constant 0 : i32
    return %arg0, %c0_i32, %c0_i32_0 : i32, i32, i32
  }
  func.func @transform_1(%arg0: i32) -> (i32, i32, i32) {
    %c0_i32 = arith.constant 0 : i32
    %c0_i32_0 = arith.constant 0 : i32
    %c0_i32_1 = arith.constant 0 : i32
    return %arg0, %c0_i32, %c0_i32_0 : i32, i32, i32
  }
}

</mosaic_0001>

<bundles_post_ra>
// kernel: _forward_impl.3
= control target key start
LH: loop header
LB: loop body
LE: loop exit
PB: predicated region body
PF: predicated region fallthrough
CT: control target
= control target key end

     0   :  { %s1721_s0 = inlined_call_operand.hbm [shape: f32[2,128,128], index: 0, kind: input, shape index: {}]   ;;  %s1722_s1 = inlined_call_operand.vmem [shape: f32[1,128], index: 1, kind: input, shape index: {}]   ;;  %s1723_s2 = inlined_call_operand.hbm [shape: f32[1,128], index: 2, kind: input, shape index: {}]   ;;  %s1724_s3 = inlined_call_operand.hbm [shape: bf16[128,384], index: 3, kind: input, shape index: {}]   ;;  %s1725_s4 = inlined_call_operand.vmem [shape: f32[1,384], index: 4, kind: input, shape index: {}]   ;;  %s1726_s5 = inlined_call_operand.vmem [shape: bf16[2,128,384], index: 5, kind: output, shape index: {}]  }
   0x1   :  { %1734 = sst [smem:[#allocation11_spill]] %s1723_s2 }
   0x2   :  { %1735 = sst [smem:[#allocation12_spill]] %s1724_s3 }
   0x3   :  { %10 = vsyncpa [#allocation3], 0 }
   0x4   :  { %12 = vsyncpa [#allocation3 + $0x1], 0 }
   0x5   :  { %13 = vsyncpa [#allocation5], 0  ;;  %s1423_s18 = smov 0   ;;  %s1425_s19 = smov 0  }
   0x6   :  { %s1427_s20 = smov 0   ;;  %s1429_s21 = smov 0  }
   0x7   :  { %s1431_s22 = smov 0   ;;  %s1433_s23 = smov 0  }
   0x8   :  { %s1435_s24 = smov 0   ;;  %s1437_s25 = smov 0  }
   0x9 LB: > { %1736 = sst [smem:[#allocation9_spill]] %s1375_s23  ;;  %s968_s26 = sadd.s32 4294967295, %s1383_s25   ;;  %s1383_s25 = sphi %s1437_s25, %s19_s25   ;;  %s1379_s24 = sphi %s1435_s24, %s1757_s24   ;;  %s1375_s23 = sphi %s1433_s23, %s1756_s23   ;;  %s1371_s22 = sphi %s1431_s22, %s1755_s22   ;;  %s1367_s21 = sphi %s1429_s21, %s1750_s21   ;;  %s1363_s20 = sphi %s1427_s20, %s1754_s20   ;;  %s1359_s19 = sphi %s1425_s19, %s1753_s19   ;;  %s1355_s18 = sphi %s1423_s18, %s1752_s18  }
   0xa   : > { %p47_p0 = scmp.ne.s32.totalorder %s1363_s20, %s1359_s19  ;;  %p48_p1 = scmp.eq.s32.totalorder %s1383_s25, 0 }
   0xb   : > { %p53_p2 = scmp.ne.s32.totalorder %s1359_s19, %s1355_s18  ;;  %p1467_p3 = scmp.eq.s32.totalorder %s968_s26, 0 }
   0xc   : > { %p49_p4 = por %p48_p1, %p47_p0  ;;  %p970_p5 = scmp.ge.s32.totalorder %s1383_s25, 1 }
   0xd   : > { %s1737_s28 = scalar_select %p1467_p3, 1, 0 }
   0xe   : > { %p1474_p6 = por %p1467_p3, %p53_p2  ;;  %p176_p7 = scmp.lt.s32.totalorder %s1383_s25, 5 }
   0xf   : > { %s1385_s6 = smov [#allocation4]   ;;  %p1105_p10 = scmp.lt.s32.totalorder %s1383_s25, 4 }
  0x10   : > { %s1738_s29 = scalar_select %p1474_p6, 1, 0 }
  0x11   : > { %p1479_p8 = pnand %p970_p5, %p176_p7  ;;  %s192_s7 = sshll.u32 %s1385_s6, 4  ;;  %s193_s7 = int_to_ptr.vmem [resolvable:$true] %s192_s7 }
  0x12   : > { %p1492_p12 = pnand %p1105_p10, %p49_p4  ;;  %s1386_s10 = smov [#allocation6]  }
  0x13   : > { %s1739_s30 = scalar_select %p1479_p8, 1, 0 }
  0x14   : > { %p1092_p9 = pneg %p1479_p8  ;;  %s202_s11 = sshll.u32 %s1386_s10, 4  ;;  %s203_s11 = int_to_ptr.vmem [resolvable:$true] %s202_s11 }
  0x15   : > { %s1741_s9 = scalar_select %p1492_p12, 1, 0 }
  0x16   : > { %p1488_p11 = pnand %p1092_p9, %p1467_p3  ;;  %s1742_s2 = sld [smem:[#allocation11_spill]] }
  0x18   : > { %p1229_p0 = pneg %p1488_p11 }
  0x1c   : > { %s1227_s14 = scalar_lea.hbm %s1742_s2, 16 }
  0x1d   : > { %p1228_p13 = scmp.ne.s32.totalorder %s1742_s2, %s1227_s14  ;;  %p1234_p4 = scmp.lt.u32.totalorder %s1227_s14, %s1742_s2 }
  0x1f   : > { %p1230_p1 = pnand %p1229_p0, %p1228_p13 }
  0x21   : > { %p1231_p2 = pneg %p1230_p1 }
  0x23   : > { %p1236_p5 = pnand %p1234_p4, %p1231_p2 }
  0x25   : > { %1239 = shalt.err (!%p1236_p5)
}
  0x26   : > { %s1240_s26 = scalar_lea.vmem %s193_s7, 16  ;;  %s1247_s6 = scalar_lea.vmem %s193_s7, 32 }
  0x27   : > { %p1241_p7 = scmp.ne.s32.totalorder %s193_s7, %s1240_s26  ;;  %p1248_p3 = scmp.lt.s32.totalorder %s193_s7, %s193_s7 }
  0x28   : > { %p1249_p6 = scmp.lt.s32.totalorder %s1247_s6, %s1240_s26 }
  0x29   : > { %p1243_p9 = pnand %p1241_p7, %p1229_p0 }
  0x2a   : > { %p1250_p8 = por %p1249_p6, %p1248_p3 }
  0x2b   : > { %p1244_p10 = pneg %p1243_p9 }
  0x2d   : > { %p1251_p12 = pnand %p1250_p8, %p1244_p10 }
  0x2f   : > { %1254 = shalt.err (!%p1251_p12)
}
  0x30   : > { %1095 = dma.hbm_to_vmem [thread:$0]  (!%p1488_p11), %s1742_s2, 16, %s193_s7, [#allocation5]  }
  0x31   : > { %s1743_s3 = sld [smem:[#allocation12_spill]] }
  0x37   : > { %s1255_s15 = scalar_lea.hbm %s1743_s3, 3072 }
  0x38   : > { %p1256_p13 = scmp.ne.s32.totalorder %s1743_s3, %s1255_s15  ;;  %p1262_p8 = scmp.lt.u32.totalorder %s1255_s15, %s1743_s3 }
  0x3a   : > { %p1258_p3 = pnand %p1256_p13, %p1229_p0 }
  0x3c   : > { %p1259_p6 = pneg %p1258_p3 }
  0x3e   : > { %p1264_p12 = pnand %p1262_p8, %p1259_p6 }
  0x40   : > { %1267 = shalt.err (!%p1264_p12)
}
  0x41   : > { %s1268_s7 = scalar_lea.vmem %s203_s11, 3072  ;;  %p1276_p5 = scmp.lt.s32.totalorder %s203_s11, %s203_s11 }
  0x42   : > { %p1269_p1 = scmp.ne.s32.totalorder %s203_s11, %s1268_s7  ;;  %p1277_p7 = scmp.lt.s32.totalorder %s1268_s7, %s1268_s7 }
  0x44   : > { %p1271_p2 = pnand %p1269_p1, %p1229_p0  ;;  %p1278_p9 = por %p1277_p7, %p1276_p5 }
  0x46   : > { %p1272_p4 = pneg %p1271_p2 }
  0x48   : > { %p1279_p10 = pnand %p1278_p9, %p1272_p4 }
  0x4a   : > { %1282 = shalt.err (!%p1279_p10)
}
  0x4b   : > { %s1387_s6 = smov 192   ;;  %s1388_s10 = smov 12  }
  0x4c   : > { %1098 = dma.hbm_to_vmem [thread:$0]  (!%p1488_p11), %s1743_s3, 3072, %s203_s11, [#allocation5], %s1387_s6, %s1387_s6, %s1388_s10  }
  0x4d   : > { %s28_s14 = sadd.s32 1, %s1375_s23  ;;  %s31_s15 = sadd.s32 1, %s1379_s24 }
  0x4e   : > { %p29_p0 = scmp.ge.s32.totalorder %s28_s14, 2  ;;  %s219_s16 = sand.u32 1, %s1363_s20  }
  0x4f   : > { %s975_s17 = sshll.u32 %s1375_s23, 3  ;;  %s974_s26 = sshll.u32 %s219_s16, 6 }
  0x50   : > { %s1759_s14 = smov (%p29_p0, %s28_s14), 0  ;;  %s1761_s15 = smov (!%p29_p0, %s31_s15), %s1379_s24 }
  0x51   : > { %1744 = sst [smem:[#allocation10_spill]] %s1759_s14  ;;  %s36_s18 = ssub.s32 %s1375_s23, %s1759_s14 }
  0x52   : > { %p33_p13 = scmp.ge.s32.totalorder %s1761_s15, 2  ;;  %s976_s8 = sshll.u32 %s1379_s24, 4 }
  0x53   : > { %s229_s11 = sadd.s32 %s976_s8, %s975_s17  ;;  %s223_s7 = scalar_lea.vmem [#allocation2], %s974_s26 }
  0x54   : > { %s1763_s15 = smov (%p33_p13, %s1761_s15), 0  ;;  %s232_s6 = sshll.u32 %s223_s7, 4  ;;  %s1557_s6 = int_to_ptr.vmem [resolvable:$true] %s232_s6 }
  0x55   : > { %s35_s10 = ssub.s32 %s1379_s24, %s1763_s15  ;;  %s977_s12 = sshll.u32 %s229_s11, 7 }
  0x56   : > { %s37_s13 = sor.u32 %s36_s18, %s35_s10  ;;  %s1555_s3 = scalar_lea.hbm %s1721_s0, %s977_s12 }
  0x57   : > { %p38_p11 = scmp.eq.s32.totalorder %s37_s13, 0  ;;  %s1745_s14 = sadd.s32 1, %s1363_s20 }
  0x58   : > { %s1564_s17 = scalar_lea.sflag [#allocation3], %s219_s16  ;;  %s1283_s26 = scalar_lea.hbm %s1555_s3, 1024 }
  0x59   : > { %s1562_s23 = scalar_select %p38_p11, %s1363_s20, %s1745_s14  }
  0x5a   : > { %p1284_p3 = scmp.ne.s32.totalorder %s1555_s3, %s1283_s26  ;;  %p1746_p6 = scmp.ne.s32.totalorder %s1741_s9, 0 }
  0x5b   : > { %s1288_s18 = scalar_lea.hbm %s1721_s0, 4096  ;;  %p1289_p2 = scmp.lt.u32.totalorder %s1555_s3, %s1721_s0 }
  0x5c   : > { %p1285_p8 = pneg %p1746_p6  ;;  %p1290_p4 = scmp.lt.u32.totalorder %s1288_s18, %s1283_s26 }
  0x5d   : > { %p1292_p7 = scmp.lt.u32.totalorder %s1283_s26, %s1555_s3 }
  0x5e   : > { %p1286_p12 = pnand %p1285_p8, %p1284_p3  ;;  %p1291_p5 = por %p1290_p4, %p1289_p2 }
  0x60   : > { %p1287_p1 = pneg %p1286_p12  ;;  %p1293_p9 = por %p1292_p7, %p1291_p5 }
  0x62   : > { %p1294_p10 = pnand %p1293_p9, %p1287_p1 }
  0x64   : > { %1297 = shalt.err (!%p1294_p10)
}
  0x65   : > { %s1298_s14 = scalar_lea.vmem %s1557_s6, 1024  ;;  %s1389_s16 = smov [#allocation2]  }
  0x66   : > { %p1299_p0 = scmp.ne.s32.totalorder %s1557_s6, %s1298_s14  ;;  %s1303_s7 = sshll.u32 %s1389_s16, 4  ;;  %s1304_s7 = int_to_ptr.vmem [resolvable:$false] %s1303_s7 }
  0x67   : > { %s1305_s10 = scalar_lea.vmem %s1304_s7, 2048  ;;  %p1306_p3 = scmp.lt.s32.totalorder %s1557_s6, %s1304_s7 }
  0x68   : > { %p1301_p13 = pnand %p1299_p0, %p1285_p8  ;;  %p1307_p12 = scmp.lt.s32.totalorder %s1305_s10, %s1298_s14 }
  0x6a   : > { %p1302_p11 = pneg %p1301_p13  ;;  %p1308_p2 = por %p1307_p12, %p1306_p3 }
  0x6c   : > { %p1309_p4 = pnand %p1308_p2, %p1302_p11 }
  0x6e   : > { %1312 = shalt.err (!%p1309_p4)
}
  0x6f   : > { %s1390_s12 = smov 128   ;;  %s1391_s13 = smov 8  }
  0x70   : > { %1102 = dma.hbm_to_vmem [thread:$0]  (!%p1746_p6), %s1555_s3, 1024, %s1557_s6, %s1564_s17, %s1390_s12, %s1390_s12, %s1391_s13  }
  0x71   : > { %p1747_p8 = scmp.ne.s32.totalorder %s1739_s30, 0 }
  0x72   : > { %s246_s26 = sand.u32 (!%p1747_p8), 1, %s1359_s19   ;;  %p1748_p1 = scmp.ne.s32.totalorder (!%p1747_p8), %s1738_s29, 0 }
  0x73   : > { %244 = sbr.rel (%p1747_p8) target bundleno = 688 (0x2b0), region = 40  ;;  %s979_s2 = sshll.u32 (!%p1747_p8), %s246_s26, 6 }
  0x74   : > { %s247_s27 = scalar_lea.sflag (!%p1747_p8), [#allocation3], %s246_s26  ;;  %s250_s18 = scalar_lea.vmem (!%p1747_p8), [#allocation2], %s979_s2 }
  0x7a   : > { %1346 = dma.done.wait (%p1748_p1), %s247_s27, 1024  }
  0x7b   : > { %1348 = vsyncadd (%p1748_p1), %s247_s27, 4294966272  ;;  %p1749_p5 = scmp.ne.s32.totalorder %s1737_s28, 0 }
  0x7d   : > { %1350 = dma.done.wait (%p1749_p5), [#allocation5], 3088  }
  0x7e   : > { %1352 = vsyncadd (%p1749_p5), [#allocation5], 4294964208  ;;  %v303_v0 = vld [vmem:[%s250_s18] sm:$0xff]  ;;  %v305_v1 = vld [vmem:[%s250_s18 + $0x10] sm:$0xff]  ;;  %v1392_v63 = vmov 0   ;;  %s982_s29 = sshll.u32 %s1367_s21, 3 }
  0x7f   : > { %313 = vadd.xlane.f32.xlu0 %v303_v0  ;;  %317 = vadd.xlane.f32.xlu1 %v305_v1  ;;  %v304_v2 = vld [vmem:[%s250_s18 + $0x8] sm:$0xff]  ;;  %v306_v3 = vld [vmem:[%s250_s18 + $0x18] sm:$0xff]  ;;  %v307_v4 = vld [vmem:[%s250_s18 + $0x20] sm:$0xff]  ;;  %p292_p6 = scmp.lt.s32.totalorder %s1371_s22, 1  ;;  %p294_p7 = scmp.lt.s32.totalorder %s982_s29, 15 }
  0x80   : > { %v308_v5 = vld [vmem:[%s250_s18 + $0x28] sm:$0xff]  ;;  %v309_v6 = vld [vmem:[%s250_s18 + $0x30] sm:$0xff]  ;;  %v310_v7 = vld [vmem:[%s250_s18 + $0x38] sm:$0xff]  ;;  %643 = vmatprep.mubr.bf16.mxu0 %v1392_v63 }
  0x81   : > { %v1179_v8 = vld [vmem:[#allocation6 + $0x4] ss:$12 sps:$4 sm:$0xff]   ;;  %v1181_v9 = vld [vmem:[#allocation6] ss:$12 sps:$4 sm:$0xff]   ;;  %v1182_v10 = vld [vmem:[#allocation6 + $0x1c] ss:$12 sps:$4 sm:$0xff]  }
  0x82   : > { %v1184_v11 = vld [vmem:[#allocation6 + $0x8] ss:$12 sps:$4 sm:$0xff]   ;;  %611 = vmatprep.subr.bf16.mxu0 %v1179_v8  ;;  %v1185_v44 = vld [vmem:[#allocation6 + $0x18] ss:$12 sps:$4 sm:$0xff]   ;;  %v1188_v46 = vld [vmem:[#allocation6 + $0x20] ss:$12 sps:$4 sm:$0xff]  }
  0x83   : > { %315 = vadd.xlane.f32.xlu0 %v304_v2  ;;  %319 = vadd.xlane.f32.xlu1 %v306_v3  ;;  %v1186_v45 = vld [vmem:[#allocation6 + $0x34] ss:$12 sps:$4 sm:$0xff]   ;;  %v1189_v47 = vld [vmem:[#allocation6 + $0x30] ss:$12 sps:$4 sm:$0xff]   ;;  %v1190_v48 = vld [vmem:[#allocation6 + $0x4c] ss:$12 sps:$4 sm:$0xff]  }
  0x84   : > { %612 = vmatpush1.bf16.msra.mxu0 %v1181_v9  ;;  %1056 = vmatprep.subr.bf16.mxu1 %v1184_v11  ;;  %v1192_v49 = vld [vmem:[#allocation6 + $0x38] ss:$12 sps:$4 sm:$0xff]   ;;  %v1193_v50 = vld [vmem:[#allocation6 + $0x48] ss:$12 sps:$4 sm:$0xff]   ;;  %v1196_v52 = vld [vmem:[#allocation6 + $0x50] ss:$12 sps:$4 sm:$0xff]  }
  0x85   : > { %613 = vmatprep.subr.bf16.mxu0 %v1182_v10  ;;  %1057 = vmatpush3.bf16.msra.mxu1 %v1184_v11  ;;  %v1194_v51 = vld [vmem:[#allocation6 + $0x64] ss:$12 sps:$4 sm:$0xff]   ;;  %v1197_v53 = vld [vmem:[#allocation6 + $0x60] ss:$12 sps:$4 sm:$0xff]   ;;  %v1198_v54 = vld [vmem:[#allocation6 + $0x7c] ss:$12 sps:$4 sm:$0xff]  }
  0x86   : > { %1058 = vmatprep.subr.bf16.mxu1 %v1188_v46  ;;  %v1200_v55 = vld [vmem:[#allocation6 + $0x68] ss:$12 sps:$4 sm:$0xff]   ;;  %v1201_v56 = vld [vmem:[#allocation6 + $0x78] ss:$12 sps:$4 sm:$0xff]   ;;  %v1204_v58 = vld [vmem:[#allocation6 + $0x80] ss:$12 sps:$4 sm:$0xff]  }
  0x87   : > { %321 = vadd.xlane.f32.xlu0 %v307_v4  ;;  %323 = vadd.xlane.f32.xlu1 %v308_v5  ;;  %v1202_v57 = vld [vmem:[#allocation6 + $0x94] ss:$12 sps:$4 sm:$0xff]   ;;  %v1205_v59 = vld [vmem:[#allocation6 + $0x90] ss:$12 sps:$4 sm:$0xff]   ;;  %v1206_v60 = vld [vmem:[#allocation6 + $0xac] ss:$12 sps:$4 sm:$0xff]  }
  0x88   : > { %614 = vmatpush1.bf16.msra.mxu0 %v1185_v44  ;;  %v1208_v61 = vld [vmem:[#allocation6 + $0x98] ss:$12 sps:$4 sm:$0xff]   ;;  %v1209_v62 = vld [vmem:[#allocation6 + $0xa8] ss:$12 sps:$4 sm:$0xff]   ;;  %s1765_s22 = smov (!%p292_p6, %s1371_s22), 1  ;;  %s1767_s29 = smov (!%p294_p7, %s982_s29), 15 }
  0x89   : > { %615 = vmatprep.subr.bf16.mxu0 %v1186_v45  ;;  %1059 = vmatpush3.bf16.msra.mxu1 %v1188_v46  ;;  %s1081_s30 = smul.u32 48, %s1765_s22 }
  0x8a   : > { %1060 = vmatprep.subr.bf16.mxu1 %v1192_v49  ;;  %s1080_s9 = smul.u32 3, %s1767_s29 }
  0x8b   : > { %325 = vadd.xlane.f32.xlu0 %v309_v6  ;;  %327 = vadd.xlane.f32.xlu1 %v310_v7 }
  0x8c   : > { %616 = vmatpush1.bf16.msra.mxu0 %v1189_v47  ;;  %s298_s8 = sadd.s32 %s1081_s30, %s1080_s9 }
  0x8d   : > { %617 = vmatprep.subr.bf16.mxu0 %v1190_v48  ;;  %1061 = vmatpush3.bf16.msra.mxu1 %v1192_v49  ;;  %s983_s21 = sshll.u32 %s298_s8, 2 }
  0x8e   : > { %1062 = vmatprep.subr.bf16.mxu1 %v1196_v52  ;;  %s1665_s14 = scalar_lea.vmem %s1726_s5, %s983_s21 }
  0x90   : > { %618 = vmatpush1.bf16.msra.mxu0 %v1193_v50 }
  0x91   : > { %619 = vmatprep.subr.bf16.mxu0 %v1194_v51  ;;  %1063 = vmatpush3.bf16.msra.mxu1 %v1196_v52 }
  0x92   : > { %1064 = vmatprep.subr.bf16.mxu1 %v1200_v55 }
  0x94   : > { %620 = vmatpush1.bf16.msra.mxu0 %v1197_v53 }
  0x95   : > { %621 = vmatprep.subr.bf16.mxu0 %v1198_v54  ;;  %1065 = vmatpush3.bf16.msra.mxu1 %v1200_v55 }
  0x96   : > { %1066 = vmatprep.subr.bf16.mxu1 %v1204_v58 }
  0x98   : > { %622 = vmatpush1.bf16.msra.mxu0 %v1201_v56 }
  0x99   : > { %623 = vmatprep.subr.bf16.mxu0 %v1202_v57  ;;  %1067 = vmatpush3.bf16.msra.mxu1 %v1204_v58 }
  0x9a   : > { %1068 = vmatprep.subr.bf16.mxu1 %v1208_v61 }
  0x9c   : > { %624 = vmatpush1.bf16.msra.mxu0 %v1205_v59 }
  0x9d   : > { %625 = vmatprep.subr.bf16.mxu0 %v1206_v60  ;;  %1069 = vmatpush3.bf16.msra.mxu1 %v1208_v61 }
  0xa0   : > { %626 = vmatpush1.bf16.msra.mxu0 %v1209_v62 }
 0x10c   : > { %v314_v12 = vpop.xlane.xlu0 %313  ;;  %v318_v13 = vpop.xlane.xlu1 %317 }
 0x10d   : > { %v330_v14 = vmul.f32 0.0078125, %v314_v12  ;;  %v332_v15 = vmul.f32 0.0078125, %v318_v13 }
 0x10f   : > { %v1603_v16 = vsub.f32 %v303_v0, %v330_v14  ;;  %v1605_v17 = vsub.f32 %v305_v1, %v332_v15  ;;  %v1210_v0 = vld [vmem:[#allocation6 + $0xb0] ss:$12 sps:$4 sm:$0xff]  }
 0x110   : > { %v316_v18 = vpop.xlane.xlu0 %315  ;;  %v320_v19 = vpop.xlane.xlu1 %319  ;;  %1070 = vmatprep.subr.bf16.mxu1 %v1210_v0 }
 0x111   : > { %v331_v20 = vmul.f32 0.0078125, %v316_v18  ;;  %v346_v21 = vmul.f32 %v1603_v16, %v1603_v16  ;;  %v333_v22 = vmul.f32 0.0078125, %v320_v19  ;;  %v348_v25 = vmul.f32 %v1605_v17, %v1605_v17  ;;  %1071 = vmatpush3.bf16.msra.mxu1 %v1210_v0 }
 0x113   : > { %v1609_v23 = vsub.f32 %v304_v2, %v331_v20  ;;  %354 = vadd.xlane.f32.xlu0 %v346_v21  ;;  %v1611_v24 = vsub.f32 %v306_v3, %v333_v22 }
 0x114   : > { %v322_v26 = vpop.xlane.xlu0 %321  ;;  %v324_v27 = vpop.xlane.xlu1 %323 }
 0x115   : > { %v334_v28 = vmul.f32 0.0078125, %v322_v26  ;;  %v347_v29 = vmul.f32 %v1609_v23, %v1609_v23  ;;  %v335_v30 = vmul.f32 0.0078125, %v324_v27  ;;  %v349_v33 = vmul.f32 %v1611_v24, %v1611_v24 }
 0x117   : > { %v1617_v31 = vsub.f32 %v307_v4, %v334_v28  ;;  %358 = vadd.xlane.f32.xlu0 %v348_v25  ;;  %356 = vadd.xlane.f32.xlu1 %v347_v29  ;;  %v1619_v32 = vsub.f32 %v308_v5, %v335_v30  ;;  %v984_v30 = vld [vmem:[%s1722_s1] ss:$0 sm:$0xff] }
 0x118   : > { %v326_v34 = vpop.xlane.xlu0 %325  ;;  %v328_v35 = vpop.xlane.xlu1 %327 }
 0x119   : > { %v336_v36 = vmul.f32 0.0078125, %v326_v34  ;;  %v350_v37 = vmul.f32 %v1617_v31, %v1617_v31  ;;  %v337_v38 = vmul.f32 0.0078125, %v328_v35  ;;  %v351_v41 = vmul.f32 %v1619_v32, %v1619_v32 }
 0x11b   : > { %v1625_v39 = vsub.f32 %v309_v6, %v336_v36  ;;  %360 = vadd.xlane.f32.xlu1 %v349_v33  ;;  %362 = vadd.xlane.f32.xlu0 %v350_v37  ;;  %v1627_v40 = vsub.f32 %v310_v7, %v337_v38  ;;  %v985_v38 = vld [vmem:[#allocation4] ss:$0 sm:$0xff] }
 0x11d   : > { %v352_v42 = vmul.f32 %v1625_v39, %v1625_v39  ;;  %v353_v43 = vmul.f32 %v1627_v40, %v1627_v40 }
 0x11f   : > { %364 = vadd.xlane.f32.xlu1 %v351_v41  ;;  %366 = vadd.xlane.f32.xlu0 %v352_v42 }
 0x123   : > { %368 = vadd.xlane.f32.xlu1 %v353_v43 }
 0x1a0   : > { %v355_v1 = vpop.xlane.xlu0 %354 }
 0x1a1   : > { %v370_v2 = vmul.f32 0.0078125, %v355_v1  ;;  %v468_v1 = vlaneseq }
 0x1a3   : > { %v378_v3 = vadd.f32 1e-05, %v370_v2 }
 0x1a4   : > { %v357_v4 = vpop.xlane.xlu1 %356  ;;  %v359_v5 = vpop.xlane.xlu0 %358 }
 0x1a5   : > { %1211 = vrsqrt.f32 %v378_v3  ;;  %v371_v6 = vmul.f32 0.0078125, %v357_v4  ;;  %v372_v7 = vmul.f32 0.0078125, %v359_v5  ;;  %v466_v3 = vld [vmem:[%s1725_s4] sm:$0x7] }
 0x1a7   : > { %v379_v8 = vadd.f32 1e-05, %v371_v6  ;;  %v380_v9 = vadd.f32 1e-05, %v372_v7 }
 0x1a8   : > { %v361_v10 = vpop.xlane.xlu1 %360  ;;  %v363_v11 = vpop.xlane.xlu0 %362 }
 0x1a9   : > { %1213 = vrsqrt.f32 %v379_v8  ;;  %v373_v12 = vmul.f32 0.0078125, %v361_v10  ;;  %v374_v13 = vmul.f32 0.0078125, %v363_v11 }
 0x1aa   : > { %1215 = vrsqrt.f32 %v380_v9 }
 0x1ab   : > { %v381_v14 = vadd.f32 1e-05, %v373_v12  ;;  %v382_v15 = vadd.f32 1e-05, %v374_v13 }
 0x1ac   : > { %v365_v18 = vpop.xlane.xlu1 %364  ;;  %v367_v19 = vpop.xlane.xlu0 %366 }
 0x1ad   : > { %1217 = vrsqrt.f32 %v381_v14  ;;  %v375_v20 = vmul.f32 0.0078125, %v365_v18  ;;  %v376_v21 = vmul.f32 0.0078125, %v367_v19 }
 0x1ae   : > { %1219 = vrsqrt.f32 %v382_v15 }
 0x1af   : > { %v1212_v22 = vpop.eup %1211  ;;  %v383_v25 = vadd.f32 1e-05, %v375_v20  ;;  %v384_v26 = vadd.f32 1e-05, %v376_v21 }
 0x1b0   : > { %v369_v27 = vpop.xlane.xlu1 %368  ;;  %v394_v28 = vmul.f32 %v1212_v22, %v1603_v16 }
 0x1b1   : > { %1221 = vrsqrt.f32 %v383_v25  ;;  %v377_v29 = vmul.f32 0.0078125, %v369_v27 }
 0x1b2   : > { %1223 = vrsqrt.f32 %v384_v26  ;;  %v408_v37 = vmul.f32 %v984_v30, %v394_v28 }
 0x1b3   : > { %v1214_v33 = vpop.eup %1213  ;;  %v385_v34 = vadd.f32 1e-05, %v377_v29 }
 0x1b4   : > { %v1216_v35 = vpop.eup %1215  ;;  %v395_v36 = vmul.f32 %v1214_v33, %v1609_v23  ;;  %v422_v45 = vadd.f32 %v985_v38, %v408_v37 }
 0x1b5   : > { %1225 = vrsqrt.f32 %v385_v34  ;;  %v396_v41 = vmul.f32 %v1216_v35, %v1605_v17 }
 0x1b6   : > { %v409_v42 = vmul.f32 %v984_v30, %v395_v36 }
 0x1b7   : > { %v1218_v43 = vpop.eup %1217  ;;  %v410_v16 = vmul.f32 %v984_v30, %v396_v41 }
 0x1b8   : > { %v1220_v44 = vpop.eup %1219  ;;  %v423_v46 = vadd.f32 %v985_v38, %v409_v42  ;;  %v397_v47 = vmul.f32 %v1218_v43, %v1611_v24 }
 0x1b9   : > { %v398_v48 = vmul.f32 %v1220_v44, %v1617_v31  ;;  %v424_v52 = vadd.f32 %v985_v38, %v410_v16 }
 0x1ba   : > { %v430_v49 = vpack.c.bf16 %v423_v46, %v422_v45  ;;  %v411_v50 = vmul.f32 %v984_v30, %v397_v47 }
 0x1bb   : > { %v1222_v51 = vpop.eup %1221  ;;  %v412_v54 = vmul.f32 %v984_v30, %v398_v48 }
 0x1bc   : > { %v1224_v23 = vpop.eup %1223  ;;  %644 = vmatmul.mubr.bf16.vlgmr.msra.gmra.mrb[0].mxu0 %v430_v49  ;;  %1072 = vmatprep.mubr.bf16.mxu1 %v430_v49  ;;  %v425_v53 = vadd.f32 %v985_v38, %v411_v50  ;;  %v399_v17 = vmul.f32 %v1222_v51, %v1619_v32 }
 0x1bd   : > { %653 = vmatprep.mubr.bf16.mxu0 %v1392_v63  ;;  %v400_v55 = vmul.f32 %v1224_v23, %v1625_v39  ;;  %v426_v31 = vadd.f32 %v985_v38, %v412_v54 }
 0x1be   : > { %v431_v56 = vpack.c.bf16 %v425_v53, %v424_v52  ;;  %v413_v57 = vmul.f32 %v984_v30, %v399_v17 }
 0x1bf   : > { %v1226_v24 = vpop.eup %1225  ;;  %v414_v60 = vmul.f32 %v984_v30, %v400_v55 }
 0x1c0   : > { %1073 = vmatmul.mubr.bf16.vlgmr.msra.gmra.mrb[0].mxu1 %v431_v56  ;;  %v427_v58 = vadd.f32 %v985_v38, %v413_v57  ;;  %v401_v59 = vmul.f32 %v1226_v24, %v1627_v40  ;;  %v469_v40 = vshrl.u32 %v468_v1, 7 }
 0x1c1   : > { %v428_v32 = vadd.f32 %v985_v38, %v414_v60 }
 0x1c2   : > { %v432_v61 = vpack.c.bf16 %v427_v58, %v426_v31  ;;  %v415_v62 = vmul.f32 %v984_v30, %v401_v59  ;;  %v470_v2 = vsub.s32 0, %v469_v40  ;;  %v474_v4 = vsub.s32 1, %v469_v40 }
 0x1c4   : > { %654 = vmatmul.mubr.bf16.gmra.mrb[4].mxu0 %v431_v56  ;;  %1076 = vmatprep.mubr.bf16.mxu1 %v432_v61  ;;  %v429_v0 = vadd.f32 %v985_v38, %v415_v62  ;;  %v1656_v5 = vrot.slane %v466_v3, %v470_v2  ;;  %v1658_v6 = vrot.slane %v466_v3, %v474_v4 }
 0x1c5   : > { %663 = vmatprep.mubr.bf16.mxu0 %v1392_v63 }
 0x1c6   : > { %v433_v39 = vpack.c.bf16 %v429_v0, %v428_v32 }
 0x1c8   : > { %1077 = vmatmul.mubr.bf16.gmra.mrb[4].mxu1 %v433_v39 }
 0x1cc   : > { %664 = vmatmul.mubr.bf16.gmra.mrb[8].mxu0 %v432_v61 }
 0x1cd   : > { %673 = vmatprep.mubr.bf16.mxu0 %v1392_v63  ;;  %v478_v63 = vsub.s32 2, %v469_v40 }
 0x1cf   : > { %v479_v10 = vrot.slane %v466_v3, %v478_v63 }
 0x1d4   : > { %674 = vmatmul.mubr.bf16.gmra.mrb[12].mxu0 %v433_v39 }
 0x28f   : > { %v645_v7 = vpop.f32.mrb[0].mxu0 }
 0x290   : > { %v646_v8 = vadd.f32 %v645_v7, %v1656_v5  ;;  %v647_v9 = vpop.f32.mrb[1].mxu0 }
 0x291   : > { %v648_v11 = vadd.f32 %v647_v9, %v1658_v6  ;;  %v649_v12 = vpop.f32.mrb[2].mxu0 }
 0x292   : > { %v650_v13 = vadd.f32 %v649_v12, %v1656_v5  ;;  %v651_v14 = vpop.f32.mrb[3].mxu0 }
 0x293   : > { %v1028_v15 = vpack.c.bf16 %v648_v11, %v646_v8  ;;  %v652_v18 = vadd.f32 %v651_v14, %v1658_v6  ;;  %v1074_v19 = vpop.f32.mrb[0].mxu1 }
 0x294   : > { %v727_v20 = vadd.f32 %v1074_v19, %v479_v10  ;;  %v718_v21 = vpop.f32.mrb[1].mxu1 }
 0x295   : > { %829 = vst [vmem:[%s1665_s14] sm:$0xff] %v1028_v15  ;;  %v1030_v22 = vpack.c.bf16 %v652_v18, %v650_v13  ;;  %v719_v25 = vadd.f32 %v718_v21, %v479_v10  ;;  %v1075_v26 = vpop.f32.mrb[2].mxu1 }
 0x296   : > { %v1033_v27 = vpack.c.bf16 %v727_v20, %v727_v20  ;;  %v730_v28 = vadd.f32 %v1075_v26, %v479_v10  ;;  %v721_v29 = vpop.f32.mrb[3].mxu1 }
 0x297   : > { %831 = vst [vmem:[%s1665_s14 + $0xc] sm:$0xff] %v1030_v22  ;;  %v1029_v30 = vpack.c.bf16 %v719_v25, %v719_v25  ;;  %v722_v33 = vadd.f32 %v721_v29, %v479_v10  ;;  %v655_v34 = vpop.f32.mrb[4].mxu0 }
 0x298   : > { %834 = vst [vmem:[%s1665_s14 + $0x20] sm:$0xf] %v1033_v27  ;;  %v1035_v35 = vpack.c.bf16 %v730_v28, %v730_v28  ;;  %v656_v36 = vadd.f32 %v655_v34, %v1656_v5  ;;  %v657_v37 = vpop.f32.mrb[5].mxu0 }
 0x299   : > { %830 = vst [vmem:[%s1665_s14 + $0x8] sm:$0xf] %v1029_v30  ;;  %v1031_v38 = vpack.c.bf16 %v722_v33, %v722_v33  ;;  %v658_v41 = vadd.f32 %v657_v37, %v1658_v6  ;;  %v659_v42 = vpop.f32.mrb[6].mxu0 }
 0x29a   : > { %836 = vst [vmem:[%s1665_s14 + $0x2c] sm:$0xf] %v1035_v35  ;;  %v660_v43 = vadd.f32 %v659_v42, %v1656_v5  ;;  %v661_v16 = vpop.f32.mrb[7].mxu0 }
 0x29b   : > { %832 = vst [vmem:[%s1665_s14 + $0x14] sm:$0xf] %v1031_v38  ;;  %v1032_v44 = vpack.c.bf16 %v658_v41, %v656_v36  ;;  %v662_v45 = vadd.f32 %v661_v16, %v1658_v6  ;;  %v1078_v46 = vpop.f32.mrb[4].mxu1 }
 0x29c   : > { %v743_v47 = vadd.f32 %v1078_v46, %v479_v10  ;;  %v734_v48 = vpop.f32.mrb[5].mxu1 }
 0x29d   : > { %833 = vst [vmem:[%s1665_s14 + $0x18] sm:$0xff] %v1032_v44  ;;  %v1034_v49 = vpack.c.bf16 %v662_v45, %v660_v43  ;;  %v735_v50 = vadd.f32 %v734_v48, %v479_v10  ;;  %v1079_v51 = vpop.f32.mrb[6].mxu1 }
 0x29e   : > { %v1041_v52 = vpack.c.bf16 %v743_v47, %v743_v47  ;;  %v746_v23 = vadd.f32 %v1079_v51, %v479_v10  ;;  %v737_v53 = vpop.f32.mrb[7].mxu1 }
 0x29f   : > { %835 = vst [vmem:[%s1665_s14 + $0x24] sm:$0xff] %v1034_v49  ;;  %v1037_v17 = vpack.c.bf16 %v735_v50, %v735_v50  ;;  %v738_v54 = vadd.f32 %v737_v53, %v479_v10  ;;  %v665_v55 = vpop.f32.mrb[8].mxu0 }
 0x2a0   : > { %842 = vst [vmem:[%s1665_s14 + $0x50] sm:$0xf] %v1041_v52  ;;  %v1043_v56 = vpack.c.bf16 %v746_v23, %v746_v23  ;;  %v666_v57 = vadd.f32 %v665_v55, %v1656_v5  ;;  %v667_v24 = vpop.f32.mrb[9].mxu0 }
 0x2a1   : > { %838 = vst [vmem:[%s1665_s14 + $0x38] sm:$0xf] %v1037_v17  ;;  %v1039_v31 = vpack.c.bf16 %v738_v54, %v738_v54  ;;  %v668_v58 = vadd.f32 %v667_v24, %v1658_v6  ;;  %v669_v59 = vpop.f32.mrb[10].mxu0 }
 0x2a2   : > { %844 = vst [vmem:[%s1665_s14 + $0x5c] sm:$0xf] %v1043_v56  ;;  %v670_v60 = vadd.f32 %v669_v59, %v1656_v5  ;;  %v671_v61 = vpop.f32.mrb[11].mxu0 }
 0x2a3   : > { %840 = vst [vmem:[%s1665_s14 + $0x44] sm:$0xf] %v1039_v31  ;;  %v1036_v62 = vpack.c.bf16 %v668_v58, %v666_v57  ;;  %v672_v32 = vadd.f32 %v671_v61, %v1658_v6 }
 0x2a5   : > { %837 = vst [vmem:[%s1665_s14 + $0x30] sm:$0xff] %v1036_v62  ;;  %v1038_v0 = vpack.c.bf16 %v672_v32, %v670_v60 }
 0x2a7   : > { %839 = vst [vmem:[%s1665_s14 + $0x3c] sm:$0xff] %v1038_v0  ;;  %v675_v39 = vpop.f32.mrb[12].mxu0 }
 0x2a8   : > { %v676_v1 = vadd.f32 %v675_v39, %v1656_v5  ;;  %v677_v40 = vpop.f32.mrb[13].mxu0 }
 0x2a9   : > { %v678_v2 = vadd.f32 %v677_v40, %v1658_v6  ;;  %v679_v3 = vpop.f32.mrb[14].mxu0 }
 0x2aa   : > { %v680_v4 = vadd.f32 %v679_v3, %v1656_v5  ;;  %v681_v63 = vpop.f32.mrb[15].mxu0 }
 0x2ab   : > { %v1040_v7 = vpack.c.bf16 %v678_v2, %v676_v1  ;;  %v682_v8 = vadd.f32 %v681_v63, %v1658_v6 }
 0x2ad   : > { %841 = vst [vmem:[%s1665_s14 + $0x48] sm:$0xff] %v1040_v7  ;;  %v1042_v9 = vpack.c.bf16 %v682_v8, %v680_v4 }
 0x2af   : > { %843 = vst [vmem:[%s1665_s14 + $0x54] sm:$0xff] %v1042_v9 }
 0x2b0 PF: > { %s19_s25 = sadd.s32 1, %s1383_s25   ;;  %s1750_s21 = sld [smem:[#allocation9_spill]] }
 0x2b1   : > { %p16_p9 = scmp.ge.s32.totalorder %s19_s25, 6   ;;  %s1751_s16 = sld [smem:[#allocation10_spill]] }
 0x2b2   : > { %s1752_s18 = smov %s1359_s19  ;;  %s1753_s19 = smov %s1363_s20 }
 0x2b3   : > { %s1754_s20 = smov %s1562_s23  ;;  %s1755_s22 = smov %s1379_s24 }
 0x2b4   : > { %s1757_s24 = smov %s1763_s15  ;;  %18 = sbr.rel (!%p16_p9) target bundleno = 9 (0x9), region = 88 }
 0x2b7   : > { %s1756_s23 = smov %s1751_s16 }
 0x2bb   :  { %877 = vsyncpa [#allocation3], 1 }
 0x2bc   :  { %879 = vsyncpa [#allocation3 + $0x1], 1 }
 0x2bd   :  { %880 = vsyncpa [#allocation5], 1 }

// kernel: _forward_impl.5
= control target key start
LH: loop header
LB: loop body
LE: loop exit
PB: predicated region body
PF: predicated region fallthrough
CT: control target
= control target key end

     0   :  { %15 = vsyncpa [#allocation3], 0  ;;  %s3489_s0 = inlined_call_operand.vmem [shape: f32[2,128,128], index: 0, kind: input, shape index: {}]   ;;  %s3490_s1 = inlined_call_operand.vmem [shape: bf16[2,128,128], index: 1, kind: input, shape index: {}]   ;;  %s3491_s2 = inlined_call_operand.vmem [shape: bf16[128,128], index: 2, kind: input, shape index: {}]   ;;  %s3492_s3 = inlined_call_operand.vmem [shape: f32[1,128], index: 3, kind: input, shape index: {}]   ;;  %s3493_s4 = inlined_call_operand.vmem [shape: f32[1,128], index: 4, kind: input, shape index: {}]   ;;  %s3494_s5 = inlined_call_operand.vmem [shape: f32[1,128], index: 5, kind: input, shape index: {}]   ;;  %s3495_s6 = inlined_call_operand.vmem [shape: bf16[128,512], index: 6, kind: input, shape index: {}]   ;;  %s3496_s7 = inlined_call_operand.vmem [shape: f32[1,512], index: 7, kind: input, shape index: {}]   ;;  %s3497_s8 = inlined_call_operand.vmem [shape: bf16[512,128], index: 8, kind: input, shape index: {}]   ;;  %s3498_s9 = inlined_call_operand.vmem [shape: f32[1,128], index: 9, kind: input, shape index: {}]   ;;  %s3499_s10 = inlined_call_operand.hbm [shape: f32[2,128,128], index: 10, kind: output, shape index: {}]  }
   0x1   :  { %17 = vsyncpa [#allocation3 + $0x1], 0  ;;  %s2553_s13 = smov 0   ;;  %s2555_s14 = smov 0  }
   0x2   :  { %s2557_s15 = smov 0   ;;  %s2559_s16 = smov 0  }
   0x3   :  { %s2561_s17 = smov 0   ;;  %s2563_s18 = smov 0  }
   0x4   :  { %s2565_s19 = smov 0   ;;  %s2567_s20 = smov 0  }
   0x5 LB: > { %3529 = sst [smem:[#allocation5_spill]] %s2484_s18  ;;  %s1922_s21 = sadd.s32 4294967295, %s2492_s20   ;;  %s2492_s20 = sphi %s2567_s20, %s23_s20   ;;  %s2488_s19 = sphi %s2565_s19, %s3590_s19   ;;  %s2484_s18 = sphi %s2563_s18, %s3589_s18   ;;  %s2480_s17 = sphi %s2561_s17, %s3588_s17   ;;  %s2476_s16 = sphi %s2559_s16, %s3587_s16   ;;  %s2472_s15 = sphi %s2557_s15, %s3593_s15   ;;  %s2468_s14 = sphi %s2555_s14, %s3592_s14   ;;  %s2464_s13 = sphi %s2553_s13, %s3591_s13  }
   0x6   : > { %3530 = sst [smem:[#allocation6_spill]] %s2488_s19  ;;  %s1923_s22 = sadd.s32 4294967294, %s2492_s20  }
   0x7   : > { %s32_s23 = sadd.s32 1, %s2484_s18  ;;  %s35_s24 = sadd.s32 1, %s2488_s19 }
   0x8   : > { %p33_p0 = scmp.ge.s32.totalorder %s32_s23, 2  ;;  %p278_p1 = scmp.ne.s32.totalorder %s2472_s15, %s2468_s14 }
   0x9   : > { %p279_p2 = scmp.eq.s32.totalorder %s1922_s21, 3  ;;  %p284_p5 = scmp.ne.s32.totalorder %s2468_s14, %s2464_s13 }
   0xa   : > { %s3595_s23 = smov (%p33_p0, %s32_s23), 0  ;;  %s3597_s24 = smov (!%p33_p0, %s35_s24), %s2488_s19 }
   0xb   : > { %3531 = sst [smem:[#allocation7_spill]] %s3595_s23  ;;  %s264_s25 = ssub.s32 %s2484_s18, %s3595_s23 }
   0xc   : > { %p2604_p3 = por %p279_p2, %p278_p1  ;;  %p37_p4 = scmp.ge.s32.totalorder %s3597_s24, 2 }
   0xd   : > { %p285_p6 = scmp.eq.s32.totalorder %s1923_s22, 3  ;;  %p1926_p7 = scmp.ge.s32.totalorder %s2492_s20, 1 }
   0xe   : > { %s3599_s24 = smov (%p37_p4, %s3597_s24), 0  ;;  %p353_p9 = scmp.lt.s32.totalorder %s2492_s20, 5 }
   0xf   : > { %3533 = sst [smem:[#allocation8_spill]] %s3599_s24  ;;  %p2613_p8 = por %p285_p6, %p284_p5 }
  0x10   : > { %s263_s28 = ssub.s32 %s2488_s19, %s3599_s24  ;;  %s268_s29 = sadd.s32 1, %s2472_s15 }
  0x11   : > { %s265_s30 = sor.u32 %s264_s25, %s263_s28  ;;  %p354_p10 = pnand %p1926_p7, %p353_p9 }
  0x12   : > { %p266_p11 = scmp.eq.s32.totalorder %s265_s30, 0 }
  0x13   : > { %357 = sbr.rel (%p354_p10) target bundleno = 1148 (0x47c), region = 60 }
  0x14   : > { %s2622_s11 = scalar_select %p266_p11, %s2472_s15, %s268_s29  }
  0x16   : > { %3535 = sst [smem:[#allocation9_spill]] %s2622_s11 }
  0x1a   : > { %v2226_v0 = vld [vmem:[%s3491_s2] sm:$0xff]   ;;  %s2628_s22 = sshll.u32 %s2476_s16, 3  ;;  %v2227_v1 = vld [vmem:[%s3491_s2 + $0x8] sm:$0xff]   ;;  %p405_p12 = scmp.lt.s32.totalorder %s2480_s17, 1  ;;  %v2228_v2 = vld [vmem:[%s3491_s2 + $0x10] sm:$0xff]  }
  0x1b   : > { %2112 = vmatprep.subr.bf16.mxu0 %v2226_v0  ;;  %p407_p13 = scmp.lt.s32.totalorder %s2628_s22, 15  ;;  %v2229_v3 = vld [vmem:[%s3491_s2 + $0x18] sm:$0xff]   ;;  %v2230_v5 = vld [vmem:[%s3491_s2 + $0x20] sm:$0xff]   ;;  %v2231_v6 = vld [vmem:[%s3491_s2 + $0x28] sm:$0xff]   ;;  %s401_s19 = sand.u32 1, %s2468_s14  }
  0x1c   : > { %2113 = vmatpush3.bf16.msra.mxu0 %v2226_v0  ;;  %s406_s25 = scalar_select %p405_p12, %s2480_s17, 1  ;;  %v2232_v7 = vld [vmem:[%s3491_s2 + $0x30] sm:$0xff]   ;;  %v2233_v8 = vld [vmem:[%s3491_s2 + $0x38] sm:$0xff]   ;;  %v1934_v12 = vld [vmem:[%s3492_s3] ss:$0 sm:$0xff] }
  0x1d   : > { %2114 = vmatprep.subr.bf16.mxu0 %v2227_v1  ;;  %s408_s30 = scalar_select %p407_p13, %s2628_s22, 15  ;;  %v2238_v45 = vld [vmem:[%s3495_s6 + $0x4] ss:$16 sps:$4 sm:$0xff]   ;;  %v2240_v46 = vld [vmem:[%s3495_s6 + $0x8] ss:$16 sps:$4 sm:$0xff]  }
  0x1e   : > { %s1929_s12 = sshll.u32 %s406_s25, 4  ;;  %v2242_v47 = vld [vmem:[%s3495_s6 + $0xc] ss:$16 sps:$4 sm:$0xff]   ;;  %v2243_v48 = vld [vmem:[%s3495_s6] ss:$16 sps:$4 sm:$0xff]   ;;  %947 = vmatprep.subr.bf16.mxu1 %v2238_v45  ;;  %s1927_s24 = sshll.u32 %s401_s19, 6 }
  0x1f   : > { %s2640_s16 = sadd.s32 %s1929_s12, %s408_s30  ;;  %v2244_v49 = vld [vmem:[%s3495_s6 + $0x24] ss:$16 sps:$4 sm:$0xff]   ;;  %v2248_v50 = vld [vmem:[%s3495_s6 + $0x2c] ss:$16 sps:$4 sm:$0xff]   ;;  %948 = vmatpush1.bf16.msra.mxu1 %v2243_v48  ;;  %v2246_v51 = vld [vmem:[%s3495_s6 + $0x28] ss:$16 sps:$4 sm:$0xff]  }
  0x20   : > { %2115 = vmatpush3.bf16.msra.mxu0 %v2227_v1  ;;  %s1933_s21 = sshll.u32 %s2640_s16, 2  ;;  %s1930_s23 = sshll.u32 %s2640_s16, 3  ;;  %949 = vmatprep.subr.bf16.mxu1 %v2244_v49  ;;  %v2274_v45 = vld [vmem:[%s3495_s6 + $0xc4] ss:$16 sps:$4 sm:$0xff]   ;;  %v2279_v48 = vld [vmem:[%s3495_s6 + $0xc0] ss:$16 sps:$4 sm:$0xff]  }
  0x21   : > { %2116 = vmatprep.subr.bf16.mxu0 %v2228_v2  ;;  %s422_s11 = scalar_lea.vmem %s3490_s1, %s1933_s21  ;;  %s2665_s29 = scalar_lea.vmem %s3489_s0, %s1930_s23  ;;  %v2280_v49 = vld [vmem:[%s3495_s6 + $0xe4] ss:$16 sps:$4 sm:$0xff]  }
  0x22   : > { %v2234_v4 = vld [vmem:[%s422_s11] sm:$0xff]   ;;  %v2235_v9 = vld [vmem:[%s422_s11 + $0x8] sm:$0xff]   ;;  %v2236_v10 = vld [vmem:[%s422_s11 + $0x10] sm:$0xff]   ;;  %s3402_s23 = scalar_lea.vmem [#allocation2], %s1927_s24  ;;  %s2016_s21 = sshll.u32 %s2480_s17, 4 }
  0x23   : > { %2128 = vmatprep.mubr.bf16.mxu0 %v2234_v4  ;;  %v2237_v11 = vld [vmem:[%s422_s11 + $0x18] sm:$0xff]   ;;  %v428_v13 = vld [vmem:[%s2665_s29 + $0x10] sm:$0xff]  ;;  %v426_v16 = vld [vmem:[%s2665_s29] sm:$0xff]  ;;  %s1819_s28 = sadd.s32 %s2016_s21, %s2628_s22  ;;  %s1822_s17 = sshll.u32 %s3402_s23, 4  ;;  %s3432_s17 = int_to_ptr.vmem [resolvable:$true] %s1822_s17 }
  0x24   : > { %2117 = vmatpush3.bf16.msra.mxu0 %v2228_v2  ;;  %v429_v19 = vld [vmem:[%s2665_s29 + $0x18] sm:$0xff]  ;;  %v427_v23 = vld [vmem:[%s2665_s29 + $0x8] sm:$0xff]  ;;  %v432_v29 = vld [vmem:[%s2665_s29 + $0x30] sm:$0xff]  ;;  %s3437_s11 = scalar_lea.sflag [#allocation3], %s401_s19  ;;  %s2398_s16 = scalar_lea.vmem %s3432_s17, 1024 }
  0x25   : > { %2118 = vmatprep.subr.bf16.mxu0 %v2229_v3  ;;  %v430_v32 = vld [vmem:[%s2665_s29 + $0x20] sm:$0xff]  ;;  %v433_v35 = vld [vmem:[%s2665_s29 + $0x38] sm:$0xff]  ;;  %v431_v39 = vld [vmem:[%s2665_s29 + $0x28] sm:$0xff]  ;;  %s2017_s29 = sshll.u32 %s1819_s28, 7  ;;  %p2399_p0 = scmp.ne.s32.totalorder %s3432_s17, %s2398_s16 }
  0x26   : > { %s3427_s30 = scalar_lea.hbm %s3499_s10, %s2017_s29  ;;  %s2495_s12 = smov [#allocation2]  }
  0x27   : > { %p2400_p1 = pnand %p2399_p0, %p2604_p3  ;;  %s2402_s18 = sshll.u32 %s2495_s12, 4  ;;  %s2403_s18 = int_to_ptr.vmem [resolvable:$false] %s2402_s18 }
  0x28   : > { %2119 = vmatpush3.bf16.msra.mxu0 %v2229_v3  ;;  %s2404_s24 = scalar_lea.vmem %s2403_s18, 2048  ;;  %p2405_p4 = scmp.lt.s32.totalorder %s3432_s17, %s2403_s18 }
  0x29   : > { %2120 = vmatprep.subr.bf16.mxu0 %v2230_v5  ;;  %p2401_p2 = pneg %p2400_p1  ;;  %p2406_p5 = scmp.lt.s32.totalorder %s2404_s24, %s2398_s16 }
  0x2b   : > { %p2407_p6 = por %p2406_p5, %p2405_p4 }
  0x2c   : > { %2121 = vmatpush3.bf16.msra.mxu0 %v2230_v5 }
  0x2d   : > { %2122 = vmatprep.subr.bf16.mxu0 %v2231_v6  ;;  %p2408_p7 = pnand %p2407_p6, %p2401_p2 }
  0x30   : > { %2123 = vmatpush3.bf16.msra.mxu0 %v2231_v6 }
  0x31   : > { %2124 = vmatprep.subr.bf16.mxu0 %v2232_v7 }
  0x34   : > { %2125 = vmatpush3.bf16.msra.mxu0 %v2232_v7 }
  0x35   : > { %2126 = vmatprep.subr.bf16.mxu0 %v2233_v8 }
  0x38   : > { %2127 = vmatpush3.bf16.msra.mxu0 %v2233_v8 }
  0x39   : > { %1020 = vmatprep.subr.bf16.mxu0 %v2242_v47  ;;  %v2276_v47 = vld [vmem:[%s3495_s6 + $0xc8] ss:$16 sps:$4 sm:$0xff]  }
  0x3b   : > { %2129 = vmatmul.mubr.bf16.vlgmr.msra.gmra.mrb[0].mxu0 %v2235_v9 }
  0x3c   : > { %2132 = vmatprep.mubr.bf16.mxu0 %v2236_v10  ;;  %1021 = vmatpush1.bf16.msra.mxu0 %v2240_v46  ;;  %v2278_v46 = vld [vmem:[%s3495_s6 + $0xcc] ss:$16 sps:$4 sm:$0xff]  }
  0x3d   : > { %1022 = vmatprep.subr.bf16.mxu0 %v2248_v50  ;;  %v2284_v50 = vld [vmem:[%s3495_s6 + $0xec] ss:$16 sps:$4 sm:$0xff]  }
  0x40   : > { %1023 = vmatpush1.bf16.msra.mxu0 %v2246_v51  ;;  %v2282_v51 = vld [vmem:[%s3495_s6 + $0xe8] ss:$16 sps:$4 sm:$0xff]  }
  0x43   : > { %2133 = vmatmul.mubr.bf16.gmra.mrb[4].mxu0 %v2237_v11 }
 0x10e   : > { %v2130_v14 = vpop.f32.mrb[0].mxu0 }
 0x10f   : > { %v580_v15 = vadd.f32 %v2130_v14, %v1934_v12  ;;  %v571_v17 = vpop.f32.mrb[1].mxu0 }
 0x110   : > { %v572_v18 = vadd.f32 %v1934_v12, %v571_v17  ;;  %v2131_v20 = vpop.f32.mrb[2].mxu0 }
 0x111   : > { %v2673_v21 = vadd.f32 %v580_v15, %v428_v13  ;;  %v583_v22 = vadd.f32 %v2131_v20, %v1934_v12  ;;  %v574_v24 = vpop.f32.mrb[3].mxu0 }
 0x112   : > { %v2676_v25 = vadd.f32 %v572_v18, %v426_v16  ;;  %v575_v26 = vadd.f32 %v1934_v12, %v574_v24  ;;  %v2252_v24 = vld [vmem:[%s3495_s6 + $0x48] ss:$16 sps:$4 sm:$0xff]  }
 0x113   : > { %3536 = vst [vmem:[#allocation10_spill] sm:$0xff] %v2673_v21  ;;  %v2678_v27 = vadd.f32 %v583_v22, %v429_v19  ;;  %616 = vadd.xlane.f32.xlu1 %v2673_v21  ;;  %v2249_v19 = vld [vmem:[%s3495_s6 + $0x20] ss:$16 sps:$4 sm:$0xff]   ;;  %v2250_v22 = vld [vmem:[%s3495_s6 + $0x44] ss:$16 sps:$4 sm:$0xff]  }
 0x114   : > { %3537 = vst [vmem:[#allocation11_spill] sm:$0xff] %v2676_v25  ;;  %v2681_v28 = vadd.f32 %v575_v26, %v427_v23  ;;  %612 = vadd.xlane.f32.xlu0 %v2676_v25  ;;  %950 = vmatpush1.bf16.msra.mxu1 %v2249_v19  ;;  %v2254_v23 = vld [vmem:[%s3495_s6 + $0x4c] ss:$16 sps:$4 sm:$0xff]   ;;  %v2255_v26 = vld [vmem:[%s3495_s6 + $0x40] ss:$16 sps:$4 sm:$0xff]  }
 0x115   : > { %3538 = vst [vmem:[#allocation12_spill] sm:$0xff] %v2678_v27  ;;  %951 = vmatprep.subr.bf16.mxu1 %v2250_v22  ;;  %1024 = vmatprep.subr.bf16.mxu0 %v2254_v23  ;;  %v1947_v22 = vld [vmem:[%s3493_s4] ss:$0 sm:$0xff] }
 0x116   : > { %3539 = vst [vmem:[#allocation13_spill] sm:$0xff] %v2681_v28  ;;  %v2134_v30 = vpop.f32.mrb[4].mxu0  ;;  %1025 = vmatpush1.bf16.msra.mxu0 %v2252_v24 }
 0x117   : > { %v596_v31 = vadd.f32 %v2134_v30, %v1934_v12  ;;  %v587_v33 = vpop.f32.mrb[5].mxu0  ;;  %618 = vadd.xlane.f32.xlu1 %v2678_v27  ;;  %v2260_v30 = vld [vmem:[%s3495_s6 + $0x6c] ss:$16 sps:$4 sm:$0xff]  }
 0x118   : > { %v588_v34 = vadd.f32 %v1934_v12, %v587_v33  ;;  %v2135_v36 = vpop.f32.mrb[6].mxu0  ;;  %614 = vadd.xlane.f32.xlu0 %v2681_v28  ;;  %952 = vmatpush1.bf16.msra.mxu1 %v2255_v26  ;;  %v2262_v33 = vld [vmem:[%s3495_s6 + $0x84] ss:$16 sps:$4 sm:$0xff]  }
 0x119   : > { %v2689_v37 = vadd.f32 %v596_v31, %v432_v29  ;;  %v599_v38 = vadd.f32 %v2135_v36, %v1934_v12  ;;  %v590_v40 = vpop.f32.mrb[7].mxu0  ;;  %v2256_v29 = vld [vmem:[%s3495_s6 + $0x64] ss:$16 sps:$4 sm:$0xff]   ;;  %v2258_v31 = vld [vmem:[%s3495_s6 + $0x68] ss:$16 sps:$4 sm:$0xff]   ;;  %1026 = vmatprep.subr.bf16.mxu0 %v2260_v30 }
 0x11a   : > { %v2692_v41 = vadd.f32 %v588_v34, %v430_v32  ;;  %v591_v42 = vadd.f32 %v1934_v12, %v590_v40  ;;  %v2261_v32 = vld [vmem:[%s3495_s6 + $0x60] ss:$16 sps:$4 sm:$0xff]   ;;  %953 = vmatprep.subr.bf16.mxu1 %v2256_v29  ;;  %1027 = vmatpush1.bf16.msra.mxu0 %v2258_v31  ;;  %v2266_v34 = vld [vmem:[%s3495_s6 + $0x8c] ss:$16 sps:$4 sm:$0xff]   ;;  %v2270_v40 = vld [vmem:[%s3495_s6 + $0xa8] ss:$16 sps:$4 sm:$0xff]  }
 0x11b   : > { %3540 = vst [vmem:[#allocation14_spill] sm:$0xff] %v2689_v37  ;;  %v2694_v43 = vadd.f32 %v599_v38, %v433_v35  ;;  %v2264_v35 = vld [vmem:[%s3495_s6 + $0x88] ss:$16 sps:$4 sm:$0xff]   ;;  %v2267_v36 = vld [vmem:[%s3495_s6 + $0x80] ss:$16 sps:$4 sm:$0xff]   ;;  %1028 = vmatprep.subr.bf16.mxu0 %v2266_v34 }
 0x11c   : > { %3541 = vst [vmem:[#allocation15_spill] sm:$0xff] %v2692_v41  ;;  %v2696_v44 = vadd.f32 %v591_v42, %v431_v39  ;;  %620 = vadd.xlane.f32.xlu0 %v2692_v41  ;;  %954 = vmatpush1.bf16.msra.mxu1 %v2261_v32  ;;  %v2268_v38 = vld [vmem:[%s3495_s6 + $0xa4] ss:$16 sps:$4 sm:$0xff]   ;;  %v2272_v39 = vld [vmem:[%s3495_s6 + $0xac] ss:$16 sps:$4 sm:$0xff]  }
 0x11d   : > { %3542 = vst [vmem:[#allocation16_spill] sm:$0xff] %v2694_v43  ;;  %955 = vmatprep.subr.bf16.mxu1 %v2262_v33  ;;  %v2273_v42 = vld [vmem:[%s3495_s6 + $0xa0] ss:$16 sps:$4 sm:$0xff]  }
 0x11e   : > { %3543 = vst [vmem:[#allocation17_spill] sm:$0xff] %v2696_v44  ;;  %622 = vadd.xlane.f32.xlu1 %v2696_v44  ;;  %1029 = vmatpush1.bf16.msra.mxu0 %v2264_v35  ;;  %v1948_v32 = vld [vmem:[%s3494_s5] ss:$0 sm:$0xff] }
 0x11f   : > { %1030 = vmatprep.subr.bf16.mxu0 %v2272_v39 }
 0x120   : > { %624 = vadd.xlane.f32.xlu0 %v2689_v37  ;;  %956 = vmatpush1.bf16.msra.mxu1 %v2267_v36 }
 0x121   : > { %957 = vmatprep.subr.bf16.mxu1 %v2268_v38 }
 0x122   : > { %626 = vadd.xlane.f32.xlu1 %v2694_v43  ;;  %1031 = vmatpush1.bf16.msra.mxu0 %v2270_v40 }
 0x123   : > { %1032 = vmatprep.subr.bf16.mxu0 %v2278_v46 }
 0x124   : > { %958 = vmatpush1.bf16.msra.mxu1 %v2273_v42 }
 0x125   : > { %959 = vmatprep.subr.bf16.mxu1 %v2274_v45 }
 0x126   : > { %1033 = vmatpush1.bf16.msra.mxu0 %v2276_v47 }
 0x127   : > { %1034 = vmatprep.subr.bf16.mxu0 %v2284_v50 }
 0x128   : > { %960 = vmatpush1.bf16.msra.mxu1 %v2279_v48 }
 0x129   : > { %961 = vmatprep.subr.bf16.mxu1 %v2280_v49 }
 0x12a   : > { %1035 = vmatpush1.bf16.msra.mxu0 %v2282_v51 }
 0x1a0   : > { %v617_v52 = vpop.xlane.xlu1 %616 }
 0x1a1   : > { %v613_v53 = vpop.xlane.xlu0 %612  ;;  %v631_v54 = vmul.f32 0.0078125, %v617_v52  ;;  %v2285_v52 = vld [vmem:[%s3495_s6 + $0xe0] ss:$16 sps:$4 sm:$0xff]  }
 0x1a2   : > { %v629_v55 = vmul.f32 0.0078125, %v613_v53  ;;  %v2494_v53 = vmov 0   ;;  %962 = vmatpush1.bf16.msra.mxu1 %v2285_v52 }
 0x1a3   : > { %v2727_v59 = vsub.f32 %v2673_v21, %v631_v54  ;;  %979 = vmatprep.mubr.bf16.mxu1 %v2494_v53  ;;  %1052 = vmatprep.mubr.bf16.mxu0 %v2494_v53 }
 0x1a4   : > { %v2724_v56 = vsub.f32 %v2676_v25, %v629_v55  ;;  %v619_v57 = vpop.xlane.xlu1 %618 }
 0x1a5   : > { %v615_v58 = vpop.xlane.xlu0 %614  ;;  %v632_v60 = vmul.f32 0.0078125, %v619_v57  ;;  %v647_v3 = vmul.f32 %v2727_v59, %v2727_v59 }
 0x1a6   : > { %v630_v61 = vmul.f32 0.0078125, %v615_v58  ;;  %v645_v62 = vmul.f32 %v2724_v56, %v2724_v56 }
 0x1a7   : > { %v2735_v1 = vsub.f32 %v2678_v27, %v632_v60 }
 0x1a8   : > { %v2732_v63 = vsub.f32 %v2681_v28, %v630_v61  ;;  %653 = vadd.xlane.f32.xlu0 %v645_v62 }
 0x1a9   : > { %v621_v0 = vpop.xlane.xlu0 %620  ;;  %v648_v11 = vmul.f32 %v2735_v1, %v2735_v1 }
 0x1aa   : > { %v633_v2 = vmul.f32 0.0078125, %v621_v0  ;;  %v646_v4 = vmul.f32 %v2732_v63, %v2732_v63 }
 0x1ab   : > { %v623_v5 = vpop.xlane.xlu1 %622 }
 0x1ac   : > { %v2742_v6 = vsub.f32 %v2692_v41, %v633_v2  ;;  %v634_v7 = vmul.f32 0.0078125, %v623_v5  ;;  %657 = vadd.xlane.f32.xlu0 %v647_v3  ;;  %655 = vadd.xlane.f32.xlu1 %v646_v4 }
 0x1ad   : > { %v625_v8 = vpop.xlane.xlu0 %624 }
 0x1ae   : > { %v2745_v9 = vsub.f32 %v2696_v44, %v634_v7  ;;  %v635_v10 = vmul.f32 0.0078125, %v625_v8  ;;  %v649_v12 = vmul.f32 %v2742_v6, %v2742_v6 }
 0x1af   : > { %v627_v13 = vpop.xlane.xlu1 %626 }
 0x1b0   : > { %v2752_v14 = vsub.f32 %v2689_v37, %v635_v10  ;;  %v636_v15 = vmul.f32 0.0078125, %v627_v13  ;;  %659 = vadd.xlane.f32.xlu1 %v648_v11  ;;  %661 = vadd.xlane.f32.xlu0 %v649_v12  ;;  %v650_v17 = vmul.f32 %v2745_v9, %v2745_v9 }
 0x1b2   : > { %v2755_v16 = vsub.f32 %v2694_v43, %v636_v15  ;;  %v651_v18 = vmul.f32 %v2752_v14, %v2752_v14 }
 0x1b4   : > { %663 = vadd.xlane.f32.xlu1 %v650_v17  ;;  %665 = vadd.xlane.f32.xlu0 %v651_v18  ;;  %v652_v20 = vmul.f32 %v2755_v16, %v2755_v16 }
 0x1b8   : > { %667 = vadd.xlane.f32.xlu1 %v652_v20 }
 0x235   : > { %v654_v54 = vpop.xlane.xlu0 %653 }
 0x236   : > { %v669_v55 = vmul.f32 0.0078125, %v654_v54 }
 0x238   : > { %v677_v57 = vadd.f32 1e-05, %v669_v55 }
 0x239   : > { %v656_v58 = vpop.xlane.xlu1 %655  ;;  %v658_v60 = vpop.xlane.xlu0 %657 }
 0x23a   : > { %2318 = vrsqrt.f32 %v677_v57  ;;  %v670_v61 = vmul.f32 0.0078125, %v656_v58  ;;  %v671_v62 = vmul.f32 0.0078125, %v658_v60 }
 0x23c   : > { %v678_v0 = vadd.f32 1e-05, %v670_v61  ;;  %v679_v2 = vadd.f32 1e-05, %v671_v62 }
 0x23d   : > { %v660_v3 = vpop.xlane.xlu1 %659  ;;  %v662_v4 = vpop.xlane.xlu0 %661 }
 0x23e   : > { %2320 = vrsqrt.f32 %v678_v0  ;;  %v672_v5 = vmul.f32 0.0078125, %v660_v3  ;;  %v673_v8 = vmul.f32 0.0078125, %v662_v4  ;;  %v2287_v3 = vld [vmem:[%s3497_s8] sm:$0xff]   ;;  %v2290_v4 = vld [vmem:[%s3497_s8 + $0x48] sm:$0xff]  }
 0x23f   : > { %2322 = vrsqrt.f32 %v679_v2 }
 0x240   : > { %v680_v7 = vadd.f32 1e-05, %v672_v5  ;;  %v681_v13 = vadd.f32 1e-05, %v673_v8  ;;  %v2881_v5 = vld [vmem:[%s3497_s8 + $0xc8] sm:$0xff]  }
 0x241   : > { %v664_v10 = vpop.xlane.xlu1 %663  ;;  %v666_v17 = vpop.xlane.xlu0 %665  ;;  %v2889_v8 = vld [vmem:[%s3497_s8 + $0x88] sm:$0xff]  }
 0x242   : > { %2324 = vrsqrt.f32 %v680_v7  ;;  %v674_v11 = vmul.f32 0.0078125, %v664_v10  ;;  %v675_v24 = vmul.f32 0.0078125, %v666_v17  ;;  %v2291_v7 = vld [vmem:[%s3497_s8 + $0x8] sm:$0xff]   ;;  %3544 = vst [vmem:[#allocation18_spill] sm:$0xff] %v2889_v8  ;;  %v2294_v10 = vld [vmem:[%s3497_s8 + $0x50] sm:$0xff]   ;;  %v2917_v17 = vld [vmem:[%s3497_s8 + $0xd8] sm:$0xff]  }
 0x243   : > { %3547 = vst [vmem:[#allocation21_spill] sm:$0xff] %v2917_v17 }
 0x244   : > { %v2319_v12 = vpop.eup %2318  ;;  %v682_v15 = vadd.f32 1e-05, %v674_v11  ;;  %v683_v34 = vadd.f32 1e-05, %v675_v24  ;;  %v2899_v11 = vld [vmem:[%s3497_s8 + $0xd0] sm:$0xff]   ;;  %v2944_v24 = vld [vmem:[%s3497_s8 + $0xa0] sm:$0xff]  }
 0x245   : > { %v668_v18 = vpop.xlane.xlu1 %667  ;;  %v693_v19 = vmul.f32 %v2319_v12, %v2724_v56  ;;  %3545 = vst [vmem:[#allocation19_spill] sm:$0xff] %v2899_v11  ;;  %v2295_v12 = vld [vmem:[%s3497_s8 + $0x10] sm:$0xff]   ;;  %3550 = vst [vmem:[#allocation24_spill] sm:$0xff] %v2944_v24 }
 0x246   : > { %2326 = vrsqrt.f32 %v682_v15  ;;  %v676_v20 = vmul.f32 0.0078125, %v668_v18  ;;  %v2298_v15 = vld [vmem:[%s3497_s8 + $0x58] sm:$0xff]  }
 0x247   : > { %2328 = vrsqrt.f32 %v681_v13  ;;  %v707_v29 = vmul.f32 %v1947_v22, %v693_v19  ;;  %v2908_v13 = vld [vmem:[%s3497_s8 + $0x90] sm:$0xff]   ;;  %v2299_v18 = vld [vmem:[%s3497_s8 + $0x18] sm:$0xff]  }
 0x248   : > { %v2321_v23 = vpop.eup %2320  ;;  %v684_v31 = vadd.f32 1e-05, %v676_v20  ;;  %3546 = vst [vmem:[#allocation20_spill] sm:$0xff] %v2908_v13  ;;  %v2925_v19 = vld [vmem:[%s3497_s8 + $0x98] sm:$0xff]   ;;  %v2302_v20 = vld [vmem:[%s3497_s8 + $0x60] sm:$0xff]  }
 0x249   : > { %v694_v26 = vmul.f32 %v2321_v23, %v2732_v63  ;;  %v2323_v30 = vpop.eup %2322  ;;  %v721_v35 = vadd.f32 %v1948_v32, %v707_v29  ;;  %3548 = vst [vmem:[#allocation22_spill] sm:$0xff] %v2925_v19  ;;  %v2303_v23 = vld [vmem:[%s3497_s8 + $0x20] sm:$0xff]   ;;  %v2953_v29 = vld [vmem:[%s3497_s8 + $0xe8] sm:$0xff]  }
 0x24a   : > { %v695_v38 = vmul.f32 %v2323_v30, %v2727_v59  ;;  %2330 = vrsqrt.f32 %v684_v31  ;;  %3551 = vst [vmem:[#allocation25_spill] sm:$0xff] %v2953_v29  ;;  %v2307_v30 = vld [vmem:[%s3497_s8 + $0x28] sm:$0xff]  }
 0x24b   : > { %v708_v33 = vmul.f32 %v1947_v22, %v694_v26  ;;  %2332 = vrsqrt.f32 %v683_v34  ;;  %v2306_v26 = vld [vmem:[%s3497_s8 + $0x68] sm:$0xff]   ;;  %v2980_v34 = vld [vmem:[%s3497_s8 + $0xb0] sm:$0xff]  }
 0x24c   : > { %v2325_v56 = vpop.eup %2324  ;;  %v709_v45 = vmul.f32 %v1947_v22, %v695_v38  ;;  %v2961_v31 = vld [vmem:[%s3497_s8 + $0xa8] sm:$0xff]   ;;  %3554 = vst [vmem:[#allocation28_spill] sm:$0xff] %v2980_v34  ;;  %v2315_v38 = vld [vmem:[%s3497_s8 + $0x38] sm:$0xff]  }
 0x24d   : > { %v722_v36 = vadd.f32 %v1948_v32, %v708_v33  ;;  %v696_v39 = vmul.f32 %v2325_v56, %v2735_v1  ;;  %3552 = vst [vmem:[#allocation26_spill] sm:$0xff] %v2961_v31  ;;  %v2971_v33 = vld [vmem:[%s3497_s8 + $0xf0] sm:$0xff]  }
 0x24e   : > { %v723_v49 = vadd.f32 %v1948_v32, %v709_v45  ;;  %3553 = vst [vmem:[#allocation27_spill] sm:$0xff] %v2971_v33  ;;  %v2311_v56 = vld [vmem:[%s3497_s8 + $0x30] sm:$0xff]  }
 0x24f   : > { %v729_v40 = vpack.c.bf16 %v722_v36, %v721_v35  ;;  %v710_v42 = vmul.f32 %v1947_v22, %v696_v39  ;;  %v2314_v35 = vld [vmem:[%s3497_s8 + $0x78] sm:$0xff]  }
 0x250   : > { %v2327_v63 = vpop.eup %2326  ;;  %v2989_v36 = vld [vmem:[%s3497_s8 + $0xf8] sm:$0xff]  }
 0x251   : > { %980 = vmatmul.mubr.bf16.vlgmr.msra.gmra.mrb[0].mxu1 %v729_v40  ;;  %1053 = vmatmul.mubr.bf16.vlgmr.msra.gmra.mrb[8].mxu0 %v729_v40  ;;  %v2329_v46 = vpop.eup %2328  ;;  %v724_v47 = vadd.f32 %v1948_v32, %v710_v42  ;;  %v698_v48 = vmul.f32 %v2327_v63, %v2745_v9  ;;  %3555 = vst [vmem:[#allocation29_spill] sm:$0xff] %v2989_v36  ;;  %v2997_v39 = vld [vmem:[%s3497_s8 + $0xb8] sm:$0xff]   ;;  %v767_v40 = vlaneseq }
 0x252   : > { %989 = vmatprep.mubr.bf16.mxu1 %v2494_v53  ;;  %1062 = vmatprep.mubr.bf16.mxu0 %v2494_v53  ;;  %v697_v59 = vmul.f32 %v2329_v46, %v2742_v6  ;;  %3556 = vst [vmem:[#allocation30_spill] sm:$0xff] %v2997_v39  ;;  %v765_v46 = vld [vmem:[%s3496_s7] sm:$0xf] }
 0x253   : > { %v730_v1 = vpack.c.bf16 %v724_v47, %v723_v49  ;;  %v712_v50 = vmul.f32 %v1947_v22, %v698_v48  ;;  %v768_v42 = vshrl.u32 %v767_v40, 7 }
 0x254   : > { %v2331_v51 = vpop.eup %2330  ;;  %v711_v52 = vmul.f32 %v1947_v22, %v697_v59 }
 0x255   : > { %v2333_v54 = vpop.eup %2332  ;;  %v726_v55 = vadd.f32 %v1948_v32, %v712_v50  ;;  %v700_v57 = vmul.f32 %v2331_v51, %v2755_v16  ;;  %v2286_v16 = vld [vmem:[%s3497_s8 + $0x40] sm:$0xff]   ;;  %v769_v63 = vsub.s32 0, %v768_v42  ;;  %v777_v45 = vsub.s32 2, %v768_v42 }
 0x256   : > { %v725_v58 = vadd.f32 %v1948_v32, %v711_v52  ;;  %v699_v9 = vmul.f32 %v2333_v54, %v2752_v14  ;;  %v2288_v14 = vld [vmem:[%s3497_s8 + $0xc0] sm:$0xff]   ;;  %2032 = vmatprep.subr.bf16.mxu1 %v2286_v16  ;;  %v773_v47 = vsub.s32 1, %v768_v42  ;;  %v781_v48 = vsub.s32 3, %v768_v42 }
 0x257   : > { %v714_v61 = vmul.f32 %v1947_v22, %v700_v57  ;;  %2072 = vmatprep.subr.bf16.mxu0 %v2288_v14  ;;  %2033 = vmatpush3.bf16.msra.mxu1 %v2287_v3  ;;  %v3004_v49 = vrot.slane %v765_v46, %v769_v63  ;;  %v3006_v59 = vrot.slane %v765_v46, %v777_v45 }
 0x258   : > { %v731_v60 = vpack.c.bf16 %v726_v55, %v725_v58  ;;  %v713_v6 = vmul.f32 %v1947_v22, %v699_v9  ;;  %2034 = vmatprep.subr.bf16.mxu1 %v2290_v4  ;;  %v2935_v22 = vld [vmem:[%s3497_s8 + $0xe0] sm:$0xff]   ;;  %v3010_v50 = vrot.slane %v765_v46, %v781_v48 }
 0x259   : > { %990 = vmatmul.mubr.bf16.gmra.mrb[4].mxu1 %v730_v1  ;;  %1063 = vmatmul.mubr.bf16.gmra.mrb[12].mxu0 %v730_v1  ;;  %v728_v62 = vadd.f32 %v1948_v32, %v714_v61  ;;  %3549 = vst [vmem:[#allocation23_spill] sm:$0xff] %v2935_v22  ;;  %v3008_v1 = vrot.slane %v765_v46, %v773_v47 }
 0x25a   : > { %999 = vmatprep.mubr.bf16.mxu1 %v2494_v53  ;;  %1072 = vmatprep.mubr.bf16.mxu0 %v2494_v53  ;;  %v727_v0 = vadd.f32 %v1948_v32, %v713_v6  ;;  %v2310_v32 = vld [vmem:[%s3497_s8 + $0x70] sm:$0xff]  }
 0x25b   : > { %2035 = vmatpush3.bf16.msra.mxu1 %v2291_v7 }
 0x25c   : > { %v732_v2 = vpack.c.bf16 %v728_v62, %v727_v0  ;;  %2036 = vmatprep.subr.bf16.mxu1 %v2294_v10 }
 0x25f   : > { %2037 = vmatpush3.bf16.msra.mxu1 %v2295_v12 }
 0x260   : > { %2038 = vmatprep.subr.bf16.mxu1 %v2298_v15 }
 0x261   : > { %1000 = vmatmul.mubr.bf16.gmra.mrb[8].mxu1 %v731_v60  ;;  %1073 = vmatmul.mubr.bf16.gmra.mrb[16].mxu0 %v731_v60 }
 0x262   : > { %1009 = vmatprep.mubr.bf16.mxu1 %v2494_v53  ;;  %1082 = vmatprep.mubr.bf16.mxu0 %v2494_v53  ;;  %v2872_v53 = vld [vmem:[%s3497_s8 + $0x80] sm:$0xff]  }
 0x263   : > { %2073 = vmatpush3.bf16.msra.mxu0 %v2872_v53  ;;  %2039 = vmatpush3.bf16.msra.mxu1 %v2299_v18 }
 0x264   : > { %2074 = vmatprep.subr.bf16.mxu0 %v2881_v5  ;;  %2040 = vmatprep.subr.bf16.mxu1 %v2302_v20 }
 0x267   : > { %2075 = vmatpush3.bf16.msra.mxu0 %v2889_v8  ;;  %2041 = vmatpush3.bf16.msra.mxu1 %v2303_v23 }
 0x268   : > { %2076 = vmatprep.subr.bf16.mxu0 %v2899_v11  ;;  %2042 = vmatprep.subr.bf16.mxu1 %v2306_v26 }
 0x269   : > { %1010 = vmatmul.mubr.bf16.gmra.mrb[12].mxu1 %v732_v2  ;;  %1083 = vmatmul.mubr.bf16.gmra.mrb[20].mxu0 %v732_v2 }
 0x26b   : > { %2077 = vmatpush3.bf16.msra.mxu0 %v2908_v13  ;;  %2043 = vmatpush3.bf16.msra.mxu1 %v2307_v30 }
 0x26c   : > { %2078 = vmatprep.subr.bf16.mxu0 %v2917_v17  ;;  %2044 = vmatprep.subr.bf16.mxu1 %v2310_v32 }
 0x26f   : > { %2079 = vmatpush3.bf16.msra.mxu0 %v2925_v19  ;;  %2045 = vmatpush3.bf16.msra.mxu1 %v2311_v56 }
 0x270   : > { %2080 = vmatprep.subr.bf16.mxu0 %v2935_v22  ;;  %2046 = vmatprep.subr.bf16.mxu1 %v2314_v35 }
 0x273   : > { %2081 = vmatpush3.bf16.msra.mxu0 %v2944_v24  ;;  %2047 = vmatpush3.bf16.msra.mxu1 %v2315_v38 }
 0x274   : > { %2082 = vmatprep.subr.bf16.mxu0 %v2953_v29  ;;  %2136 = vmatprep.subr.bf16.mxu1 %v2288_v14 }
 0x277   : > { %2083 = vmatpush3.bf16.msra.mxu0 %v2961_v31 }
 0x278   : > { %2084 = vmatprep.subr.bf16.mxu0 %v2971_v33 }
 0x27b   : > { %2085 = vmatpush3.bf16.msra.mxu0 %v2980_v34 }
 0x27c   : > { %2086 = vmatprep.subr.bf16.mxu0 %v2989_v36 }
 0x27f   : > { %2087 = vmatpush3.bf16.msra.mxu0 %v2997_v39 }
 0x324   : > { %v981_v51 = vpop.f32.mrb[0].mxu1  ;;  %v1054_v52 = vpop.f32.mrb[8].mxu0 }
 0x325   : > { %v982_v54 = vadd.f32 %v981_v51, %v3004_v49  ;;  %v1055_v55 = vadd.f32 %v1054_v52, %v3006_v59  ;;  %v983_v57 = vpop.f32.mrb[1].mxu1  ;;  %v1056_v58 = vpop.f32.mrb[9].mxu0 }
 0x326   : > { %v3015_v9 = vadd.f32 %v983_v57, %v3008_v1  ;;  %v3018_v60 = vadd.f32 %v1056_v58, %v3010_v50  ;;  %v985_v61 = vpop.f32.mrb[2].mxu1  ;;  %v1058_v6 = vpop.f32.mrb[10].mxu0 }
 0x327   : > { %v3020_v62 = vmul.f32 0.5, %v982_v54  ;;  %v1125_v0 = vmul.f32 %v982_v54, %v982_v54  ;;  %v3022_v2 = vmul.f32 0.5, %v1055_v55  ;;  %v1127_v16 = vmul.f32 %v1055_v55, %v1055_v55  ;;  %v987_v14 = vpop.f32.mrb[3].mxu1  ;;  %v1060_v3 = vpop.f32.mrb[11].mxu0 }
 0x328   : > { %v1126_v4 = vmul.f32 %v3015_v9, %v3015_v9  ;;  %v1128_v7 = vmul.f32 %v3018_v60, %v3018_v60  ;;  %v986_v10 = vadd.f32 %v985_v61, %v3004_v49  ;;  %v1059_v12 = vadd.f32 %v1058_v6, %v3006_v59 }
 0x329   : > { %v1157_v15 = vmul.f32 0.044715, %v1125_v0  ;;  %v1159_v18 = vmul.f32 0.044715, %v1127_v16  ;;  %v3031_v20 = vadd.f32 %v987_v14, %v3008_v1  ;;  %v3034_v23 = vadd.f32 %v1060_v3, %v3010_v50 }
 0x32a   : > { %v1158_v26 = vmul.f32 0.044715, %v1126_v4  ;;  %v1160_v30 = vmul.f32 0.044715, %v1128_v7  ;;  %v3036_v32 = vmul.f32 0.5, %v986_v10  ;;  %v1129_v56 = vmul.f32 %v986_v10, %v986_v10 }
 0x32b   : > { %v1189_v35 = vmul.f32 %v1157_v15, %v982_v54  ;;  %v1191_v38 = vmul.f32 %v1159_v18, %v1055_v55  ;;  %v3038_v40 = vmul.f32 0.5, %v1059_v12  ;;  %v1131_v42 = vmul.f32 %v1059_v12, %v1059_v12 }
 0x32c   : > { %v1190_v63 = vmul.f32 %v1158_v26, %v3015_v9  ;;  %v1192_v45 = vmul.f32 %v1160_v30, %v3018_v60  ;;  %v1161_v46 = vmul.f32 0.044715, %v1129_v56  ;;  %v1130_v47 = vmul.f32 %v3031_v20, %v3031_v20  ;;  %v991_v48 = vpop.f32.mrb[4].mxu1  ;;  %v1064_v51 = vpop.f32.mrb[12].mxu0 }
 0x32d   : > { %v1221_v52 = vadd.f32 %v1189_v35, %v982_v54  ;;  %v1223_v57 = vadd.f32 %v1191_v38, %v1055_v55  ;;  %v1163_v58 = vmul.f32 0.044715, %v1131_v42  ;;  %v1132_v61 = vmul.f32 %v3034_v23, %v3034_v23  ;;  %v993_v6 = vpop.f32.mrb[5].mxu1  ;;  %v1066_v0 = vpop.f32.mrb[13].mxu0 }
 0x32e   : > { %v1222_v16 = vadd.f32 %v1190_v63, %v3015_v9  ;;  %v1224_v14 = vadd.f32 %v1192_v45, %v3018_v60  ;;  %v1193_v3 = vmul.f32 %v1161_v46, %v986_v10  ;;  %v1162_v4 = vmul.f32 0.044715, %v1130_v47  ;;  %v995_v7 = vpop.f32.mrb[6].mxu1  ;;  %v1068_v15 = vpop.f32.mrb[14].mxu0 }
 0x32f   : > { %v1253_v18 = vmul.f32 0.7978846, %v1221_v52  ;;  %v1255_v26 = vmul.f32 0.7978846, %v1223_v57  ;;  %v1195_v30 = vmul.f32 %v1163_v58, %v1059_v12  ;;  %v1164_v56 = vmul.f32 0.044715, %v1132_v61 }
 0x330   : > { %v1254_v54 = vmul.f32 0.7978846, %v1222_v16  ;;  %v1256_v55 = vmul.f32 0.7978846, %v1224_v14  ;;  %v1225_v35 = vadd.f32 %v1193_v3, %v986_v10  ;;  %v1194_v38 = vmul.f32 %v1162_v4, %v3031_v20  ;;  %v997_v42 = vpop.f32.mrb[7].mxu1  ;;  %v1070_v43 = vpop.f32.mrb[15].mxu0 }
 0x331   : > { %2334 = vtanh.f32 %v1253_v18  ;;  %v1227_v37 = vadd.f32 %v1195_v30, %v1059_v12  ;;  %v1196_v63 = vmul.f32 %v1164_v56, %v3034_v23  ;;  %v3051_v45 = vadd.f32 %v991_v48, %v3004_v49 }
 0x332   : > { %2336 = vtanh.f32 %v1255_v26  ;;  %v1257_v46 = vmul.f32 0.7978846, %v1225_v35  ;;  %v1226_v47 = vadd.f32 %v1194_v38, %v3031_v20  ;;  %v3055_v52 = vadd.f32 %v1064_v51, %v3006_v59 }
 0x333   : > { %2338 = vtanh.f32 %v1254_v54  ;;  %v1259_v10 = vmul.f32 0.7978846, %v1227_v37  ;;  %v1228_v57 = vadd.f32 %v1196_v63, %v3034_v23  ;;  %v1133_v58 = vmul.f32 %v3051_v45, %v3051_v45 }
 0x334   : > { %2340 = vtanh.f32 %v1256_v55  ;;  %v1258_v12 = vmul.f32 0.7978846, %v1226_v47  ;;  %v1135_v48 = vmul.f32 %v3055_v52, %v3055_v52  ;;  %v3063_v61 = vadd.f32 %v993_v6, %v3008_v1  ;;  %v3065_v16 = vpop.f32.mrb[8].mxu1  ;;  %v3067_v14 = vpop.f32.mrb[16].mxu0 }
 0x335   : > { %2342 = vtanh.f32 %v1257_v46  ;;  %v1260_v51 = vmul.f32 0.7978846, %v1228_v57  ;;  %v1165_v37 = vmul.f32 0.044715, %v1133_v58  ;;  %v3070_v3 = vadd.f32 %v1066_v0, %v3010_v50  ;;  %v3072_v4 = vpop.f32.mrb[9].mxu1  ;;  %v3074_v18 = vpop.f32.mrb[17].mxu0 }
 0x336   : > { %2344 = vtanh.f32 %v1259_v10  ;;  %v1167_v26 = vmul.f32 0.044715, %v1135_v48  ;;  %v1134_v6 = vmul.f32 %v3063_v61, %v3063_v61  ;;  %v3079_v30 = vadd.f32 %v995_v7, %v3004_v49  ;;  %v3081_v56 = vpop.f32.mrb[10].mxu1  ;;  %v3083_v54 = vpop.f32.mrb[18].mxu0 }
 0x337   : > { %2346 = vtanh.f32 %v1258_v12  ;;  %v1197_v0 = vmul.f32 %v1165_v37, %v3051_v45  ;;  %v1136_v55 = vmul.f32 %v3070_v3, %v3070_v3  ;;  %v3089_v35 = vadd.f32 %v1068_v15, %v3006_v59  ;;  %v3091_v38 = vpop.f32.mrb[11].mxu1  ;;  %v3093_v63 = vpop.f32.mrb[19].mxu0 }
 0x338   : > { %2348 = vtanh.f32 %v1260_v51  ;;  %v1199_v7 = vmul.f32 %v1167_v26, %v3055_v52  ;;  %v1166_v46 = vmul.f32 0.044715, %v1134_v6  ;;  %v1137_v47 = vmul.f32 %v3079_v30, %v3079_v30 }
 0x339   : > { %v1229_v10 = vadd.f32 %v1197_v0, %v3051_v45  ;;  %v1168_v57 = vmul.f32 0.044715, %v1136_v55  ;;  %v1139_v58 = vmul.f32 %v3089_v35, %v3089_v35  ;;  %v3102_v15 = vadd.f32 %v997_v42, %v3008_v1 }
 0x33a   : > { %v1231_v12 = vadd.f32 %v1199_v7, %v3055_v52  ;;  %v1198_v48 = vmul.f32 %v1166_v46, %v3063_v61  ;;  %v1169_v51 = vmul.f32 0.044715, %v1137_v47  ;;  %v3107_v37 = vadd.f32 %v1070_v43, %v3010_v50 }
 0x33b   : > { %v2335_v26 = vpop.eup %2334  ;;  %v1261_v6 = vmul.f32 0.7978846, %v1229_v10  ;;  %v1200_v44 = vmul.f32 %v1168_v57, %v3070_v3  ;;  %v1171_v0 = vmul.f32 0.044715, %v1139_v58  ;;  %v1138_v55 = vmul.f32 %v3102_v15, %v3102_v15 }
 0x33c   : > { %v2337_v41 = vpop.eup %2336  ;;  %v1317_v27 = vadd.f32 1.0, %v2335_v26  ;;  %v1263_v42 = vmul.f32 0.7978846, %v1231_v12  ;;  %v1230_v21 = vadd.f32 %v1198_v48, %v3063_v61  ;;  %v1201_v7 = vmul.f32 %v1169_v51, %v3079_v30  ;;  %v3114_v46 = vpop.f32.mrb[12].mxu1 }
 0x33d   : > { %v3116_v47 = vpop.f32.mrb[20].mxu0  ;;  %v3118_v43 = vpop.eup %2338  ;;  %v1319_v10 = vadd.f32 1.0, %v2337_v41  ;;  %2350 = vtanh.f32 %v1261_v6  ;;  %v1232_v57 = vadd.f32 %v1200_v44, %v3070_v3  ;;  %v1203_v58 = vmul.f32 %v1171_v0, %v3089_v35 }
 0x33e   : > { %v3122_v28 = vpop.f32.mrb[13].mxu1  ;;  %v3124_v26 = vpop.f32.mrb[21].mxu0  ;;  %v3129_v48 = vmul.f32 %v1317_v27, %v3020_v62  ;;  %2352 = vtanh.f32 %v1263_v42  ;;  %v1262_v51 = vmul.f32 0.7978846, %v1230_v21  ;;  %v1233_v25 = vadd.f32 %v1201_v7, %v3079_v30 }
 0x33f   : > { %v3126_v12 = vpop.eup %2340  ;;  %v3132_v39 = vpop.f32.mrb[14].mxu1  ;;  %v3137_v6 = vmul.f32 %v1319_v10, %v3022_v2  ;;  %v1264_v0 = vmul.f32 0.7978846, %v1232_v57  ;;  %v1235_v36 = vadd.f32 %v1203_v58, %v3089_v35  ;;  %v1170_v34 = vmul.f32 0.044715, %v1138_v55 }
 0x340   : > { %v3134_v41 = vpop.f32.mrb[22].mxu0  ;;  %v2343_v44 = vpop.eup %2342  ;;  %2354 = vtanh.f32 %v1262_v51  ;;  %v1265_v42 = vmul.f32 0.7978846, %v1233_v25  ;;  %v1140_v7 = vmul.f32 %v3107_v37, %v3107_v37  ;;  %v3156_v25 = vadd.f32 %v3065_v16, %v3004_v49 }
 0x341   : > { %v3140_v33 = vpop.f32.mrb[15].mxu1  ;;  %v3142_v27 = vpop.f32.mrb[23].mxu0  ;;  %v1321_v21 = vadd.f32 1.0, %v2343_v44  ;;  %2356 = vtanh.f32 %v1264_v0  ;;  %v1267_v2 = vmul.f32 0.7978846, %v1235_v36  ;;  %v1202_v10 = vmul.f32 %v1170_v34, %v3102_v15 }
 0x342   : > { %v2345_v62 = vpop.eup %2344  ;;  %2358 = vtanh.f32 %v1265_v42  ;;  %v1172_v58 = vmul.f32 0.044715, %v1140_v7  ;;  %3557 = vst [vmem:[#allocation31_spill] sm:$0xff] %v3156_v25  ;;  %v1075_v34 = vadd.f32 %v3067_v14, %v3006_v59  ;;  %v3169_v0 = vadd.f32 %v3072_v4, %v3008_v1 }
 0x343   : > { %v3146_v31 = vpop.eup %2346  ;;  %v1323_v29 = vadd.f32 1.0, %v2345_v62  ;;  %v3152_v55 = vmul.f32 %v1321_v21, %v3036_v32  ;;  %2360 = vtanh.f32 %v1267_v2  ;;  %v1234_v44 = vadd.f32 %v1202_v10, %v3102_v15 }
 0x344   : > { %v3149_v57 = vpop.eup %2348  ;;  %v1204_v36 = vmul.f32 %v1172_v58, %v3107_v37  ;;  %v1141_v32 = vmul.f32 %v3156_v25, %v3156_v25  ;;  %v3173_v16 = vadd.f32 %v3074_v18, %v3010_v50  ;;  %v1143_v62 = vmul.f32 %v1075_v34, %v1075_v34 }
 0x345   : > { %v3159_v51 = vmul.f32 %v1323_v29, %v3038_v40  ;;  %v1266_v29 = vmul.f32 0.7978846, %v1234_v44  ;;  %v3175_v40 = vmul.f32 0.5, %v1075_v34  ;;  %v3179_v14 = vadd.f32 %v3081_v56, %v3004_v49 }
 0x346   : > { %3558 = vst [vmem:[#allocation32_spill] sm:$0xff] %v3173_v16  ;;  %v1236_v21 = vadd.f32 %v1204_v36, %v3107_v37  ;;  %v1173_v42 = vmul.f32 0.044715, %v1141_v32  ;;  %v1142_v7 = vmul.f32 %v3169_v0, %v3169_v0  ;;  %v1144_v4 = vmul.f32 %v3173_v16, %v3173_v16 }
 0x347   : > { %v3186_v2 = vpop.eup %2350  ;;  %2362 = vtanh.f32 %v1266_v29  ;;  %v1175_v18 = vmul.f32 0.044715, %v1143_v62  ;;  %v1145_v10 = vmul.f32 %v3179_v14, %v3179_v14  ;;  %v1079_v56 = vadd.f32 %v3083_v54, %v3006_v59 }
 0x348   : > { %v3192_v58 = vpop.eup %2352  ;;  %v1268_v44 = vmul.f32 0.7978846, %v1236_v21  ;;  %v1205_v36 = vmul.f32 %v1173_v42, %v3156_v25  ;;  %v1174_v32 = vmul.f32 0.044715, %v1142_v7  ;;  %v1176_v24 = vmul.f32 0.044715, %v1144_v4 }
 0x349   : > { %v1207_v22 = vmul.f32 %v1175_v18, %v1075_v34  ;;  %v1177_v19 = vmul.f32 0.044715, %v1145_v10  ;;  %v3195_v17 = vmul.f32 0.5, %v1079_v56  ;;  %v1147_v13 = vmul.f32 %v1079_v56, %v1079_v56 }
 0x34a   : > { %v3197_v29 = vpop.eup %2354  ;;  %2364 = vtanh.f32 %v1268_v44  ;;  %v1237_v62 = vadd.f32 %v1205_v36, %v3156_v25  ;;  %v1206_v11 = vmul.f32 %v1174_v32, %v3169_v0  ;;  %v1208_v54 = vmul.f32 %v1176_v24, %v3173_v16 }
 0x34b   : > { %v3202_v8 = vpop.eup %2356  ;;  %v1239_v21 = vadd.f32 %v1207_v22, %v1075_v34  ;;  %v1209_v42 = vmul.f32 %v1177_v19, %v3179_v14  ;;  %v1179_v7 = vmul.f32 0.044715, %v1147_v13  ;;  %v3207_v4 = vadd.f32 %v3091_v38, %v3008_v1 }
 0x34c   : > { %v3209_v18 = vpop.eup %2358  ;;  %v1269_v10 = vmul.f32 0.7978846, %v1237_v62  ;;  %v1238_v44 = vadd.f32 %v1206_v11, %v3169_v0  ;;  %v1240_v36 = vadd.f32 %v1208_v54, %v3173_v16  ;;  %v3215_v24 = vadd.f32 %v3093_v63, %v3010_v50 }
 0x34d   : > { %v3217_v32 = vpop.eup %2360  ;;  %v1271_v22 = vmul.f32 0.7978846, %v1239_v21  ;;  %v1241_v13 = vadd.f32 %v1209_v42, %v3179_v14  ;;  %v1211_v19 = vmul.f32 %v1179_v7, %v1079_v56  ;;  %v1146_v38 = vmul.f32 %v3207_v4, %v3207_v4 }
 0x34e   : > { %3559 = vst [vmem:[#allocation33_spill] sm:$0xff] %v3215_v24  ;;  %2366 = vtanh.f32 %v1269_v10  ;;  %v1270_v34 = vmul.f32 0.7978846, %v1238_v44  ;;  %v1272_v62 = vmul.f32 0.7978846, %v1240_v36  ;;  %v1148_v11 = vmul.f32 %v3215_v24, %v3215_v24 }
 0x34f   : > { %2368 = vtanh.f32 %v1271_v22  ;;  %v1273_v54 = vmul.f32 0.7978846, %v1241_v13  ;;  %v1243_v16 = vadd.f32 %v1211_v19, %v1079_v56  ;;  %v1178_v63 = vmul.f32 0.044715, %v1146_v38 }
 0x350   : > { %2370 = vtanh.f32 %v1270_v34  ;;  %v1180_v25 = vmul.f32 0.044715, %v1148_v11  ;;  %v3226_v21 = vadd.f32 %v3114_v46, %v3004_v49  ;;  %v3230_v42 = vadd.f32 %v3116_v47, %v3006_v59 }
 0x351   : > { %v3232_v7 = vpop.eup %2362  ;;  %2372 = vtanh.f32 %v1272_v62  ;;  %v1275_v10 = vmul.f32 0.7978846, %v1243_v16  ;;  %v1210_v44 = vmul.f32 %v1178_v63, %v3207_v4  ;;  %v3237_v56 = vadd.f32 %v3122_v28, %v3008_v1 }
 0x352   : > { %3560 = vst [vmem:[#allocation34_spill] sm:$0xff] %v3226_v21  ;;  %2374 = vtanh.f32 %v1273_v54  ;;  %v1212_v36 = vmul.f32 %v1180_v25, %v3215_v24  ;;  %v1149_v46 = vmul.f32 %v3226_v21, %v3226_v21  ;;  %v1151_v47 = vmul.f32 %v3230_v42, %v3230_v42 }
 0x353   : > { %2376 = vtanh.f32 %v1275_v10  ;;  %v1242_v22 = vadd.f32 %v1210_v44, %v3207_v4  ;;  %v1150_v16 = vmul.f32 %v3237_v56, %v3237_v56  ;;  %v3249_v13 = vadd.f32 %v3124_v26, %v3010_v50 }
 0x354   : > { %v3251_v28 = vpop.eup %2364  ;;  %v1244_v25 = vadd.f32 %v1212_v36, %v3215_v24  ;;  %v1181_v19 = vmul.f32 0.044715, %v1149_v46  ;;  %v1183_v38 = vmul.f32 0.044715, %v1151_v47  ;;  %v3256_v34 = vadd.f32 %v3132_v39, %v3004_v49 }
 0x355   : > { %v1274_v62 = vmul.f32 0.7978846, %v1242_v22  ;;  %v1182_v11 = vmul.f32 0.044715, %v1150_v16  ;;  %v1152_v54 = vmul.f32 %v3249_v13, %v3249_v13  ;;  %v3262_v63 = vadd.f32 %v3134_v41, %v3006_v59 }
 0x356   : > { %v1276_v26 = vmul.f32 0.7978846, %v1244_v25  ;;  %v1213_v10 = vmul.f32 %v1181_v19, %v3226_v21  ;;  %v1215_v44 = vmul.f32 %v1183_v38, %v3230_v42  ;;  %v1153_v36 = vmul.f32 %v3256_v34, %v3256_v34 }
 0x357   : > { %2378 = vtanh.f32 %v1274_v62  ;;  %v1214_v39 = vmul.f32 %v1182_v11, %v3237_v56  ;;  %v1184_v49 = vmul.f32 0.044715, %v1152_v54  ;;  %v1155_v46 = vmul.f32 %v3262_v63, %v3262_v63 }
 0x358   : > { %v3271_v47 = vpop.eup %2366  ;;  %2380 = vtanh.f32 %v1276_v26  ;;  %v1245_v59 = vadd.f32 %v1213_v10, %v3226_v21  ;;  %v1247_v41 = vadd.f32 %v1215_v44, %v3230_v42  ;;  %v1185_v22 = vmul.f32 0.044715, %v1153_v36 }
 0x359   : > { %v2369_v16 = vpop.eup %2368  ;;  %v1246_v25 = vadd.f32 %v1214_v39, %v3237_v56  ;;  %v1216_v19 = vmul.f32 %v1184_v49, %v3249_v13  ;;  %v1187_v38 = vmul.f32 0.044715, %v1155_v46  ;;  %v3279_v62 = vadd.f32 %v3140_v33, %v3008_v1 }
 0x35a   : > { %v3281_v11 = vpop.eup %2370  ;;  %v1335_v54 = vadd.f32 1.0, %v2369_v16  ;;  %v1277_v24 = vmul.f32 0.7978846, %v1245_v59  ;;  %v1279_v26 = vmul.f32 0.7978846, %v1247_v41  ;;  %v1217_v10 = vmul.f32 %v1185_v22, %v3256_v34 }
 0x35b   : > { %v3284_v21 = vpop.eup %2372  ;;  %v1278_v44 = vmul.f32 0.7978846, %v1246_v25  ;;  %v1248_v36 = vadd.f32 %v1216_v19, %v3249_v13  ;;  %v1219_v39 = vmul.f32 %v1187_v38, %v3262_v63  ;;  %v1154_v49 = vmul.f32 %v3279_v62, %v3279_v62 }
 0x35c   : > { %v3290_v46 = vpop.eup %2374  ;;  %v3293_v33 = vmul.f32 %v1335_v54, %v3175_v40  ;;  %2382 = vtanh.f32 %v1277_v24  ;;  %v1249_v1 = vadd.f32 %v1217_v10, %v3256_v34  ;;  %v3298_v59 = vadd.f32 %v3142_v27, %v3010_v50 }
 0x35d   : > { %v2377_v41 = vpop.eup %2376  ;;  %2384 = vtanh.f32 %v1279_v26  ;;  %v1280_v22 = vmul.f32 0.7978846, %v1248_v36  ;;  %v1251_v16 = vadd.f32 %v1219_v39, %v3262_v63  ;;  %v1186_v25 = vmul.f32 0.044715, %v1154_v49 }
 0x35e   : > { %v1339_v19 = vadd.f32 1.0, %v2377_v41  ;;  %2386 = vtanh.f32 %v1278_v44  ;;  %v1281_v38 = vmul.f32 0.7978846, %v1249_v1  ;;  %v1156_v40 = vmul.f32 %v3298_v59, %v3298_v59 }
 0x35f   : > { %2388 = vtanh.f32 %v1280_v22  ;;  %v1283_v24 = vmul.f32 0.7978846, %v1251_v16  ;;  %v1218_v54 = vmul.f32 %v1186_v25, %v3279_v62  ;;  %v1094_v10 = vmul.f32 0.5, %v3015_v9 }
 0x360   : > { %v3306_v50 = vmul.f32 %v1339_v19, %v3195_v17  ;;  %2390 = vtanh.f32 %v1281_v38  ;;  %v1188_v27 = vmul.f32 0.044715, %v1156_v40  ;;  %v1098_v26 = vmul.f32 0.5, %v3031_v20 }
 0x361   : > { %v3309_v36 = vpop.eup %2378  ;;  %2392 = vtanh.f32 %v1283_v24  ;;  %v1250_v44 = vadd.f32 %v1218_v54, %v3279_v62  ;;  %v1318_v39 = vadd.f32 1.0, %v3118_v43  ;;  %v1322_v49 = vadd.f32 1.0, %v3146_v31 }
 0x362   : > { %v3314_v1 = vpop.eup %2380  ;;  %v1220_v9 = vmul.f32 %v1188_v27, %v3298_v59  ;;  %v1096_v17 = vmul.f32 0.5, %v3018_v60  ;;  %v1100_v41 = vmul.f32 0.5, %v3034_v23  ;;  %v1320_v22 = vadd.f32 1.0, %v3126_v12 }
 0x363   : > { %v1282_v20 = vmul.f32 0.7978846, %v1250_v44  ;;  %v1350_v16 = vmul.f32 %v1318_v39, %v1094_v10  ;;  %v1354_v25 = vmul.f32 %v1322_v49, %v1098_v26  ;;  %v1324_v19 = vadd.f32 1.0, %v3149_v57 }
 0x364   : > { %v1252_v38 = vadd.f32 %v1220_v9, %v3298_v59  ;;  %v1352_v43 = vmul.f32 %v1320_v22, %v1096_v17  ;;  %v1381_v31 = vpack.c.bf16 %v3152_v55, %v3129_v48  ;;  %v1383_v40 = vpack.c.bf16 %v3159_v51, %v3137_v6 }
 0x365   : > { %2394 = vtanh.f32 %v1282_v20  ;;  %v1382_v60 = vpack.c.bf16 %v1354_v25, %v1350_v16  ;;  %v1356_v24 = vmul.f32 %v1324_v19, %v1100_v41  ;;  %v1102_v23 = vmul.f32 0.5, %v3063_v61  ;;  %v3561_v19 = vld [vmem:[#allocation18_spill] sm:$0xff] }
 0x366   : > { %v3327_v12 = vpop.eup %2382  ;;  %v1284_v54 = vmul.f32 0.7978846, %v1252_v38  ;;  %v1106_v10 = vmul.f32 0.5, %v3102_v15  ;;  %v1326_v57 = vadd.f32 1.0, %v3197_v29  ;;  %v1330_v27 = vadd.f32 1.0, %v3232_v7 }
 0x367   : > { %v3332_v26 = vpop.eup %2384  ;;  %1692 = vmatprep.mubr.bf16.mxu1 %v1382_v60  ;;  %v1384_v48 = vpack.c.bf16 %v1356_v24, %v1352_v43  ;;  %v1104_v6 = vmul.f32 0.5, %v3070_v3  ;;  %v1108_v55 = vmul.f32 0.5, %v3107_v37  ;;  %v1328_v51 = vadd.f32 1.0, %v3202_v8 }
 0x368   : > { %v2387_v61 = vpop.eup %2386  ;;  %2396 = vtanh.f32 %v1284_v54  ;;  %1693 = vmatmul.mubr.bf16.vlgmr.msra.gmra.mrb[16].mxu1 %v1381_v31  ;;  %v1358_v44 = vmul.f32 %v1326_v57, %v1102_v23  ;;  %v1362_v39 = vmul.f32 %v1330_v27, %v1106_v10  ;;  %v1332_v15 = vadd.f32 1.0, %v3251_v28  ;;  %v3564_v27 = vld [vmem:[#allocation20_spill] sm:$0xff] }
 0x369   : > { %v3338_v29 = vpop.eup %2388  ;;  %1757 = vmatprep.mubr.bf16.mxu0 %v1384_v48  ;;  %2144 = vmatpush3.bf16.msra.mxu1 %v2872_v53  ;;  %v1360_v7 = vmul.f32 %v1328_v51, %v1104_v6  ;;  %v1101_v49 = vmul.f32 0.5, %v3051_v45  ;;  %v1105_v3 = vmul.f32 0.5, %v3079_v30  ;;  %v1325_v37 = vadd.f32 1.0, %v3186_v2 }
 0x36a   : > { %v2391_v8 = vpop.eup %2390  ;;  %1758 = vmatmul.mubr.bf16.vlgmr.msra.gmra.mrb[24].mxu0 %v1383_v40  ;;  %2137 = vmatprep.subr.bf16.mxu1 %v2881_v5  ;;  %v1386_v9 = vpack.c.bf16 %v1362_v39, %v1358_v44  ;;  %v1364_v17 = vmul.f32 %v1332_v15, %v1108_v55  ;;  %v1329_v28 = vadd.f32 1.0, %v3209_v18  ;;  %v1103_v41 = vmul.f32 0.5, %v3055_v52  ;;  %v3565_v55 = vld [vmem:[#allocation34_spill] sm:$0xff]  ;;  %v3566_v44 = vld [vmem:[#allocation21_spill] sm:$0xff] }
 0x36b   : > { %v3347_v22 = vpop.eup %2392  ;;  %v1357_v53 = vmul.f32 %v1325_v37, %v1101_v49  ;;  %v1107_v20 = vmul.f32 0.5, %v3089_v35  ;;  %v1327_v45 = vadd.f32 1.0, %v3192_v58  ;;  %v1331_v30 = vadd.f32 1.0, %v3217_v32  ;;  %v3562_v35 = vld [vmem:[#allocation19_spill] sm:$0xff] }
 0x36c   : > { %1700 = vmatprep.mubr.bf16.mxu1 %v1386_v9  ;;  %v1388_v2 = vpack.c.bf16 %v1364_v17, %v1360_v7  ;;  %v1361_v16 = vmul.f32 %v1329_v28, %v1105_v3  ;;  %v1110_v5 = vmul.f32 0.5, %v3169_v0  ;;  %v1114_v25 = vmul.f32 0.5, %v3207_v4  ;;  %v3563_v32 = vld [vmem:[#allocation31_spill] sm:$0xff]  ;;  %v3567_v7 = vld [vmem:[#allocation32_spill] sm:$0xff]  ;;  %v3568_v3 = vld [vmem:[#allocation33_spill] sm:$0xff] }
 0x36d   : > { %2145 = vmatpush3.bf16.msra.mxu1 %v3561_v19  ;;  %v1359_v18 = vmul.f32 %v1327_v45, %v1103_v41  ;;  %v1363_v52 = vmul.f32 %v1331_v30, %v1107_v20  ;;  %v1334_v38 = vadd.f32 1.0, %v3281_v11  ;;  %v1338_v43 = vadd.f32 1.0, %v3309_v36 }
 0x36e   : > { %2138 = vmatprep.subr.bf16.mxu1 %v3562_v35  ;;  %1765 = vmatprep.mubr.bf16.mxu0 %v1388_v2  ;;  %v1385_v58 = vpack.c.bf16 %v1361_v16, %v1357_v53  ;;  %v1109_v31 = vmul.f32 0.5, %v3563_v32  ;;  %v1113_v40 = vmul.f32 0.5, %v3179_v14  ;;  %v1333_v0 = vadd.f32 1.0, %v3271_v47  ;;  %v3569_v53 = vld [vmem:[#allocation22_spill] sm:$0xff] }
 0x36f   : > { %v2395_v60 = vpop.eup %2394  ;;  %v1387_v4 = vpack.c.bf16 %v1363_v52, %v1359_v18  ;;  %v1366_v24 = vmul.f32 %v1334_v38, %v1110_v5  ;;  %v1370_v23 = vmul.f32 %v1338_v43, %v1114_v25  ;;  %v1337_v54 = vadd.f32 1.0, %v3290_v46  ;;  %v3571_v18 = vld [vmem:[#allocation24_spill] sm:$0xff]  ;;  %v3572_v38 = vld [vmem:[#allocation25_spill] sm:$0xff]  ;;  %v3573_v35 = vld [vmem:[#allocation26_spill] sm:$0xff] }
 0x370   : > { %1701 = vmatmul.mubr.bf16.gmra.mrb[20].mxu1 %v1385_v58  ;;  %v1365_v11 = vmul.f32 %v1333_v0, %v1109_v31  ;;  %v1118_v36 = vmul.f32 0.5, %v3237_v56  ;;  %v1122_v10 = vmul.f32 0.5, %v3279_v62  ;;  %v1342_v57 = vadd.f32 1.0, %v2387_v61  ;;  %v3574_v58 = vld [vmem:[#allocation27_spill] sm:$0xff]  ;;  %v3394_v31 = vld [vmem:[%s3498_s9] ss:$0 sm:$0xff] }
 0x371   : > { %2146 = vmatpush3.bf16.msra.mxu1 %v3564_v27  ;;  %v1390_v48 = vpack.c.bf16 %v1370_v23, %v1366_v24  ;;  %v1369_v6 = vmul.f32 %v1337_v54, %v1113_v40  ;;  %v1346_v14 = vadd.f32 1.0, %v2395_v60  ;;  %v1117_v47 = vmul.f32 0.5, %v3565_v55 }
 0x372   : > { %v2397_v51 = vpop.eup %2396  ;;  %1766 = vmatmul.mubr.bf16.gmra.mrb[28].mxu0 %v1387_v4  ;;  %2139 = vmatprep.subr.bf16.mxu1 %v3566_v44  ;;  %v1374_v39 = vmul.f32 %v1342_v57, %v1118_v36  ;;  %v1121_v46 = vmul.f32 0.5, %v3256_v34  ;;  %v1341_v15 = vadd.f32 1.0, %v3327_v12  ;;  %v1345_v56 = vadd.f32 1.0, %v2391_v8  ;;  %v3570_v12 = vld [vmem:[#allocation23_spill] sm:$0xff] }
 0x373   : > { %1708 = vmatprep.mubr.bf16.mxu1 %v1390_v48  ;;  %v1389_v62 = vpack.c.bf16 %v1369_v6, %v1365_v11  ;;  %v1378_v61 = vmul.f32 %v1346_v14, %v1122_v10  ;;  %v1112_v49 = vmul.f32 0.5, %v3567_v7  ;;  %v1116_v37 = vmul.f32 0.5, %v3568_v3  ;;  %v3578_v14 = vld [vmem:[#allocation11_spill] sm:$0xff] }
 0x374   : > { %v1373_v9 = vmul.f32 %v1341_v15, %v1117_v47  ;;  %v1377_v17 = vmul.f32 %v1345_v56, %v1121_v46  ;;  %v1336_v28 = vadd.f32 1.0, %v3284_v21  ;;  %v1340_v41 = vadd.f32 1.0, %v3314_v1 }
 0x375   : > { %2147 = vmatpush3.bf16.msra.mxu1 %v3569_v53  ;;  %v1394_v20 = vpack.c.bf16 %v1378_v61, %v1374_v39  ;;  %v1391_v34 = vpack.c.bf16 %v3306_v50, %v3293_v33  ;;  %v1344_v2 = vadd.f32 1.0, %v3338_v29  ;;  %v1120_v16 = vmul.f32 0.5, %v3249_v13  ;;  %v3579_v39 = vld [vmem:[#allocation13_spill] sm:$0xff] }
 0x376   : > { %2140 = vmatprep.subr.bf16.mxu1 %v3570_v12  ;;  %v1393_v8 = vpack.c.bf16 %v1377_v17, %v1373_v9  ;;  %v1368_v45 = vmul.f32 %v1336_v28, %v1112_v49  ;;  %v1372_v30 = vmul.f32 %v1340_v41, %v1116_v37  ;;  %v1124_v5 = vmul.f32 0.5, %v3298_v59 }
 0x377   : > { %v1348_v21 = vadd.f32 1.0, %v2397_v51  ;;  %v1343_v1 = vadd.f32 1.0, %v3332_v26  ;;  %v1119_v19 = vmul.f32 0.5, %v3230_v42  ;;  %v1123_v33 = vmul.f32 0.5, %v3262_v63  ;;  %v3575_v42 = vld [vmem:[#allocation28_spill] sm:$0xff]  ;;  %v3576_v63 = vld [vmem:[#allocation29_spill] sm:$0xff] }
 0x378   : > { %1709 = vmatmul.mubr.bf16.gmra.mrb[24].mxu1 %v1389_v62  ;;  %v1392_v25 = vpack.c.bf16 %v1372_v30, %v1368_v45  ;;  %v1347_v50 = vadd.f32 1.0, %v3347_v22  ;;  %v1376_v52 = vmul.f32 %v1344_v2, %v1120_v16  ;;  %v3577_v22 = vld [vmem:[#allocation30_spill] sm:$0xff]  ;;  %v3581_v30 = vld [vmem:[#allocation12_spill] sm:$0xff] }
 0x379   : > { %2148 = vmatpush3.bf16.msra.mxu1 %v3571_v18  ;;  %1716 = vmatprep.mubr.bf16.mxu1 %v1394_v20  ;;  %v1380_v29 = vmul.f32 %v1348_v21, %v1124_v5  ;;  %v1375_v13 = vmul.f32 %v1343_v1, %v1119_v19  ;;  %v3580_v20 = vld [vmem:[#allocation10_spill] sm:$0xff] }
 0x37a   : > { %2141 = vmatprep.subr.bf16.mxu1 %v3572_v38  ;;  %v1379_v59 = vmul.f32 %v1347_v50, %v1123_v33 }
 0x37b   : > { %v1396_v43 = vpack.c.bf16 %v1380_v29, %v1376_v52 }
 0x37c   : > { %v1395_v26 = vpack.c.bf16 %v1379_v59, %v1375_v13 }
 0x37d   : > { %2149 = vmatpush3.bf16.msra.mxu1 %v3573_v35 }
 0x37e   : > { %2142 = vmatprep.subr.bf16.mxu1 %v3574_v58 }
 0x380   : > { %1717 = vmatmul.mubr.bf16.gmra.mrb[28].mxu1 %v1393_v8 }
 0x381   : > { %2150 = vmatpush3.bf16.msra.mxu1 %v3575_v42  ;;  %1773 = vmatprep.mubr.bf16.mxu1 %v1392_v25 }
 0x382   : > { %2143 = vmatprep.subr.bf16.mxu1 %v3576_v63  ;;  %v3582_v63 = vld [vmem:[#allocation15_spill] sm:$0xff] }
 0x385   : > { %2151 = vmatpush3.bf16.msra.mxu1 %v3577_v22 }
 0x388   : > { %1774 = vmatmul.mubr.bf16.vlgmr.msra.gmra.mrb[32].mxu1 %v1391_v34 }
 0x389   : > { %1781 = vmatprep.mubr.bf16.mxu1 %v1396_v43 }
 0x390   : > { %1782 = vmatmul.mubr.bf16.gmra.mrb[36].mxu1 %v1395_v26 }
 0x43b   : > { %v2048_v32 = vpop.f32.mrb[16].mxu1 }
 0x43c   : > { %v2049_v40 = vpop.f32.mrb[17].mxu1 }
 0x43d   : > { %v2088_v0 = vpop.f32.mrb[24].mxu0  ;;  %v2050_v60 = vadd.f32 %v2049_v40, %v2048_v32  ;;  %v2051_v4 = vpop.f32.mrb[18].mxu1  ;;  %v3583_v40 = vld [vmem:[#allocation17_spill] sm:$0xff] }
 0x43e   : > { %v2089_v24 = vpop.f32.mrb[25].mxu0  ;;  %v2052_v23 = vpop.f32.mrb[19].mxu1 }
 0x43f   : > { %v1695_v54 = vadd.f32 %v2050_v60, %v3394_v31  ;;  %v2090_v11 = vadd.f32 %v2089_v24, %v2088_v0  ;;  %v2091_v36 = vpop.f32.mrb[26].mxu0  ;;  %v2053_v10 = vadd.f32 %v2052_v23, %v2051_v4 }
 0x440   : > { %v2092_v57 = vpop.f32.mrb[27].mxu0 }
 0x441   : > { %v1760_v27 = vadd.f32 %v2090_v11, %v1695_v54  ;;  %v1698_v48 = vadd.f32 %v2053_v10, %v3394_v31  ;;  %v2093_v6 = vadd.f32 %v2092_v57, %v2091_v36 }
 0x443   : > { %v1790_v55 = vadd.f32 %v1760_v27, %v3578_v14  ;;  %v1763_v47 = vadd.f32 %v2093_v6, %v1698_v48  ;;  %v2054_v51 = vpop.f32.mrb[20].mxu1  ;;  %v3584_v27 = vld [vmem:[#allocation14_spill] sm:$0xff]  ;;  %v3585_v14 = vld [vmem:[#allocation16_spill] sm:$0xff] }
 0x444   : > { %v2055_v44 = vpop.f32.mrb[21].mxu1 }
 0x445   : > { %1798 = vst [vmem:[%s3402_s23] sm:$0xff] %v1790_v55  ;;  %v1791_v46 = vadd.f32 %v1763_v47, %v3579_v39  ;;  %v2094_v15 = vpop.f32.mrb[28].mxu0  ;;  %v2056_v56 = vadd.f32 %v2055_v44, %v2054_v51  ;;  %v2057_v62 = vpop.f32.mrb[22].mxu1 }
 0x446   : > { %v2095_v61 = vpop.f32.mrb[29].mxu0  ;;  %v2058_v7 = vpop.f32.mrb[23].mxu1 }
 0x447   : > { %1799 = vst [vmem:[%s3402_s23 + $0x8] sm:$0xff] %v1791_v46  ;;  %v1703_v49 = vadd.f32 %v2056_v56, %v3394_v31  ;;  %v2096_v3 = vadd.f32 %v2095_v61, %v2094_v15  ;;  %v2097_v37 = vpop.f32.mrb[30].mxu0  ;;  %v2059_v9 = vadd.f32 %v2058_v7, %v2057_v62 }
 0x448   : > { %v2098_v17 = vpop.f32.mrb[31].mxu0 }
 0x449   : > { %v1768_v28 = vadd.f32 %v2096_v3, %v1703_v49  ;;  %v1706_v41 = vadd.f32 %v2059_v9, %v3394_v31  ;;  %v2099_v53 = vadd.f32 %v2098_v17, %v2097_v37 }
 0x44b   : > { %v1792_v34 = vadd.f32 %v1768_v28, %v3580_v20  ;;  %v1771_v12 = vadd.f32 %v2099_v53, %v1706_v41  ;;  %v2060_v8 = vpop.f32.mrb[24].mxu1 }
 0x44c   : > { %v2061_v45 = vpop.f32.mrb[25].mxu1 }
 0x44d   : > { %1800 = vst [vmem:[%s3402_s23 + $0x10] sm:$0xff] %v1792_v34  ;;  %v1793_v2 = vadd.f32 %v1771_v12, %v3581_v30  ;;  %v2062_v16 = vadd.f32 %v2061_v45, %v2060_v8  ;;  %v2063_v5 = vpop.f32.mrb[26].mxu1 }
 0x44e   : > { %v2064_v21 = vpop.f32.mrb[27].mxu1 }
 0x44f   : > { %1801 = vst [vmem:[%s3402_s23 + $0x18] sm:$0xff] %v1793_v2  ;;  %v2065_v1 = vadd.f32 %v2064_v21, %v2063_v5  ;;  %v1711_v13 = vadd.f32 %v2062_v16, %v3394_v31 }
 0x451   : > { %v1714_v35 = vadd.f32 %v2065_v1, %v3394_v31 }
 0x453   : > { %v2066_v25 = vpop.f32.mrb[28].mxu1 }
 0x454   : > { %v2067_v19 = vpop.f32.mrb[29].mxu1 }
 0x455   : > { %v2068_v33 = vadd.f32 %v2067_v19, %v2066_v25  ;;  %v2069_v50 = vpop.f32.mrb[30].mxu1 }
 0x456   : > { %v2070_v18 = vpop.f32.mrb[31].mxu1 }
 0x457   : > { %v2071_v52 = vadd.f32 %v2070_v18, %v2069_v50  ;;  %v1719_v24 = vadd.f32 %v2068_v33, %v3394_v31 }
 0x459   : > { %v1722_v36 = vadd.f32 %v2071_v52, %v3394_v31 }
 0x45b   : > { %v2100_v29 = vpop.f32.mrb[32].mxu1 }
 0x45c   : > { %v2101_v38 = vpop.f32.mrb[33].mxu1 }
 0x45d   : > { %v2102_v59 = vadd.f32 %v2101_v38, %v2100_v29  ;;  %v2103_v43 = vpop.f32.mrb[34].mxu1 }
 0x45e   : > { %v2104_v26 = vpop.f32.mrb[35].mxu1 }
 0x45f   : > { %v1776_v58 = vadd.f32 %v2102_v59, %v1711_v13  ;;  %v2105_v42 = vadd.f32 %v2104_v26, %v2103_v43 }
 0x461   : > { %v1794_v22 = vadd.f32 %v1776_v58, %v3582_v63  ;;  %v1779_v32 = vadd.f32 %v2105_v42, %v1714_v35 }
 0x463   : > { %1802 = vst [vmem:[%s3402_s23 + $0x20] sm:$0xff] %v1794_v22  ;;  %v1795_v0 = vadd.f32 %v1779_v32, %v3583_v40  ;;  %v2106_v60 = vpop.f32.mrb[36].mxu1 }
 0x464   : > { %v2107_v4 = vpop.f32.mrb[37].mxu1 }
 0x465   : > { %1803 = vst [vmem:[%s3402_s23 + $0x28] sm:$0xff] %v1795_v0  ;;  %v2108_v23 = vadd.f32 %v2107_v4, %v2106_v60  ;;  %v2109_v54 = vpop.f32.mrb[38].mxu1 }
 0x466   : > { %v2110_v11 = vpop.f32.mrb[39].mxu1 }
 0x467   : > { %v1784_v10 = vadd.f32 %v2108_v23, %v1719_v24  ;;  %v2111_v57 = vadd.f32 %v2110_v11, %v2109_v54 }
 0x469   : > { %v1796_v48 = vadd.f32 %v1784_v10, %v3584_v27  ;;  %v1787_v6 = vadd.f32 %v2111_v57, %v1722_v36 }
 0x46b   : > { %1804 = vst [vmem:[%s3402_s23 + $0x30] sm:$0xff] %v1796_v48  ;;  %v1797_v55 = vadd.f32 %v1787_v6, %v3585_v14 }
 0x46d   : > { %1805 = vst [vmem:[%s3402_s23 + $0x38] sm:$0xff] %v1797_v55 }
 0x46e   : > { %2411 = shalt.err (!%p2408_p7)
}
 0x46f   : > { %s2412_s19 = scalar_lea.hbm %s3427_s30, 1024  ;;  %s2416_s28 = scalar_lea.hbm %s3499_s10, 4096 }
 0x470   : > { %p2413_p9 = scmp.ne.s32.totalorder %s3427_s30, %s2412_s19  ;;  %p2417_p12 = scmp.lt.u32.totalorder %s3427_s30, %s3499_s10 }
 0x471   : > { %p2418_p13 = scmp.lt.u32.totalorder %s2416_s28, %s2412_s19  ;;  %p2420_p1 = scmp.lt.u32.totalorder %s2412_s19, %s3427_s30 }
 0x472   : > { %p2414_p10 = pnand %p2413_p9, %p2604_p3 }
 0x473   : > { %p2419_p0 = por %p2418_p13, %p2417_p12 }
 0x474   : > { %p2415_p11 = pneg %p2414_p10 }
 0x475   : > { %p2421_p2 = por %p2420_p1, %p2419_p0 }
 0x477   : > { %p2422_p4 = pnand %p2421_p2, %p2415_p11 }
 0x479   : > { %2425 = shalt.err (!%p2422_p4)
}
 0x47a   : > { %s2496_s25 = smov 128   ;;  %s2497_s16 = smov 8  }
 0x47b   : > { %2152 = dma.vmem_to_hbm [thread:$0]  (%p2604_p3), %s3432_s17, 1024, %s3427_s30, %s3437_s11, %s2496_s25, %s2496_s25, %s2497_s16  }
 0x47c PF: > { %p2158_p5 = scmp.ge.s32.totalorder %s2492_s20, 2  ;;  %s1837_s12 = sand.u32 1, %s2464_s13  }
 0x47d   : > { %s1838_s18 = scalar_lea.sflag [#allocation3], %s1837_s12 }
 0x47e   : > { %p2155_p6 = pnand %p2158_p5, %p2613_p8 }
 0x480   : > { %2459 = dma.done.wait (!%p2155_p6), %s1838_s18, 1024  }
 0x481   : > { %2461 = vsyncadd (!%p2155_p6), %s1838_s18, 4294966272  ;;  %s23_s20 = sadd.s32 1, %s2492_s20   ;;  %s3586_s24 = sld [smem:[#allocation9_spill]] }
 0x482   : > { %p20_p7 = scmp.ge.s32.totalorder %s23_s20, 6   ;;  %s3587_s16 = sld [smem:[#allocation5_spill]] }
 0x483   : > { %s3588_s17 = sld [smem:[#allocation6_spill]]  ;;  %s3589_s18 = sld [smem:[#allocation7_spill]] }
 0x484   : > { %s3590_s19 = sld [smem:[#allocation8_spill]]  ;;  %s3591_s13 = smov %s2468_s14 }
 0x485   : > { %s3592_s14 = smov %s2472_s15  ;;  %22 = sbr.rel (!%p20_p7) target bundleno = 5 (0x5), region = 98 }
 0x487   : > { %s3593_s15 = smov %s3586_s24 }
 0x48c   :  { %1843 = vsyncpa [#allocation3], 1 }
 0x48d   :  { %1845 = vsyncpa [#allocation3 + $0x1], 1 }

// kernel: _forward_impl.4
= control target key start
LH: loop header
LB: loop body
LE: loop exit
PB: predicated region body
PF: predicated region fallthrough
CT: control target
= control target key end

     0   :  { %s3579_s6 = smov 0   ;;  %s5152_s0 = inlined_call_operand.vmem [shape: bf16[2,128,384], index: 0, kind: input, shape index: {}]   ;;  %s5153_s1 = inlined_call_operand.vmem [shape: bf16[2,128,128], index: 1, kind: output, shape index: {}]  }
   0x1 LB: > { %s2547_s7 = sadd.s32 4294967295, %s3564_s6   ;;  %p2551_p0 = scmp.ge.s32.totalorder %s3564_s6, 1  ;;  %s3564_s6 = sphi %s3579_s6, %s11_s6  }
   0x2   : > { %p87_p1 = scmp.lt.s32.totalorder %s3564_s6, 3 }
   0x4   : > { %p88_p2 = pnand %p2551_p0, %p87_p1 }
   0x6   : > { %91 = sbr.rel (%p88_p2) target bundleno = 2913 (0xb61), region = 24 }
   0xd   : > { %p107_p3 = scmp.lt.s32.totalorder %s2547_s7, 1  ;;  %vm249_vm0 = vcmask 261120   ;;  %s3566_s12 = smov 96   ;;  %v150_v33 = vlaneseq }
   0xe   : > { %s3567_s13 = smov 64   ;;  %s3568_s14 = smov 32  }
   0xf   : > { %s5296_s7 = smov (!%p107_p3, %s2547_s7), 1  ;;  %v3739_v34 = vshrl.u32 %v150_v33, 7  ;;  %v3744_v36 = vand.u32 127, %v150_v33 }
  0x10   : > { %s3109_s8 = smul.u32 192, %s5296_s7  ;;  %s2629_s15 = sshll.u32 %s5296_s7, 6 }
  0x11   : > { %v3742_v35 = vadd.s32 16, %v3739_v34  ;;  %v3749_v38 = vadd.s32 24, %v3739_v34  ;;  %vm169_vm2 = vcmp.le.s32.totalorder %v3744_v36, %v3739_v34  ;;  %v3754_v41 = vadd.s32 8, %v3739_v34  ;;  %s5075_s18 = scalar_lea.vmem %s5153_s1, %s2629_s15 }
  0x12   : > { %s3593_s11 = scalar_lea.vmem %s5152_s0, %s3109_s8  ;;  %v3770_v49 = vadd.s32 48, %v3739_v34  ;;  %v3776_v50 = vadd.s32 56, %v3739_v34  ;;  %v3784_v52 = vadd.s32 32, %v3739_v34  ;;  %v3795_v55 = vadd.s32 40, %v3739_v34 }
  0x13   : > { %v3596_v0 = vld [vmem:[%s3593_s11 + $0x4] ss:$12 sps:$4 sm:$0xff]   ;;  %v3599_v1 = vld [vmem:[%s3593_s11 + $0x1c] ss:$12 sps:$4 sm:$0xff]   ;;  %v3614_v4 = vld [vmem:[%s3593_s11 + $0x34] ss:$12 sps:$4 sm:$0xff]   ;;  %vm171_vm1 = vcmp.le.s32.totalorder %v3744_v36, %v3742_v35  ;;  %vm172_vm3 = vcmp.le.s32.totalorder %v3744_v36, %v3749_v38  ;;  %vm170_vm4 = vcmp.le.s32.totalorder %v3744_v36, %v3754_v41 }
  0x14   : > { %3077 = vmatprep.subr.msk.bf16.mxu0 %vm249_vm0, %v3596_v0  ;;  %v275_v2 = vsel %vm249_vm0, %v3596_v0, 0  ;;  %740 = vrot.lane.b32.xlu0 %v3596_v0, %s3566_s12  ;;  %v278_v3 = vsel %vm249_vm0, %v3599_v1, 0  ;;  %v3617_v5 = vld [vmem:[%s3593_s11] ss:$12 sps:$4 sm:$0xff]   ;;  %v281_v7 = vsel %vm249_vm0, %v3614_v4, 0  ;;  %5194 = vst [vmem:[#allocation2_spill] sm:$0xff] %v3784_v52  ;;  %vm175_vm5 = vcmp.le.s32.totalorder %v3744_v36, %v3770_v49 }
  0x15   : > { %2822 = vmatpush3.bf16.xpose.msra.mxu0 %v275_v2  ;;  %742 = vrot.lane.b32.xlu1 %v3599_v1, %s3566_s12  ;;  %v3624_v6 = vld [vmem:[%s3593_s11 + $0x4c] ss:$12 sps:$4 sm:$0xff]   ;;  %v3633_v9 = vld [vmem:[%s3593_s11 + $0x64] ss:$12 sps:$4 sm:$0xff]   ;;  %v3640_v11 = vld [vmem:[%s3593_s11 + $0x7c] ss:$12 sps:$4 sm:$0xff]   ;;  %vm176_vm6 = vcmp.le.s32.totalorder %v3744_v36, %v3776_v50  ;;  %vm173_vm7 = vcmp.le.s32.totalorder %v3744_v36, %v3784_v52  ;;  %vm174_vm8 = vcmp.le.s32.totalorder %v3744_v36, %v3795_v55 }
  0x16   : > { %3078 = vmatprep.subr.msk.bf16.mxu0 %vm249_vm0, %v3599_v1  ;;  %2837 = vmatprep.mubr.msk.bf16.mxu0 %vm249_vm0, %v3617_v5  ;;  %v284_v8 = vsel %vm249_vm0, %v3624_v6, 0  ;;  %v287_v10 = vsel %vm249_vm0, %v3633_v9, 0  ;;  %v290_v12 = vsel %vm249_vm0, %v3640_v11, 0  ;;  %v3647_v13 = vld [vmem:[%s3593_s11 + $0x94] ss:$12 sps:$4 sm:$0xff]   ;;  %5195 = vst [vmem:[#allocation3_spill] sm:$0xff] %v3795_v55 }
  0x17   : > { %v293_v14 = vsel %vm249_vm0, %v3647_v13, 0  ;;  %v3654_v15 = vld [vmem:[%s3593_s11 + $0xac] ss:$12 sps:$4 sm:$0xff]   ;;  %v3664_v18 = vld [vmem:[%s3593_s11 + $0x30] ss:$12 sps:$4 sm:$0xff]   ;;  %v3810_v2 = vadd.s32 80, %v3739_v34 }
  0x18   : > { %v296_v16 = vsel %vm249_vm0, %v3654_v15, 0  ;;  %v3661_v17 = vld [vmem:[%s3593_s11 + $0x18] ss:$12 sps:$4 sm:$0xff]   ;;  %v3671_v19 = vld [vmem:[%s3593_s11 + $0x48] ss:$12 sps:$4 sm:$0xff]  }
  0x19   : > { %v3674_v20 = vld [vmem:[%s3593_s11 + $0x60] ss:$12 sps:$4 sm:$0xff]   ;;  %v3681_v21 = vld [vmem:[%s3593_s11 + $0x78] ss:$12 sps:$4 sm:$0xff]   ;;  %v3684_v22 = vld [vmem:[%s3593_s11 + $0x90] ss:$12 sps:$4 sm:$0xff]   ;;  %vm179_vm9 = vcmp.le.s32.totalorder %v3744_v36, %v3810_v2 }
  0x1a   : > { %v3691_v23 = vld [vmem:[%s3593_s11 + $0xa8] ss:$12 sps:$4 sm:$0xff]   ;;  %v3699_v25 = vld [vmem:[%s3593_s11 + $0x20] ss:$12 sps:$4 sm:$0xff]   ;;  %v3705_v26 = vld [vmem:[%s3593_s11 + $0x38] ss:$12 sps:$4 sm:$0xff]  }
  0x1b   : > { %v3696_v24 = vld [vmem:[%s3593_s11 + $0x8] ss:$12 sps:$4 sm:$0xff]   ;;  %v3710_v27 = vld [vmem:[%s3593_s11 + $0x50] ss:$12 sps:$4 sm:$0xff]   ;;  %v3721_v29 = vld [vmem:[%s3593_s11 + $0x80] ss:$12 sps:$4 sm:$0xff]  }
  0x1c   : > { %2853 = vmatprep.subr.bf16.mxu1 %v3696_v24  ;;  %v3715_v28 = vld [vmem:[%s3593_s11 + $0x68] ss:$12 sps:$4 sm:$0xff]   ;;  %v3726_v30 = vld [vmem:[%s3593_s11 + $0x98] ss:$12 sps:$4 sm:$0xff]   ;;  %v3729_v31 = vld [vmem:[%s3593_s11 + $0xb0] ss:$12 sps:$4 sm:$0xff]  }
  0x1d   : > { %2824 = vmatpush3.bf16.xpose.msra.mxu0 %v278_v3  ;;  %2854 = vmatpush3.bf16.msra.mxu1 %v3696_v24  ;;  %5196 = vst [vmem:[#allocation4_spill] sm:$0xff] %v3810_v2 }
  0x1e   : > { %3079 = vmatprep.subr.msk.bf16.mxu0 %vm249_vm0, %v3614_v4  ;;  %2855 = vmatprep.subr.bf16.mxu1 %v3699_v25 }
  0x21   : > { %2856 = vmatpush3.bf16.msra.mxu1 %v3699_v25 }
  0x22   : > { %2857 = vmatprep.subr.bf16.mxu1 %v3705_v26 }
  0x25   : > { %2826 = vmatpush3.bf16.xpose.msra.mxu0 %v281_v7  ;;  %2858 = vmatpush3.bf16.msra.mxu1 %v3705_v26 }
  0x26   : > { %3080 = vmatprep.subr.msk.bf16.mxu0 %vm249_vm0, %v3624_v6  ;;  %2859 = vmatprep.subr.bf16.mxu1 %v3710_v27 }
  0x29   : > { %2860 = vmatpush3.bf16.msra.mxu1 %v3710_v27 }
  0x2a   : > { %2861 = vmatprep.subr.bf16.mxu1 %v3715_v28 }
  0x2d   : > { %2828 = vmatpush3.bf16.xpose.msra.mxu0 %v284_v8  ;;  %2862 = vmatpush3.bf16.msra.mxu1 %v3715_v28  ;;  %v3825_v8 = vadd.s32 88, %v3739_v34 }
  0x2e   : > { %3081 = vmatprep.subr.msk.bf16.mxu0 %vm249_vm0, %v3633_v9  ;;  %2863 = vmatprep.subr.bf16.mxu1 %v3721_v29 }
  0x2f   : > { %5197 = vst [vmem:[#allocation5_spill] sm:$0xff] %v3825_v8  ;;  %vm180_vm10 = vcmp.le.s32.totalorder %v3744_v36, %v3825_v8 }
  0x31   : > { %2864 = vmatpush3.bf16.msra.mxu1 %v3721_v29 }
  0x32   : > { %2865 = vmatprep.subr.bf16.mxu1 %v3726_v30 }
  0x35   : > { %2830 = vmatpush3.bf16.xpose.msra.mxu0 %v287_v10  ;;  %2866 = vmatpush3.bf16.msra.mxu1 %v3726_v30 }
  0x36   : > { %3082 = vmatprep.subr.msk.bf16.mxu0 %vm249_vm0, %v3640_v11  ;;  %2867 = vmatprep.subr.bf16.mxu1 %v3729_v31 }
  0x39   : > { %2868 = vmatpush3.bf16.msra.mxu1 %v3729_v31 }
  0x3d   : > { %2832 = vmatpush3.bf16.xpose.msra.mxu0 %v290_v12  ;;  %v3833_v12 = vadd.s32 64, %v3739_v34 }
  0x3e   : > { %3083 = vmatprep.subr.msk.bf16.mxu0 %vm249_vm0, %v3647_v13 }
  0x3f   : > { %5198 = vst [vmem:[#allocation6_spill] sm:$0xff] %v3833_v12  ;;  %vm177_vm11 = vcmp.le.s32.totalorder %v3744_v36, %v3833_v12 }
  0x45   : > { %2834 = vmatpush3.bf16.xpose.msra.mxu0 %v293_v14 }
  0x46   : > { %3084 = vmatprep.subr.msk.bf16.mxu0 %vm249_vm0, %v3654_v15 }
  0x4d   : > { %2836 = vmatpush3.bf16.xpose.msra.mxu0 %v296_v16  ;;  %v3838_v16 = vadd.s32 72, %v3739_v34 }
  0x4f   : > { %5199 = vst [vmem:[#allocation7_spill] sm:$0xff] %v3838_v16  ;;  %vm5175_vm12 = vcmp.le.s32.totalorder %v3744_v36, %v3838_v16 }
  0x54   : > { %2838 = vmatmul.mubr.msk.bf16.vlgmr.msra.gmra.mrb[0].mxu0 %vm249_vm0, %v3661_v17 }
  0x55   : > { %2841 = vmatprep.mubr.msk.bf16.mxu0 %vm249_vm0, %v3664_v18 }
  0x5c   : > { %2842 = vmatmul.mubr.msk.bf16.gmra.mrb[4].mxu0 %vm249_vm0, %v3671_v19 }
  0x5d   : > { %2845 = vmatprep.mubr.msk.bf16.mxu0 %vm249_vm0, %v3674_v20 }
  0x64   : > { %2846 = vmatmul.mubr.msk.bf16.gmra.mrb[8].mxu0 %vm249_vm0, %v3681_v21 }
  0x65   : > { %2849 = vmatprep.mubr.msk.bf16.mxu0 %vm249_vm0, %v3684_v22 }
  0x6c   : > { %2850 = vmatmul.mubr.msk.bf16.gmra.mrb[12].mxu0 %vm249_vm0, %v3691_v23 }
  0x86   : > { %v3734_v32 = vpop.permute.xlu0 %740 }
  0x87   : > { %3085 = vmatprep.subr.msk.bf16.mxu1 %vm249_vm0, %v3734_v32 }
 0x127   : > { %v2839_v37 = vpop.f32.mrb[0].mxu0 }
 0x128   : > { %v397_v39 = vmul.f32 0.17677669, %v2839_v37  ;;  %v332_v40 = vpop.f32.mrb[1].mxu0 }
 0x129   : > { %v395_v42 = vmul.f32 0.17677669, %v332_v40  ;;  %v2840_v43 = vpop.f32.mrb[2].mxu0 }
 0x12a   : > { %v398_v44 = vmul.f32 0.17677669, %v2840_v43  ;;  %v335_v45 = vpop.f32.mrb[3].mxu0  ;;  %v3759_v46 = vsel %vm171_vm1, %v397_v39, -1e+30 }
 0x12b   : > { %v396_v47 = vmul.f32 0.17677669, %v335_v45  ;;  %431 = vmax.xlane.f32.xlu1 %v3759_v46  ;;  %v3765_v48 = vsel %vm169_vm2, %v395_v42, -1e+30 }
 0x12c   : > { %427 = vmax.xlane.f32.xlu0 %v3765_v48  ;;  %v3781_v51 = vsel %vm172_vm3, %v398_v44, -1e+30 }
 0x12d   : > { %v3790_v54 = vsel %vm170_vm4, %v396_v47, -1e+30  ;;  %v3854_v47 = vadd.s32 112, %v3739_v34 }
 0x12f   : > { %433 = vmax.xlane.f32.xlu1 %v3781_v51  ;;  %v2843_v53 = vpop.f32.mrb[4].mxu0  ;;  %5200 = vst [vmem:[#allocation8_spill] sm:$0xff] %v3854_v47  ;;  %vm183_vm13 = vcmp.le.s32.totalorder %v3744_v36, %v3854_v47 }
 0x130   : > { %v401_v56 = vmul.f32 0.17677669, %v2843_v53  ;;  %429 = vmax.xlane.f32.xlu0 %v3790_v54  ;;  %v348_v57 = vpop.f32.mrb[5].mxu0 }
 0x131   : > { %v399_v58 = vmul.f32 0.17677669, %v348_v57  ;;  %v2844_v59 = vpop.f32.mrb[6].mxu0 }
 0x132   : > { %v402_v60 = vmul.f32 0.17677669, %v2844_v59  ;;  %v3803_v61 = vsel %vm175_vm5, %v401_v56, -1e+30  ;;  %v351_v62 = vpop.f32.mrb[7].mxu0 }
 0x133   : > { %v400_v63 = vmul.f32 0.17677669, %v351_v62  ;;  %v3822_v7 = vsel %vm173_vm7, %v399_v58, -1e+30  ;;  %v3874_v58 = vadd.s32 96, %v3739_v34 }
 0x134   : > { %439 = vmax.xlane.f32.xlu0 %v3803_v61  ;;  %v3816_v3 = vsel %vm176_vm6, %v402_v60, -1e+30 }
 0x135   : > { %441 = vmax.xlane.f32.xlu1 %v3816_v3  ;;  %v3830_v10 = vsel %vm174_vm8, %v400_v63, -1e+30  ;;  %5201 = vst [vmem:[#allocation9_spill] sm:$0xff] %v3874_v58  ;;  %vm5154_vm14 = vcmp.le.s32.totalorder %v3744_v36, %v3874_v58 }
 0x137   : > { %v2847_v14 = vpop.f32.mrb[8].mxu0 }
 0x138   : > { %v405_v33 = vmul.f32 0.17677669, %v2847_v14  ;;  %435 = vmax.xlane.f32.xlu0 %v3822_v7  ;;  %v364_v37 = vpop.f32.mrb[9].mxu0 }
 0x139   : > { %v403_v39 = vmul.f32 0.17677669, %v364_v37  ;;  %437 = vmax.xlane.f32.xlu1 %v3830_v10  ;;  %v2848_v40 = vpop.f32.mrb[10].mxu0 }
 0x13a   : > { %v406_v42 = vmul.f32 0.17677669, %v2848_v40  ;;  %v3847_v43 = vsel %vm179_vm9, %v405_v33, -1e+30  ;;  %v367_v44 = vpop.f32.mrb[11].mxu0  ;;  %v3899_v40 = vadd.s32 120, %v3739_v34 }
 0x13b   : > { %v404_v45 = vmul.f32 0.17677669, %v367_v44  ;;  %v3866_v56 = vsel %vm177_vm11, %v403_v39, -1e+30  ;;  %v3904_v44 = vadd.s32 104, %v3739_v34 }
 0x13c   : > { %447 = vmax.xlane.f32.xlu0 %v3847_v43  ;;  %v3860_v53 = vsel %vm180_vm10, %v406_v42, -1e+30  ;;  %5202 = vst [vmem:[#allocation10_spill] sm:$0xff] %v3899_v40  ;;  %vm184_vm15 = vcmp.le.s32.totalorder %v3744_v36, %v3899_v40 }
 0x13d   : > { %449 = vmax.xlane.f32.xlu1 %v3860_v53  ;;  %v3871_v57 = vsel %vm5175_vm12, %v404_v45, -1e+30  ;;  %5203 = vst [vmem:[#allocation11_spill] sm:$0xff] %v3904_v44 }
 0x13f   : > { %v2851_v59 = vpop.f32.mrb[12].mxu0 }
 0x140   : > { %443 = vmax.xlane.f32.xlu0 %v3866_v56  ;;  %v409_v60 = vmul.f32 0.17677669, %v2851_v59  ;;  %v380_v62 = vpop.f32.mrb[13].mxu0 }
 0x141   : > { %445 = vmax.xlane.f32.xlu1 %v3871_v57  ;;  %v407_v63 = vmul.f32 0.17677669, %v380_v62  ;;  %v2852_v14 = vpop.f32.mrb[14].mxu0 }
 0x142   : > { %v3883_v33 = vsel %vm183_vm13, %v409_v60, -1e+30  ;;  %v383_v37 = vpop.f32.mrb[15].mxu0  ;;  %v410_v42 = vmul.f32 0.17677669, %v2852_v14 }
 0x143   : > { %v3891_v39 = vsel %vm5154_vm14, %v407_v63, -1e+30  ;;  %v408_v59 = vmul.f32 0.17677669, %v383_v37  ;;  %vm182_vm14 = vcmp.le.s32.totalorder %v3744_v36, %v3904_v44 }
 0x144   : > { %455 = vmax.xlane.f32.xlu0 %v3883_v33  ;;  %v3909_v45 = vsel %vm184_vm15, %v410_v42, -1e+30 }
 0x148   : > { %451 = vmax.xlane.f32.xlu0 %v3891_v39 }
 0x152   : > { %746 = vrot.lane.b32.xlu1 %v3624_v6, %s3566_s12  ;;  %v3920_v6 = vpop.permute.xlu1 %742 }
 0x15e   : > { %744 = vrot.lane.b32.xlu0 %v3614_v4, %s3566_s12  ;;  %v3917_v4 = vsel %vm182_vm14, %v408_v59, -1e+30 }
 0x176   : > { %457 = vmax.xlane.f32.xlu1 %v3909_v45 }
 0x17a   : > { %453 = vmax.xlane.f32.xlu1 %v3917_v4 }
 0x1b8   : > { %v432_v60 = vpop.xlane.xlu1 %431 }
 0x1b9   : > { %v461_v62 = vsub.f32 %v3759_v46, %v432_v60  ;;  %v428_v63 = vpop.xlane.xlu0 %427 }
 0x1ba   : > { %v459_v14 = vsub.f32 %v3765_v48, %v428_v63 }
 0x1bb   : > { %v479_v37 = vmul.f32 1.442695, %v461_v62 }
 0x1bc   : > { %v475_v42 = vmul.f32 1.442695, %v459_v14  ;;  %v434_v40 = vpop.xlane.xlu1 %433 }
 0x1bd   : > { %3273 = vpow2.f32 %v479_v37  ;;  %v462_v58 = vsub.f32 %v3781_v51, %v434_v40  ;;  %v430_v47 = vpop.xlane.xlu0 %429 }
 0x1be   : > { %v460_v59 = vsub.f32 %v3790_v54, %v430_v47  ;;  %3275 = vpow2.f32 %v475_v42 }
 0x1bf   : > { %v481_v44 = vmul.f32 1.442695, %v462_v58 }
 0x1c0   : > { %v477_v12 = vmul.f32 1.442695, %v460_v59 }
 0x1c1   : > { %3277 = vpow2.f32 %v481_v44  ;;  %v440_v54 = vpop.xlane.xlu0 %439 }
 0x1c2   : > { %3279 = vpow2.f32 %v477_v12  ;;  %v442_v58 = vpop.xlane.xlu1 %441  ;;  %v465_v60 = vsub.f32 %v3803_v61, %v440_v54 }
 0x1c3   : > { %v466_v59 = vsub.f32 %v3816_v3, %v442_v58 }
 0x1c4   : > { %v487_v14 = vmul.f32 1.442695, %v465_v60 }
 0x1c5   : > { %v436_v47 = vpop.xlane.xlu0 %435  ;;  %v489_v52 = vmul.f32 1.442695, %v466_v59 }
 0x1c6   : > { %v438_v44 = vpop.xlane.xlu1 %437  ;;  %v463_v62 = vsub.f32 %v3822_v7, %v436_v47  ;;  %3281 = vpow2.f32 %v487_v14 }
 0x1c7   : > { %v3926_v16 = vpop.eup %3273  ;;  %v464_v37 = vsub.f32 %v3830_v10, %v438_v44 }
 0x1c8   : > { %511 = vadd.xlane.f32.xlu0 %v3926_v16  ;;  %v3929_v46 = vpop.eup %3275  ;;  %v483_v2 = vmul.f32 1.442695, %v463_v62 }
 0x1c9   : > { %v448_v12 = vpop.xlane.xlu0 %447 }
 0x1ca   : > { %v450_v42 = vpop.xlane.xlu1 %449  ;;  %3283 = vpow2.f32 %v483_v2  ;;  %v469_v55 = vsub.f32 %v3847_v43, %v448_v12 }
 0x1cb   : > { %v3931_v48 = vpop.eup %3277  ;;  %v470_v2 = vsub.f32 %v3860_v53, %v450_v42 }
 0x1cc   : > { %507 = vadd.xlane.f32.xlu0 %v3929_v46  ;;  %513 = vadd.xlane.f32.xlu1 %v3931_v48  ;;  %v3935_v51 = vpop.eup %3279  ;;  %v495_v10 = vmul.f32 1.442695, %v469_v55 }
 0x1cd   : > { %v444_v40 = vpop.xlane.xlu0 %443 }
 0x1ce   : > { %v446_v61 = vpop.xlane.xlu1 %445  ;;  %v467_v47 = vsub.f32 %v3866_v56, %v444_v40  ;;  %v497_v56 = vmul.f32 1.442695, %v470_v2 }
 0x1d0   : > { %509 = vadd.xlane.f32.xlu1 %v3935_v51  ;;  %v3952_v44 = vpop.eup %3281  ;;  %v491_v43 = vmul.f32 1.442695, %v467_v47 }
 0x1d1   : > { %v456_v63 = vpop.xlane.xlu0 %455 }
 0x1d2   : > { %v3950_v58 = vpop.permute.xlu1 %746 }
 0x1d5   : > { %v452_v8 = vpop.xlane.xlu0 %451 }
 0x1d6   : > { %v471_v54 = vsub.f32 %v3891_v39, %v452_v8  ;;  %v468_v39 = vsub.f32 %v3871_v57, %v446_v61 }
 0x1d8   : > { %v499_v3 = vmul.f32 1.442695, %v471_v54 }
 0x1e1   : > { %750 = vrot.lane.b32.xlu1 %v3640_v11, %s3566_s12  ;;  %v485_v11 = vmul.f32 1.442695, %v464_v37 }
 0x1e2   : > { %748 = vrot.lane.b32.xlu0 %v3633_v9, %s3566_s12  ;;  %v473_v9 = vsub.f32 %v3883_v33, %v456_v63  ;;  %v3956_v33 = vpop.eup %3283 }
 0x1e3   : > { %3285 = vpow2.f32 %v485_v11 }
 0x1e4   : > { %v503_v7 = vmul.f32 1.442695, %v473_v9  ;;  %3287 = vpow2.f32 %v489_v52 }
 0x1e6   : > { %3289 = vpow2.f32 %v503_v7 }
 0x1e7   : > { %3291 = vpow2.f32 %v495_v10 }
 0x1e8   : > { %3293 = vpow2.f32 %v499_v3 }
 0x1e9   : > { %3295 = vpow2.f32 %v491_v43 }
 0x1ed   : > { %v3958_v52 = vpop.eup %3285 }
 0x1ee   : > { %v3964_v40 = vpop.eup %3287 }
 0x1f0   : > { %v3966_v60 = vpop.eup %3289 }
 0x1f1   : > { %v3971_v63 = vpop.eup %3291 }
 0x1f2   : > { %v3973_v14 = vpop.eup %3293 }
 0x1f3   : > { %v3977_v37 = vpop.eup %3295 }
 0x201   : > { %519 = vadd.xlane.f32.xlu0 %v3952_v44 }
 0x203   : > { %v458_v8 = vpop.xlane.xlu1 %457 }
 0x204   : > { %v474_v55 = vsub.f32 %v3909_v45, %v458_v8  ;;  %v493_v45 = vmul.f32 1.442695, %v468_v39 }
 0x205   : > { %517 = vadd.xlane.f32.xlu0 %v3958_v52  ;;  %515 = vadd.xlane.f32.xlu1 %v3956_v33 }
 0x206   : > { %v505_v12 = vmul.f32 1.442695, %v474_v55 }
 0x207   : > { %v454_v53 = vpop.xlane.xlu1 %453 }
 0x208   : > { %3297 = vpow2.f32 %v505_v12  ;;  %v472_v62 = vsub.f32 %v3917_v4, %v454_v53 }
 0x209   : > { %535 = vadd.xlane.f32.xlu0 %v3966_v60  ;;  %521 = vadd.xlane.f32.xlu1 %v3964_v40  ;;  %3299 = vpow2.f32 %v497_v56 }
 0x20a   : > { %3301 = vpow2.f32 %v493_v45  ;;  %v501_v57 = vmul.f32 1.442695, %v472_v62 }
 0x20c   : > { %3303 = vpow2.f32 %v501_v57 }
 0x20d   : > { %531 = vadd.xlane.f32.xlu0 %v3973_v14  ;;  %527 = vadd.xlane.f32.xlu1 %v3971_v63 }
 0x211   : > { %523 = vadd.xlane.f32.xlu1 %v3977_v37 }
 0x212   : > { %v3980_v42 = vpop.eup %3297 }
 0x213   : > { %537 = vadd.xlane.f32.xlu0 %v3980_v42  ;;  %v3983_v4 = vpop.eup %3299 }
 0x214   : > { %v3986_v59 = vpop.eup %3301 }
 0x215   : > { %529 = vadd.xlane.f32.xlu1 %v3983_v4 }
 0x216   : > { %v3989_v11 = vpop.eup %3303 }
 0x219   : > { %525 = vadd.xlane.f32.xlu1 %v3986_v59 }
 0x21d   : > { %533 = vadd.xlane.f32.xlu1 %v3989_v11 }
 0x229   : > { %752 = vrot.lane.b32.xlu0 %v3647_v13, %s3566_s12 }
 0x22d   : > { %724 = vrot.lane.b32.xlu0 %v3617_v5, %s3566_s12  ;;  %v745_v5 = vpop.permute.xlu0 %744 }
 0x22e   : > { %754 = vrot.lane.b32.xlu1 %v3654_v15, %s3566_s12 }
 0x231   : > { %728 = vrot.lane.b32.xlu0 %v3664_v18, %s3566_s12 }
 0x232   : > { %726 = vrot.lane.b32.xlu1 %v3661_v17, %s3566_s12 }
 0x235   : > { %732 = vrot.lane.b32.xlu0 %v3674_v20, %s3566_s12 }
 0x236   : > { %730 = vrot.lane.b32.xlu1 %v3671_v19, %s3566_s12 }
 0x239   : > { %736 = vrot.lane.b32.xlu0 %v3684_v22, %s3566_s12 }
 0x23a   : > { %734 = vrot.lane.b32.xlu1 %v3681_v21, %s3566_s12 }
 0x23d   : > { %1085 = vrot.lane.b32.xlu0 %v3696_v24, %s3566_s12 }
 0x23e   : > { %738 = vrot.lane.b32.xlu1 %v3691_v23, %s3566_s12 }
 0x241   : > { %1089 = vrot.lane.b32.xlu0 %v3705_v26, %s3566_s12 }
 0x242   : > { %1087 = vrot.lane.b32.xlu1 %v3699_v25, %s3566_s12 }
 0x245   : > { %1093 = vrot.lane.b32.xlu0 %v3715_v28, %s3566_s12 }
 0x246   : > { %1091 = vrot.lane.b32.xlu1 %v3710_v27, %s3566_s12 }
 0x249   : > { %1097 = vrot.lane.b32.xlu0 %v3726_v30, %s3566_s12  ;;  %v784_v30 = vsel %vm249_vm0, %v3920_v6, 0 }
 0x24a   : > { %1095 = vrot.lane.b32.xlu1 %v3721_v29, %s3566_s12  ;;  %v781_v29 = vsel %vm249_vm0, %v3734_v32, 0 }
 0x24d   : > { %1222 = vrot.lane.b32.xlu0 %v3596_v0, %s3567_s13 }
 0x24e   : > { %1099 = vrot.lane.b32.xlu1 %v3729_v31, %s3566_s12  ;;  %v787_v31 = vsel %vm249_vm0, %v745_v5, 0 }
 0x252   : > { %1224 = vrot.lane.b32.xlu1 %v3599_v1, %s3567_s13 }
 0x255   : > { %v512_v13 = vpop.xlane.xlu0 %511 }
 0x259   : > { %v508_v15 = vpop.xlane.xlu0 %507  ;;  %v514_v17 = vpop.xlane.xlu1 %513 }
 0x25a   : > { %3305 = vrcp.f32 %v514_v17 }
 0x25b   : > { %3307 = vrcp.f32 %v508_v15 }
 0x25c   : > { %3309 = vrcp.f32 %v512_v13 }
 0x25d   : > { %v510_v18 = vpop.xlane.xlu1 %509  ;;  %v749_v32 = vpop.permute.xlu0 %748 }
 0x25e   : > { %3311 = vrcp.f32 %v510_v18 }
 0x264   : > { %v3306_v19 = vpop.eup %3305 }
 0x265   : > { %v3308_v20 = vpop.eup %3307  ;;  %v558_v23 = vmul.f32 %v3306_v19, %v3931_v48 }
 0x266   : > { %v3310_v21 = vpop.eup %3309  ;;  %v555_v24 = vmul.f32 %v3308_v20, %v3929_v46  ;;  %v751_v46 = vpop.permute.xlu1 %750 }
 0x267   : > { %v557_v26 = vmul.f32 %v3310_v21, %v3926_v16  ;;  %v790_v16 = vsel %vm249_vm0, %v3950_v58, 0  ;;  %v796_v7 = vsel %vm249_vm0, %v751_v46, 0 }
 0x268   : > { %v3312_v22 = vpop.eup %3311 }
 0x269   : > { %v556_v25 = vmul.f32 %v3312_v22, %v3935_v51  ;;  %v572_v28 = vpack.c.bf16 %v558_v23, %v557_v26 }
 0x26b   : > { %v571_v27 = vpack.c.bf16 %v556_v25, %v555_v24 }
 0x26d   : > { %2869 = vmatprep.mubr.bf16.mxu1 %v571_v27 }
 0x26e   : > { %2870 = vmatmul.mubr.bf16.vlgmr.msra.gmra.mrb[0].mxu1 %v572_v28 }
 0x26f   : > { %2886 = vmatpush3.bf16.xpose.msra.mxu1 %v781_v29 }
 0x270   : > { %3086 = vmatprep.subr.msk.bf16.mxu1 %vm249_vm0, %v3920_v6  ;;  %v793_v6 = vsel %vm249_vm0, %v749_v32, 0 }
 0x277   : > { %2888 = vmatpush3.bf16.xpose.msra.mxu1 %v784_v30 }
 0x278   : > { %3087 = vmatprep.subr.msk.bf16.mxu1 %vm249_vm0, %v745_v5 }
 0x27f   : > { %2890 = vmatpush3.bf16.xpose.msra.mxu1 %v787_v31 }
 0x280   : > { %3088 = vmatprep.subr.msk.bf16.mxu1 %vm249_vm0, %v3950_v58 }
 0x287   : > { %2892 = vmatpush3.bf16.xpose.msra.mxu1 %v790_v16 }
 0x288   : > { %3089 = vmatprep.subr.msk.bf16.mxu1 %vm249_vm0, %v749_v32 }
 0x28e   : > { %v520_v48 = vpop.xlane.xlu0 %519 }
 0x28f   : > { %2894 = vmatpush3.bf16.xpose.msra.mxu1 %v793_v6 }
 0x290   : > { %3090 = vmatprep.subr.msk.bf16.mxu1 %vm249_vm0, %v751_v46 }
 0x292   : > { %v518_v51 = vpop.xlane.xlu0 %517  ;;  %v516_v9 = vpop.xlane.xlu1 %515 }
 0x293   : > { %3313 = vrcp.f32 %v518_v51 }
 0x294   : > { %3315 = vrcp.f32 %v516_v9 }
 0x295   : > { %3317 = vrcp.f32 %v520_v48 }
 0x296   : > { %v536_v61 = vpop.xlane.xlu0 %535  ;;  %v522_v54 = vpop.xlane.xlu1 %521 }
 0x297   : > { %2896 = vmatpush3.bf16.xpose.msra.mxu1 %v796_v7  ;;  %3319 = vrcp.f32 %v522_v54 }
 0x29a   : > { %v528_v10 = vpop.xlane.xlu1 %527  ;;  %v532_v47 = vpop.xlane.xlu0 %531 }
 0x29d   : > { %v3314_v3 = vpop.eup %3313 }
 0x29e   : > { %v3316_v58 = vpop.eup %3315  ;;  %v524_v2 = vpop.xlane.xlu1 %523  ;;  %v560_v43 = vmul.f32 %v3314_v3, %v3958_v52 }
 0x29f   : > { %v559_v8 = vmul.f32 %v3316_v58, %v3956_v33  ;;  %v3318_v55 = vpop.eup %3317 }
 0x2a0   : > { %v538_v56 = vpop.xlane.xlu0 %537  ;;  %v561_v45 = vmul.f32 %v3318_v55, %v3952_v44 }
 0x2a1   : > { %v573_v39 = vpack.c.bf16 %v560_v43, %v559_v8  ;;  %v3320_v12 = vpop.eup %3319 }
 0x2a2   : > { %v530_v53 = vpop.xlane.xlu1 %529  ;;  %v562_v62 = vmul.f32 %v3320_v12, %v3964_v40 }
 0x2a3   : > { %2873 = vmatprep.mubr.bf16.mxu1 %v573_v39  ;;  %3321 = vrcp.f32 %v530_v53 }
 0x2a4   : > { %v753_v57 = vpop.permute.xlu0 %752  ;;  %3323 = vrcp.f32 %v524_v2  ;;  %v574_v5 = vpack.c.bf16 %v562_v62, %v561_v45 }
 0x2a5   : > { %3091 = vmatprep.subr.msk.bf16.mxu1 %vm249_vm0, %v753_v57  ;;  %v799_v52 = vsel %vm249_vm0, %v753_v57, 0  ;;  %3325 = vrcp.f32 %v528_v10 }
 0x2a6   : > { %v526_v33 = vpop.xlane.xlu1 %525  ;;  %2898 = vmatpush3.bf16.xpose.msra.mxu1 %v799_v52 }
 0x2a7   : > { %2874 = vmatmul.mubr.bf16.gmra.mrb[4].mxu1 %v574_v5  ;;  %3327 = vrcp.f32 %v526_v33 }
 0x2a8   : > { %3329 = vrcp.f32 %v532_v47  ;;  %v725_v32 = vpop.permute.xlu0 %724 }
 0x2aa   : > { %v534_v13 = vpop.xlane.xlu1 %533 }
 0x2ab   : > { %3331 = vrcp.f32 %v534_v13 }
 0x2ac   : > { %3333 = vrcp.f32 %v538_v56  ;;  %v729_v46 = vpop.permute.xlu0 %728 }
 0x2ad   : > { %v3322_v44 = vpop.eup %3321  ;;  %3335 = vrcp.f32 %v536_v61 }
 0x2ae   : > { %v755_v40 = vpop.permute.xlu1 %754  ;;  %v3324_v15 = vpop.eup %3323  ;;  %v566_v20 = vmul.f32 %v3322_v44, %v3983_v4 }
 0x2af   : > { %3092 = vmatprep.subr.msk.bf16.mxu1 %vm249_vm0, %v755_v40  ;;  %v802_v17 = vsel %vm249_vm0, %v755_v40, 0  ;;  %v3326_v18 = vpop.eup %3325  ;;  %v563_v21 = vmul.f32 %v3324_v15, %v3977_v37 }
 0x2b0   : > { %2900 = vmatpush3.bf16.xpose.msra.mxu1 %v802_v17  ;;  %v565_v24 = vmul.f32 %v3326_v18, %v3971_v63 }
 0x2b1   : > { %v3328_v19 = vpop.eup %3327 }
 0x2b2   : > { %v564_v22 = vmul.f32 %v3328_v19, %v3986_v59  ;;  %v3330_v23 = vpop.eup %3329  ;;  %v576_v27 = vpack.c.bf16 %v566_v20, %v565_v24  ;;  %v727_v63 = vpop.permute.xlu1 %726 }
 0x2b3   : > { %v567_v29 = vmul.f32 %v3330_v23, %v3973_v14 }
 0x2b4   : > { %v575_v25 = vpack.c.bf16 %v564_v22, %v563_v21 }
 0x2b5   : > { %v3332_v26 = vpop.eup %3331 }
 0x2b6   : > { %v3334_v28 = vpop.eup %3333  ;;  %2877 = vmatprep.mubr.bf16.mxu1 %v575_v25  ;;  %v568_v30 = vmul.f32 %v3332_v26, %v3989_v11  ;;  %v731_v14 = vpop.permute.xlu1 %730 }
 0x2b7   : > { %2878 = vmatmul.mubr.bf16.gmra.mrb[8].mxu1 %v576_v27  ;;  %v3336_v31 = vpop.eup %3335  ;;  %v570_v4 = vmul.f32 %v3334_v28, %v3980_v42  ;;  %v733_v11 = vpop.permute.xlu0 %732 }
 0x2b8   : > { %v577_v16 = vpack.c.bf16 %v568_v30, %v567_v29  ;;  %v569_v37 = vmul.f32 %v3336_v31, %v3966_v60 }
 0x2ba   : > { %2881 = vmatprep.mubr.bf16.mxu1 %v577_v16  ;;  %v578_v59 = vpack.c.bf16 %v570_v4, %v569_v37  ;;  %v735_v42 = vpop.permute.xlu1 %734 }
 0x2bb   : > { %v737_v48 = vpop.permute.xlu0 %736 }
 0x2be   : > { %v739_v60 = vpop.permute.xlu1 %738 }
 0x2bf   : > { %2882 = vmatmul.mubr.bf16.gmra.mrb[12].mxu1 %v578_v59  ;;  %v1086_v7 = vpop.permute.xlu0 %1085 }
 0x2c0   : > { %2901 = vmatprep.mubr.msk.bf16.mxu1 %vm249_vm0, %v725_v32  ;;  %2917 = vmatprep.subr.bf16.mxu0 %v1086_v7 }
 0x2c1   : > { %2918 = vmatpush3.bf16.msra.mxu0 %v1086_v7 }
 0x2c2   : > { %v1088_v54 = vpop.permute.xlu1 %1087 }
 0x2c3   : > { %2919 = vmatprep.subr.bf16.mxu0 %v1088_v54  ;;  %v1090_v10 = vpop.permute.xlu0 %1089 }
 0x2c5   : > { %2920 = vmatpush3.bf16.msra.mxu0 %v1088_v54 }
 0x2c6   : > { %2921 = vmatprep.subr.bf16.mxu0 %v1090_v10  ;;  %v1092_v1 = vpop.permute.xlu1 %1091 }
 0x2c7   : > { %2902 = vmatmul.mubr.msk.bf16.vlgmr.msra.gmra.mrb[16].mxu1 %vm249_vm0, %v727_v63  ;;  %v1094_v0 = vpop.permute.xlu0 %1093 }
 0x2c8   : > { %2905 = vmatprep.mubr.msk.bf16.mxu1 %vm249_vm0, %v729_v46 }
 0x2c9   : > { %2922 = vmatpush3.bf16.msra.mxu0 %v1090_v10 }
 0x2ca   : > { %2923 = vmatprep.subr.bf16.mxu0 %v1092_v1  ;;  %v1096_v47 = vpop.permute.xlu1 %1095 }
 0x2cb   : > { %v1098_v3 = vpop.permute.xlu0 %1097 }
 0x2cd   : > { %2924 = vmatpush3.bf16.msra.mxu0 %v1092_v1 }
 0x2ce   : > { %2925 = vmatprep.subr.bf16.mxu0 %v1094_v0  ;;  %v1100_v58 = vpop.permute.xlu1 %1099 }
 0x2cf   : > { %2906 = vmatmul.mubr.msk.bf16.gmra.mrb[20].mxu1 %vm249_vm0, %v731_v14  ;;  %v4084_v2 = vpop.permute.xlu0 %1222 }
 0x2d0   : > { %2909 = vmatprep.mubr.msk.bf16.mxu1 %vm249_vm0, %v733_v11 }
 0x2d1   : > { %2926 = vmatpush3.bf16.msra.mxu0 %v1094_v0 }
 0x2d2   : > { %2927 = vmatprep.subr.bf16.mxu0 %v1096_v47 }
 0x2d5   : > { %2928 = vmatpush3.bf16.msra.mxu0 %v1096_v47 }
 0x2d6   : > { %2929 = vmatprep.subr.bf16.mxu0 %v1098_v3 }
 0x2d7   : > { %2910 = vmatmul.mubr.msk.bf16.gmra.mrb[24].mxu1 %vm249_vm0, %v735_v42 }
 0x2d8   : > { %2913 = vmatprep.mubr.msk.bf16.mxu1 %vm249_vm0, %v737_v48 }
 0x2d9   : > { %2930 = vmatpush3.bf16.msra.mxu0 %v1098_v3  ;;  %v5224_v3 = vld [vmem:[#allocation7_spill] sm:$0xff] }
 0x2da   : > { %2931 = vmatprep.subr.bf16.mxu0 %v1100_v58 }
 0x2dd   : > { %2932 = vmatpush3.bf16.msra.mxu0 %v1100_v58 }
 0x2de   : > { %3093 = vmatprep.subr.msk.bf16.mxu0 %vm249_vm0, %v4084_v2 }
 0x2df   : > { %2914 = vmatmul.mubr.msk.bf16.gmra.mrb[28].mxu1 %vm249_vm0, %v739_v60 }
 0x341   : > { %v4076_v6 = vpop.f32.mrb[0].mxu1 }
 0x342   : > { %5204 = vst [vmem:[#allocation12_spill] sm:$0xff] %v4076_v6  ;;  %v4078_v51 = vpop.f32.mrb[1].mxu1 }
 0x343   : > { %5205 = vst [vmem:[#allocation13_spill] sm:$0xff] %v4078_v51  ;;  %v4080_v9 = vpop.f32.mrb[2].mxu1 }
 0x344   : > { %5206 = vst [vmem:[#allocation14_spill] sm:$0xff] %v4080_v9  ;;  %v4082_v61 = vpop.f32.mrb[3].mxu1 }
 0x345   : > { %5207 = vst [vmem:[#allocation15_spill] sm:$0xff] %v4082_v61  ;;  %v3550_v61 = vld [vmem:[%s3593_s11 + $0xb0] ss:$12 sps:$4 sm:$0xff]  }
 0x37a   : > { %v4088_v43 = vpop.f32.mrb[4].mxu1 }
 0x37b   : > { %5208 = vst [vmem:[#allocation16_spill] sm:$0xff] %v4088_v43  ;;  %v4090_v8 = vpop.f32.mrb[5].mxu1 }
 0x37c   : > { %5209 = vst [vmem:[#allocation17_spill] sm:$0xff] %v4090_v8  ;;  %v4092_v55 = vpop.f32.mrb[6].mxu1 }
 0x37d   : > { %5210 = vst [vmem:[#allocation18_spill] sm:$0xff] %v4092_v55  ;;  %v4094_v56 = vpop.f32.mrb[7].mxu1 }
 0x37e   : > { %5211 = vst [vmem:[#allocation19_spill] sm:$0xff] %v4094_v56 }
 0x38a   : > { %v4096_v39 = vpop.f32.mrb[8].mxu1 }
 0x38b   : > { %5212 = vst [vmem:[#allocation20_spill] sm:$0xff] %v4096_v39  ;;  %v4098_v12 = vpop.f32.mrb[9].mxu1 }
 0x38c   : > { %5213 = vst [vmem:[#allocation21_spill] sm:$0xff] %v4098_v12  ;;  %v4100_v53 = vpop.f32.mrb[10].mxu1 }
 0x38d   : > { %5214 = vst [vmem:[#allocation22_spill] sm:$0xff] %v4100_v53  ;;  %v4102_v45 = vpop.f32.mrb[11].mxu1 }
 0x38e   : > { %5215 = vst [vmem:[#allocation23_spill] sm:$0xff] %v4102_v45 }
 0x392   : > { %v4104_v62 = vpop.f32.mrb[12].mxu1 }
 0x393   : > { %5216 = vst [vmem:[#allocation24_spill] sm:$0xff] %v4104_v62  ;;  %v4106_v57 = vpop.f32.mrb[13].mxu1 }
 0x394   : > { %5217 = vst [vmem:[#allocation25_spill] sm:$0xff] %v4106_v57  ;;  %v4108_v5 = vpop.f32.mrb[14].mxu1 }
 0x395   : > { %5218 = vst [vmem:[#allocation26_spill] sm:$0xff] %v4108_v5  ;;  %v4110_v52 = vpop.f32.mrb[15].mxu1 }
 0x396   : > { %5219 = vst [vmem:[#allocation27_spill] sm:$0xff] %v4110_v52 }
 0x39a   : > { %v2903_v33 = vpop.f32.mrb[16].mxu1 }
 0x39b   : > { %v903_v13 = vmul.f32 0.17677669, %v2903_v33  ;;  %v838_v44 = vpop.f32.mrb[17].mxu1 }
 0x39c   : > { %v2904_v40 = vpop.f32.mrb[18].mxu1  ;;  %v901_v15 = vmul.f32 0.17677669, %v838_v44 }
 0x39d   : > { %v841_v17 = vpop.f32.mrb[19].mxu1  ;;  %v4115_v18 = vsel %vm171_vm1, %v903_v13, -1e+30  ;;  %v904_v21 = vmul.f32 0.17677669, %v2904_v40 }
 0x39e   : > { %v902_v19 = vmul.f32 0.17677669, %v841_v17  ;;  %937 = vmax.xlane.f32.xlu0 %v4115_v18  ;;  %v4127_v22 = vsel %vm169_vm2, %v901_v15, -1e+30  ;;  %v3553_v15 = vld [vmem:[%s3593_s11 + $0x68] ss:$12 sps:$4 sm:$0xff]  }
 0x39f   : > { %v4133_v28 = vsel %vm172_vm3, %v904_v21, -1e+30 }
 0x3a0   : > { %v4121_v20 = vsel %vm170_vm4, %v902_v19, -1e+30 }
 0x3a1   : > { %935 = vmax.xlane.f32.xlu1 %v4121_v20 }
 0x3a2   : > { %933 = vmax.xlane.f32.xlu0 %v4127_v22  ;;  %v2907_v23 = vpop.f32.mrb[20].mxu1 }
 0x3a3   : > { %v907_v24 = vmul.f32 0.17677669, %v2907_v23  ;;  %v854_v25 = vpop.f32.mrb[21].mxu1 }
 0x3a4   : > { %v2908_v26 = vpop.f32.mrb[22].mxu1  ;;  %v905_v4 = vmul.f32 0.17677669, %v854_v25  ;;  %v5227_v25 = vld [vmem:[#allocation9_spill] sm:$0xff] }
 0x3a5   : > { %v908_v27 = vmul.f32 0.17677669, %v2908_v26  ;;  %v857_v29 = vpop.f32.mrb[23].mxu1  ;;  %v4144_v16 = vsel %vm175_vm5, %v907_v24, -1e+30 }
 0x3a6   : > { %939 = vmax.xlane.f32.xlu0 %v4133_v28  ;;  %v906_v30 = vmul.f32 0.17677669, %v857_v29  ;;  %v4157_v48 = vsel %vm173_vm7, %v905_v4, -1e+30  ;;  %v4202_v29 = vld [vmem:[%s3593_s11 + $0x34] ss:$12 sps:$4 sm:$0xff]  }
 0x3a7   : > { %v4139_v31 = vsel %vm176_vm6, %v908_v27, -1e+30  ;;  %v4197_v27 = vld [vmem:[%s3593_s11 + $0x4c] ss:$12 sps:$4 sm:$0xff]  }
 0x3a8   : > { %947 = vmax.xlane.f32.xlu1 %v4139_v31  ;;  %v4150_v59 = vsel %vm174_vm8, %v906_v30, -1e+30 }
 0x3aa   : > { %945 = vmax.xlane.f32.xlu0 %v4144_v16  ;;  %v2911_v32 = vpop.f32.mrb[24].mxu1 }
 0x3ab   : > { %v911_v63 = vmul.f32 0.17677669, %v2911_v32  ;;  %v870_v46 = vpop.f32.mrb[25].mxu1 }
 0x3ac   : > { %943 = vmax.xlane.f32.xlu1 %v4150_v59  ;;  %v2912_v14 = vpop.f32.mrb[26].mxu1  ;;  %v909_v47 = vmul.f32 0.17677669, %v870_v46 }
 0x3ad   : > { %v912_v11 = vmul.f32 0.17677669, %v2912_v14  ;;  %v873_v60 = vpop.f32.mrb[27].mxu1  ;;  %v4168_v0 = vsel %vm179_vm9, %v911_v63, -1e+30 }
 0x3ae   : > { %941 = vmax.xlane.f32.xlu0 %v4157_v48  ;;  %v910_v7 = vmul.f32 0.17677669, %v873_v60  ;;  %v4181_v17 = vsel %vm177_vm11, %v909_v47, -1e+30 }
 0x3af   : > { %v4163_v10 = vsel %vm180_vm10, %v912_v11, -1e+30  ;;  %v4218_v11 = vpop.permute.xlu1 %1224 }
 0x3b0   : > { %955 = vmax.xlane.f32.xlu1 %v4163_v10  ;;  %v4174_v58 = vsel %vm5175_vm12, %v910_v7, -1e+30  ;;  %vm5228_vm12 = vcmp.le.s32.totalorder %v3744_v36, %v5227_v25 }
 0x3b2   : > { %953 = vmax.xlane.f32.xlu0 %v4168_v0  ;;  %v2915_v33 = vpop.f32.mrb[28].mxu1 }
 0x3b3   : > { %v915_v13 = vmul.f32 0.17677669, %v2915_v33  ;;  %v886_v44 = vpop.f32.mrb[29].mxu1 }
 0x3b4   : > { %951 = vmax.xlane.f32.xlu1 %v4174_v58  ;;  %v2916_v40 = vpop.f32.mrb[30].mxu1  ;;  %v913_v24 = vmul.f32 0.17677669, %v886_v44 }
 0x3b5   : > { %v889_v19 = vpop.f32.mrb[31].mxu1  ;;  %v4187_v23 = vsel %vm183_vm13, %v915_v13, -1e+30  ;;  %v916_v30 = vmul.f32 0.17677669, %v2916_v40 }
 0x3b6   : > { %949 = vmax.xlane.f32.xlu0 %v4181_v17  ;;  %v4193_v26 = vsel %vm5228_vm12, %v913_v24, -1e+30  ;;  %v914_v4 = vmul.f32 0.17677669, %v889_v19  ;;  %vm5249_vm12 = vcmp.le.s32.totalorder %v3744_v36, %v5224_v3 }
 0x3b7   : > { %v4209_v63 = vsel %vm184_vm15, %v916_v30, -1e+30 }
 0x3b8   : > { %v4215_v14 = vsel %vm182_vm14, %v914_v4, -1e+30 }
 0x3ba   : > { %961 = vmax.xlane.f32.xlu0 %v4187_v23 }
 0x3be   : > { %957 = vmax.xlane.f32.xlu0 %v4193_v26 }
 0x3c5   : > { %1228 = vrot.lane.b32.xlu1 %v4197_v27, %s3567_s13 }
 0x3d4   : > { %1226 = vrot.lane.b32.xlu0 %v4202_v29, %s3567_s13 }
 0x3e9   : > { %963 = vmax.xlane.f32.xlu1 %v4209_v63 }
 0x3ed   : > { %959 = vmax.xlane.f32.xlu1 %v4215_v14 }
 0x42b   : > { %v938_v60 = vpop.xlane.xlu0 %937 }
 0x42c   : > { %v967_v7 = vsub.f32 %v4115_v18, %v938_v60 }
 0x42e   : > { %v985_v47 = vmul.f32 1.442695, %v967_v7  ;;  %v936_v33 = vpop.xlane.xlu1 %935 }
 0x42f   : > { %v966_v13 = vsub.f32 %v4121_v20, %v936_v33  ;;  %v934_v44 = vpop.xlane.xlu0 %933 }
 0x430   : > { %3337 = vpow2.f32 %v985_v47  ;;  %v965_v40 = vsub.f32 %v4127_v22, %v934_v44 }
 0x431   : > { %v983_v19 = vmul.f32 1.442695, %v966_v13 }
 0x432   : > { %v981_v24 = vmul.f32 1.442695, %v965_v40 }
 0x433   : > { %3339 = vpow2.f32 %v983_v19  ;;  %v940_v30 = vpop.xlane.xlu0 %939 }
 0x434   : > { %3341 = vpow2.f32 %v981_v24  ;;  %v968_v4 = vsub.f32 %v4133_v28, %v940_v30  ;;  %v4237_v28 = vld [vmem:[%s3593_s11 + $0x7c] ss:$12 sps:$4 sm:$0xff]  }
 0x435   : > { %v948_v33 = vpop.xlane.xlu1 %947 }
 0x436   : > { %v987_v12 = vmul.f32 1.442695, %v968_v4  ;;  %v972_v53 = vsub.f32 %v4139_v31, %v948_v33 }
 0x437   : > { %v946_v7 = vpop.xlane.xlu0 %945 }
 0x438   : > { %3343 = vpow2.f32 %v987_v12  ;;  %v4242_v12 = vld [vmem:[%s3593_s11 + $0x64] ss:$12 sps:$4 sm:$0xff]   ;;  %v971_v44 = vsub.f32 %v4144_v16, %v946_v7  ;;  %v995_v56 = vmul.f32 1.442695, %v972_v53 }
 0x439   : > { %v944_v40 = vpop.xlane.xlu1 %943 }
 0x43a   : > { %v4224_v18 = vpop.eup %3337  ;;  %v993_v24 = vmul.f32 1.442695, %v971_v44  ;;  %v970_v4 = vsub.f32 %v4150_v59, %v944_v40 }
 0x43b   : > { %1017 = vadd.xlane.f32.xlu1 %v4224_v18  ;;  %v942_v47 = vpop.xlane.xlu0 %941 }
 0x43c   : > { %v969_v30 = vsub.f32 %v4157_v48, %v942_v47  ;;  %3345 = vpow2.f32 %v993_v24  ;;  %v991_v55 = vmul.f32 1.442695, %v970_v4 }
 0x43d   : > { %v4227_v20 = vpop.eup %3339  ;;  %v956_v45 = vpop.xlane.xlu1 %955 }
 0x43e   : > { %v4229_v60 = vpop.eup %3341  ;;  %1015 = vadd.xlane.f32.xlu0 %v4227_v20  ;;  %v989_v43 = vmul.f32 1.442695, %v969_v30  ;;  %v976_v31 = vsub.f32 %v4163_v10, %v956_v45 }
 0x43f   : > { %1013 = vadd.xlane.f32.xlu1 %v4229_v60  ;;  %v954_v13 = vpop.xlane.xlu0 %953 }
 0x440   : > { %v975_v8 = vsub.f32 %v4168_v0, %v954_v13  ;;  %3347 = vpow2.f32 %v989_v43 }
 0x441   : > { %v952_v51 = vpop.xlane.xlu1 %951  ;;  %3349 = vpow2.f32 %v991_v55 }
 0x442   : > { %v4233_v22 = vpop.eup %3343  ;;  %v1001_v7 = vmul.f32 1.442695, %v975_v8  ;;  %3351 = vpow2.f32 %v995_v56  ;;  %v1003_v8 = vmul.f32 1.442695, %v976_v31  ;;  %v974_v55 = vsub.f32 %v4174_v58, %v952_v51  ;;  %v4322_v31 = vld [vmem:[%s3593_s11 + $0x48] ss:$12 sps:$4 sm:$0xff]  }
 0x443   : > { %1019 = vadd.xlane.f32.xlu1 %v4233_v22  ;;  %v950_v19 = vpop.xlane.xlu0 %949 }
 0x444   : > { %v973_v48 = vsub.f32 %v4181_v17, %v950_v19  ;;  %3353 = vpow2.f32 %v1001_v7  ;;  %v999_v10 = vmul.f32 1.442695, %v974_v55  ;;  %v4297_v7 = vld [vmem:[%s3593_s11 + $0x94] ss:$12 sps:$4 sm:$0xff]  }
 0x445   : > { %v4257_v53 = vpop.permute.xlu1 %1228  ;;  %v4342_v55 = vld [vmem:[%s3593_s11 + $0xa8] ss:$12 sps:$4 sm:$0xff]  }
 0x446   : > { %v997_v33 = vmul.f32 1.442695, %v973_v48  ;;  %v4255_v40 = vpop.eup %3345  ;;  %v4302_v48 = vld [vmem:[%s3593_s11 + $0xac] ss:$12 sps:$4 sm:$0xff]  }
 0x447   : > { %v962_v39 = vpop.xlane.xlu0 %961 }
 0x448   : > { %v979_v16 = vsub.f32 %v4187_v23, %v962_v39 }
 0x44a   : > { %v1009_v59 = vmul.f32 1.442695, %v979_v16  ;;  %v4261_v56 = vpop.eup %3347 }
 0x44b   : > { %v958_v47 = vpop.xlane.xlu0 %957  ;;  %v4263_v0 = vpop.eup %3349 }
 0x44c   : > { %v977_v44 = vsub.f32 %v4193_v26, %v958_v47  ;;  %3355 = vpow2.f32 %v1009_v59  ;;  %v4268_v23 = vpop.eup %3351  ;;  %v4307_v47 = vld [vmem:[%s3593_s11] ss:$12 sps:$4 sm:$0xff]   ;;  %v4312_v59 = vld [vmem:[%s3593_s11 + $0x18] ss:$12 sps:$4 sm:$0xff]  }
 0x44d   : > { %3357 = vpow2.f32 %v997_v33  ;;  %v4327_v33 = vld [vmem:[%s3593_s11 + $0x60] ss:$12 sps:$4 sm:$0xff]  }
 0x44e   : > { %v1005_v43 = vmul.f32 1.442695, %v977_v44  ;;  %v4270_v51 = vpop.eup %3353  ;;  %v4317_v44 = vld [vmem:[%s3593_s11 + $0x30] ss:$12 sps:$4 sm:$0xff]  }
 0x44f   : > { %v1227_v6 = vpop.permute.xlu0 %1226 }
 0x450   : > { %3359 = vpow2.f32 %v1005_v43  ;;  %v4332_v43 = vld [vmem:[%s3593_s11 + $0x78] ss:$12 sps:$4 sm:$0xff]  }
 0x451   : > { %3361 = vpow2.f32 %v1003_v8  ;;  %v4337_v8 = vld [vmem:[%s3593_s11 + $0x90] ss:$12 sps:$4 sm:$0xff]  }
 0x454   : > { %1232 = vrot.lane.b32.xlu1 %v4237_v28, %s3567_s13  ;;  %1230 = vrot.lane.b32.xlu0 %v4242_v12, %s3567_s13 }
 0x456   : > { %v4275_v13 = vpop.eup %3355 }
 0x457   : > { %v4277_v19 = vpop.eup %3357 }
 0x45a   : > { %v4281_v24 = vpop.eup %3359 }
 0x473   : > { %1025 = vadd.xlane.f32.xlu0 %v4255_v40 }
 0x476   : > { %v964_v39 = vpop.xlane.xlu1 %963 }
 0x477   : > { %v980_v45 = vsub.f32 %v4209_v63, %v964_v39  ;;  %1021 = vadd.xlane.f32.xlu0 %v4261_v56  ;;  %v4347_v39 = vld [vmem:[%s3593_s11 + $0x8] ss:$12 sps:$4 sm:$0xff]  }
 0x478   : > { %1023 = vadd.xlane.f32.xlu1 %v4263_v0  ;;  %5231 = vst [vmem:[#allocation3_spill] sm:$0xff] %v4347_v39 }
 0x479   : > { %v1011_v17 = vmul.f32 1.442695, %v980_v45  ;;  %v4352_v45 = vld [vmem:[%s3593_s11 + $0x20] ss:$12 sps:$4 sm:$0xff]  }
 0x47a   : > { %v960_v26 = vpop.xlane.xlu1 %959  ;;  %5232 = vst [vmem:[#allocation2_spill] sm:$0xff] %v4352_v45 }
 0x47b   : > { %3363 = vpow2.f32 %v1011_v17  ;;  %v978_v58 = vsub.f32 %v4215_v14, %v960_v26  ;;  %1027 = vadd.xlane.f32.xlu0 %v4268_v23  ;;  %v4283_v14 = vpop.eup %3361  ;;  %v3546_v17 = vld [vmem:[%s3593_s11 + $0x50] ss:$12 sps:$4 sm:$0xff]   ;;  %v3547_v26 = vld [vmem:[%s3593_s11 + $0x68] ss:$12 sps:$4 sm:$0xff]  }
 0x47c   : > { %1033 = vadd.xlane.f32.xlu1 %v4270_v51  ;;  %3365 = vpow2.f32 %v999_v10  ;;  %v4357_v10 = vld [vmem:[%s3593_s11 + $0x38] ss:$12 sps:$4 sm:$0xff]  }
 0x47d   : > { %v1007_v63 = vmul.f32 1.442695, %v978_v58  ;;  %5233 = vst [vmem:[#allocation5_spill] sm:$0xff] %v4357_v10  ;;  %v3548_v58 = vld [vmem:[%s3593_s11 + $0x80] ss:$12 sps:$4 sm:$0xff]  }
 0x47f   : > { %1041 = vadd.xlane.f32.xlu0 %v4275_v13  ;;  %3367 = vpow2.f32 %v1007_v63  ;;  %v3549_v63 = vld [vmem:[%s3593_s11 + $0x98] ss:$12 sps:$4 sm:$0xff]  }
 0x480   : > { %1029 = vadd.xlane.f32.xlu1 %v4277_v19 }
 0x483   : > { %1037 = vadd.xlane.f32.xlu0 %v4281_v24 }
 0x484   : > { %1035 = vadd.xlane.f32.xlu1 %v4283_v14 }
 0x485   : > { %v4287_v30 = vpop.eup %3363 }
 0x486   : > { %v4289_v4 = vpop.eup %3365 }
 0x487   : > { %1043 = vadd.xlane.f32.xlu0 %v4287_v30 }
 0x488   : > { %1031 = vadd.xlane.f32.xlu1 %v4289_v4 }
 0x489   : > { %v4293_v16 = vpop.eup %3367 }
 0x48c   : > { %1039 = vadd.xlane.f32.xlu1 %v4293_v16 }
 0x49d   : > { %1234 = vrot.lane.b32.xlu0 %v4297_v7, %s3567_s13  ;;  %1236 = vrot.lane.b32.xlu1 %v4302_v48, %s3567_s13 }
 0x4a1   : > { %1206 = vrot.lane.b32.xlu0 %v4307_v47, %s3567_s13  ;;  %1208 = vrot.lane.b32.xlu1 %v4312_v59, %s3567_s13 }
 0x4a5   : > { %1210 = vrot.lane.b32.xlu0 %v4317_v44, %s3567_s13  ;;  %1212 = vrot.lane.b32.xlu1 %v4322_v31, %s3567_s13 }
 0x4a9   : > { %1214 = vrot.lane.b32.xlu0 %v4327_v33, %s3567_s13  ;;  %1216 = vrot.lane.b32.xlu1 %v4332_v43, %s3567_s13 }
 0x4ad   : > { %1218 = vrot.lane.b32.xlu0 %v4337_v8, %s3567_s13  ;;  %1220 = vrot.lane.b32.xlu1 %v4342_v55, %s3567_s13 }
 0x4b1   : > { %1567 = vrot.lane.b32.xlu0 %v4347_v39, %s3567_s13  ;;  %1569 = vrot.lane.b32.xlu1 %v4352_v45, %s3567_s13 }
 0x4b5   : > { %1571 = vrot.lane.b32.xlu0 %v4357_v10, %s3567_s13  ;;  %1573 = vrot.lane.b32.xlu1 %v3546_v17, %s3567_s13 }
 0x4b9   : > { %1575 = vrot.lane.b32.xlu0 %v3547_v26, %s3567_s13  ;;  %1577 = vrot.lane.b32.xlu1 %v3548_v58, %s3567_s13 }
 0x4bd   : > { %1579 = vrot.lane.b32.xlu0 %v3549_v63, %s3567_s13  ;;  %1581 = vrot.lane.b32.xlu1 %v3550_v61, %s3567_s13 }
 0x4c8   : > { %v1018_v9 = vpop.xlane.xlu1 %1017 }
 0x4cb   : > { %v1016_v57 = vpop.xlane.xlu0 %1015 }
 0x4cc   : > { %3369 = vrcp.f32 %v1016_v57  ;;  %v1014_v52 = vpop.xlane.xlu1 %1013 }
 0x4cd   : > { %3371 = vrcp.f32 %v1014_v52  ;;  %v1272_v52 = vsel %vm249_vm0, %v4257_v53, 0 }
 0x4ce   : > { %3373 = vrcp.f32 %v1018_v9  ;;  %v1263_v9 = vsel %vm249_vm0, %v4084_v2, 0 }
 0x4cf   : > { %v1231_v2 = vpop.permute.xlu0 %1230 }
 0x4d0   : > { %v1020_v17 = vpop.xlane.xlu1 %1019 }
 0x4d1   : > { %3375 = vrcp.f32 %v1020_v17 }
 0x4d6   : > { %v3370_v62 = vpop.eup %3369 }
 0x4d7   : > { %v3372_v26 = vpop.eup %3371  ;;  %v1062_v5 = vmul.f32 %v3370_v62, %v4227_v20  ;;  %v1266_v62 = vsel %vm249_vm0, %v4218_v11, 0  ;;  %v1275_v20 = vsel %vm249_vm0, %v1231_v2, 0 }
 0x4d8   : > { %v1061_v58 = vmul.f32 %v3372_v26, %v4229_v60  ;;  %v3374_v10 = vpop.eup %3373 }
 0x4d9   : > { %v1063_v61 = vmul.f32 %v3374_v10, %v4224_v18 }
 0x4da   : > { %v1077_v63 = vpack.c.bf16 %v1062_v5, %v1061_v58  ;;  %v1269_v5 = vsel %vm249_vm0, %v1227_v6, 0 }
 0x4db   : > { %v3376_v45 = vpop.eup %3375 }
 0x4dc   : > { %v1064_v39 = vmul.f32 %v3376_v45, %v4233_v22  ;;  %2933 = vmatprep.mubr.bf16.mxu0 %v1077_v63 }
 0x4de   : > { %v1078_v57 = vpack.c.bf16 %v1064_v39, %v1063_v61 }
 0x4e0   : > { %2934 = vmatmul.mubr.bf16.vlgmr.msra.gmra.mrb[16].mxu0 %v1078_v57 }
 0x4e1   : > { %2950 = vmatpush3.bf16.xpose.msra.mxu0 %v1263_v9 }
 0x4e2   : > { %3094 = vmatprep.subr.msk.bf16.mxu0 %vm249_vm0, %v4218_v11  ;;  %v1233_v11 = vpop.permute.xlu1 %1232 }
 0x4e3   : > { %v1278_v39 = vsel %vm249_vm0, %v1233_v11, 0 }
 0x4e9   : > { %2952 = vmatpush3.bf16.xpose.msra.mxu0 %v1266_v62 }
 0x4ea   : > { %3095 = vmatprep.subr.msk.bf16.mxu0 %vm249_vm0, %v1227_v6 }
 0x4f1   : > { %2954 = vmatpush3.bf16.xpose.msra.mxu0 %v1269_v5 }
 0x4f2   : > { %3096 = vmatprep.subr.msk.bf16.mxu0 %vm249_vm0, %v4257_v53 }
 0x4f9   : > { %2956 = vmatpush3.bf16.xpose.msra.mxu0 %v1272_v52 }
 0x4fa   : > { %3097 = vmatprep.subr.msk.bf16.mxu0 %vm249_vm0, %v1231_v2 }
 0x500   : > { %v1026_v18 = vpop.xlane.xlu0 %1025 }
 0x501   : > { %2958 = vmatpush3.bf16.xpose.msra.mxu0 %v1275_v20 }
 0x502   : > { %3098 = vmatprep.subr.msk.bf16.mxu0 %vm249_vm0, %v1233_v11 }
 0x504   : > { %v1022_v60 = vpop.xlane.xlu0 %1021 }
 0x505   : > { %3377 = vrcp.f32 %v1022_v60  ;;  %v1024_v6 = vpop.xlane.xlu1 %1023 }
 0x506   : > { %3379 = vrcp.f32 %v1024_v6 }
 0x507   : > { %3381 = vrcp.f32 %v1026_v18 }
 0x508   : > { %v1028_v22 = vpop.xlane.xlu0 %1027 }
 0x509   : > { %3383 = vrcp.f32 %v1028_v22  ;;  %2960 = vmatpush3.bf16.xpose.msra.mxu0 %v1278_v39  ;;  %v1034_v53 = vpop.xlane.xlu1 %1033 }
 0x50c   : > { %v1042_v45 = vpop.xlane.xlu0 %1041 }
 0x50d   : > { %v1030_v10 = vpop.xlane.xlu1 %1029 }
 0x50f   : > { %v3378_v17 = vpop.eup %3377 }
 0x510   : > { %v3380_v26 = vpop.eup %3379  ;;  %v1038_v58 = vpop.xlane.xlu0 %1037  ;;  %v1065_v63 = vmul.f32 %v3378_v17, %v4261_v56 }
 0x511   : > { %v3382_v61 = vpop.eup %3381  ;;  %v1036_v57 = vpop.xlane.xlu1 %1035  ;;  %v1066_v9 = vmul.f32 %v3380_v26, %v4263_v0 }
 0x512   : > { %3385 = vrcp.f32 %v1036_v57  ;;  %v1067_v2 = vmul.f32 %v3382_v61, %v4255_v40 }
 0x513   : > { %v3384_v62 = vpop.eup %3383  ;;  %v1079_v5 = vpack.c.bf16 %v1066_v9, %v1065_v63  ;;  %3387 = vrcp.f32 %v1030_v10 }
 0x514   : > { %v1044_v52 = vpop.xlane.xlu0 %1043  ;;  %v1068_v18 = vmul.f32 %v3384_v62, %v4268_v23  ;;  %3389 = vrcp.f32 %v1034_v53 }
 0x515   : > { %2937 = vmatprep.mubr.bf16.mxu0 %v1079_v5  ;;  %v1032_v20 = vpop.xlane.xlu1 %1031 }
 0x516   : > { %3391 = vrcp.f32 %v1032_v20  ;;  %v1080_v11 = vpack.c.bf16 %v1068_v18, %v1067_v2 }
 0x517   : > { %3393 = vrcp.f32 %v1038_v58 }
 0x518   : > { %2938 = vmatmul.mubr.bf16.gmra.mrb[20].mxu0 %v1080_v11  ;;  %v1235_v56 = vpop.permute.xlu0 %1234 }
 0x519   : > { %v1040_v60 = vpop.xlane.xlu1 %1039  ;;  %3099 = vmatprep.subr.msk.bf16.mxu0 %vm249_vm0, %v1235_v56  ;;  %v1281_v0 = vsel %vm249_vm0, %v1235_v56, 0  ;;  %v3551_v56 = vld [vmem:[%s3593_s11 + $0x1c] ss:$12 sps:$4 sm:$0xff]  }
 0x51a   : > { %3395 = vrcp.f32 %v1040_v60  ;;  %2962 = vmatpush3.bf16.xpose.msra.mxu0 %v1281_v0  ;;  %1706 = vrot.lane.b32.xlu1 %v3551_v56, %s3568_s14  ;;  %v3552_v60 = vld [vmem:[%s3593_s11 + $0x4] ss:$12 sps:$4 sm:$0xff]  }
 0x51b   : > { %3397 = vrcp.f32 %v1044_v52  ;;  %1704 = vrot.lane.b32.xlu0 %v3552_v60, %s3568_s14 }
 0x51c   : > { %v3386_v6 = vpop.eup %3385  ;;  %3399 = vrcp.f32 %v1042_v45 }
 0x51d   : > { %v1237_v40 = vpop.permute.xlu1 %1236  ;;  %v3388_v23 = vpop.eup %3387  ;;  %v1072_v10 = vmul.f32 %v3386_v6, %v4283_v14 }
 0x51e   : > { %3100 = vmatprep.subr.msk.bf16.mxu0 %vm249_vm0, %v1237_v40  ;;  %v3390_v22 = vpop.eup %3389  ;;  %v1284_v39 = vsel %vm249_vm0, %v1237_v40, 0  ;;  %v1069_v17 = vmul.f32 %v3388_v23, %v4277_v19 }
 0x51f   : > { %v1071_v63 = vmul.f32 %v3390_v22, %v4270_v51  ;;  %v1207_v51 = vpop.permute.xlu0 %1206 }
 0x520   : > { %v3392_v53 = vpop.eup %3391 }
 0x521   : > { %v1070_v26 = vmul.f32 %v3392_v53, %v4289_v4  ;;  %v3394_v58 = vpop.eup %3393  ;;  %v1082_v57 = vpack.c.bf16 %v1072_v10, %v1071_v63  ;;  %v1209_v18 = vpop.permute.xlu1 %1208 }
 0x522   : > { %2964 = vmatpush3.bf16.xpose.msra.mxu0 %v1284_v39  ;;  %v1073_v62 = vmul.f32 %v3394_v58, %v4281_v24 }
 0x523   : > { %v1081_v61 = vpack.c.bf16 %v1070_v26, %v1069_v17  ;;  %v1211_v20 = vpop.permute.xlu0 %1210 }
 0x524   : > { %v3396_v45 = vpop.eup %3395 }
 0x525   : > { %v3398_v9 = vpop.eup %3397  ;;  %2941 = vmatprep.mubr.bf16.mxu0 %v1081_v61  ;;  %v1074_v5 = vmul.f32 %v3396_v45, %v4293_v16  ;;  %v1213_v24 = vpop.permute.xlu1 %1212 }
 0x526   : > { %2942 = vmatmul.mubr.bf16.gmra.mrb[24].mxu0 %v1082_v57  ;;  %v3400_v52 = vpop.eup %3399  ;;  %v1076_v19 = vmul.f32 %v3398_v9, %v4287_v30 }
 0x527   : > { %v1083_v14 = vpack.c.bf16 %v1074_v5, %v1073_v62  ;;  %v1075_v4 = vmul.f32 %v3400_v52, %v4275_v13  ;;  %v1215_v16 = vpop.permute.xlu0 %1214 }
 0x529   : > { %2945 = vmatprep.mubr.bf16.mxu0 %v1083_v14  ;;  %v1084_v2 = vpack.c.bf16 %v1076_v19, %v1075_v4  ;;  %v1217_v13 = vpop.permute.xlu1 %1216 }
 0x52b   : > { %v1219_v30 = vpop.permute.xlu0 %1218 }
 0x52d   : > { %v1221_v11 = vpop.permute.xlu1 %1220 }
 0x52e   : > { %2946 = vmatmul.mubr.bf16.gmra.mrb[28].mxu0 %v1084_v2 }
 0x52f   : > { %2965 = vmatprep.mubr.msk.bf16.mxu0 %vm249_vm0, %v1207_v51  ;;  %v1568_v40 = vpop.permute.xlu0 %1567 }
 0x530   : > { %2981 = vmatprep.subr.bf16.mxu1 %v1568_v40 }
 0x531   : > { %v1570_v22 = vpop.permute.xlu1 %1569  ;;  %2982 = vmatpush3.bf16.msra.mxu1 %v1568_v40 }
 0x532   : > { %2983 = vmatprep.subr.bf16.mxu1 %v1570_v22 }
 0x533   : > { %v1572_v17 = vpop.permute.xlu0 %1571 }
 0x535   : > { %2984 = vmatpush3.bf16.msra.mxu1 %v1570_v22  ;;  %v1574_v26 = vpop.permute.xlu1 %1573 }
 0x536   : > { %2966 = vmatmul.mubr.msk.bf16.vlgmr.msra.gmra.mrb[32].mxu0 %vm249_vm0, %v1209_v18  ;;  %2985 = vmatprep.subr.bf16.mxu1 %v1572_v17 }
 0x537   : > { %2969 = vmatprep.mubr.msk.bf16.mxu0 %vm249_vm0, %v1211_v20  ;;  %v1576_v58 = vpop.permute.xlu0 %1575 }
 0x539   : > { %2986 = vmatpush3.bf16.msra.mxu1 %v1572_v17  ;;  %v1578_v63 = vpop.permute.xlu1 %1577 }
 0x53a   : > { %2987 = vmatprep.subr.bf16.mxu1 %v1574_v26 }
 0x53b   : > { %v1580_v61 = vpop.permute.xlu0 %1579 }
 0x53d   : > { %2988 = vmatpush3.bf16.msra.mxu1 %v1574_v26  ;;  %v1582_v45 = vpop.permute.xlu1 %1581 }
 0x53e   : > { %2970 = vmatmul.mubr.msk.bf16.gmra.mrb[36].mxu0 %vm249_vm0, %v1213_v24  ;;  %2989 = vmatprep.subr.bf16.mxu1 %v1576_v58 }
 0x53f   : > { %2973 = vmatprep.mubr.msk.bf16.mxu0 %vm249_vm0, %v1215_v16 }
 0x541   : > { %2990 = vmatpush3.bf16.msra.mxu1 %v1576_v58 }
 0x542   : > { %2991 = vmatprep.subr.bf16.mxu1 %v1578_v63 }
 0x545   : > { %2992 = vmatpush3.bf16.msra.mxu1 %v1578_v63 }
 0x546   : > { %2974 = vmatmul.mubr.msk.bf16.gmra.mrb[40].mxu0 %vm249_vm0, %v1217_v13  ;;  %2993 = vmatprep.subr.bf16.mxu1 %v1580_v61 }
 0x547   : > { %2977 = vmatprep.mubr.msk.bf16.mxu0 %vm249_vm0, %v1219_v30 }
 0x549   : > { %2994 = vmatpush3.bf16.msra.mxu1 %v1580_v61 }
 0x54a   : > { %2995 = vmatprep.subr.bf16.mxu1 %v1582_v45 }
 0x54d   : > { %2996 = vmatpush3.bf16.msra.mxu1 %v1582_v45 }
 0x54e   : > { %2978 = vmatmul.mubr.msk.bf16.gmra.mrb[44].mxu0 %vm249_vm0, %v1221_v11 }
 0x58d   : > { %v4431_v57 = vpop.permute.xlu0 %1704 }
 0x58e   : > { %3101 = vmatprep.subr.msk.bf16.mxu1 %vm249_vm0, %v4431_v57 }
 0x5b3   : > { %v4419_v0 = vpop.f32.mrb[16].mxu0 }
 0x5b4   : > { %5234 = vst [vmem:[#allocation4_spill] sm:$0xff] %v4419_v0  ;;  %v4421_v6 = vpop.f32.mrb[17].mxu0 }
 0x5b5   : > { %5235 = vst [vmem:[#allocation7_spill] sm:$0xff] %v4421_v6  ;;  %v4423_v23 = vpop.f32.mrb[18].mxu0 }
 0x5b6   : > { %v4427_v53 = vpop.f32.mrb[19].mxu0 }
 0x5b7   : > { %5236 = vst [vmem:[#allocation6_spill] sm:$0xff] %v4427_v53 }
 0x5eb   : > { %v4435_v9 = vpop.f32.mrb[20].mxu0 }
 0x5ec   : > { %5237 = vst [vmem:[#allocation8_spill] sm:$0xff] %v4435_v9  ;;  %v4437_v62 = vpop.f32.mrb[21].mxu0 }
 0x5ed   : > { %5238 = vst [vmem:[#allocation9_spill] sm:$0xff] %v4437_v62  ;;  %v4439_v5 = vpop.f32.mrb[22].mxu0 }
 0x5ee   : > { %5239 = vst [vmem:[#allocation10_spill] sm:$0xff] %v4439_v5  ;;  %v4443_v14 = vpop.f32.mrb[23].mxu0 }
 0x5ef   : > { %5240 = vst [vmem:[#allocation11_spill] sm:$0xff] %v4443_v14 }
 0x5f9   : > { %v4447_v4 = vpop.f32.mrb[24].mxu0 }
 0x5fa   : > { %5241 = vst [vmem:[#allocation28_spill] sm:$0xff] %v4447_v4  ;;  %v4449_v2 = vpop.f32.mrb[25].mxu0 }
 0x5fb   : > { %5242 = vst [vmem:[#allocation29_spill] sm:$0xff] %v4449_v2  ;;  %v4451_v51 = vpop.f32.mrb[26].mxu0 }
 0x5fc   : > { %5243 = vst [vmem:[#allocation30_spill] sm:$0xff] %v4451_v51  ;;  %v4455_v20 = vpop.f32.mrb[27].mxu0 }
 0x5fd   : > { %5244 = vst [vmem:[#allocation31_spill] sm:$0xff] %v4455_v20 }
 0x601   : > { %v4459_v16 = vpop.f32.mrb[28].mxu0 }
 0x602   : > { %5245 = vst [vmem:[#allocation32_spill] sm:$0xff] %v4459_v16  ;;  %v4461_v13 = vpop.f32.mrb[29].mxu0 }
 0x603   : > { %5246 = vst [vmem:[#allocation33_spill] sm:$0xff] %v4461_v13  ;;  %v4463_v30 = vpop.f32.mrb[30].mxu0 }
 0x604   : > { %5247 = vst [vmem:[#allocation34_spill] sm:$0xff] %v4463_v30  ;;  %v4467_v56 = vpop.f32.mrb[31].mxu0 }
 0x605   : > { %5248 = vst [vmem:[#allocation35_spill] sm:$0xff] %v4467_v56 }
 0x609   : > { %v2967_v40 = vpop.f32.mrb[32].mxu0 }
 0x60a   : > { %v1385_v22 = vmul.f32 0.17677669, %v2967_v40  ;;  %v1320_v17 = vpop.f32.mrb[33].mxu0 }
 0x60b   : > { %v2968_v26 = vpop.f32.mrb[34].mxu0  ;;  %v1383_v58 = vmul.f32 0.17677669, %v1320_v17 }
 0x60c   : > { %v1323_v63 = vpop.f32.mrb[35].mxu0  ;;  %v4474_v61 = vsel %vm171_vm1, %v1385_v22, -1e+30  ;;  %v1386_v60 = vmul.f32 0.17677669, %v2968_v26 }
 0x60d   : > { %v1384_v45 = vmul.f32 0.17677669, %v1323_v63  ;;  %1419 = vmax.xlane.f32.xlu0 %v4474_v61  ;;  %v4486_v40 = vsel %vm169_vm2, %v1383_v58, -1e+30 }
 0x60f   : > { %v4480_v24 = vsel %vm170_vm4, %v1384_v45, -1e+30  ;;  %v1402_v45 = vsel %vm172_vm3, %v1386_v60, -1e+30 }
 0x610   : > { %1417 = vmax.xlane.f32.xlu1 %v4480_v24 }
 0x611   : > { %1415 = vmax.xlane.f32.xlu0 %v4486_v40  ;;  %v2971_v22 = vpop.f32.mrb[36].mxu0 }
 0x612   : > { %v1389_v17 = vmul.f32 0.17677669, %v2971_v22  ;;  %v1336_v63 = vpop.f32.mrb[37].mxu0 }
 0x613   : > { %v2972_v10 = vpop.f32.mrb[38].mxu0 }
 0x614   : > { %v1390_v11 = vmul.f32 0.17677669, %v2972_v10  ;;  %v1339_v18 = vpop.f32.mrb[39].mxu0  ;;  %v4500_v58 = vsel %vm175_vm5, %v1389_v17, -1e+30 }
 0x615   : > { %1421 = vmax.xlane.f32.xlu0 %v1402_v45  ;;  %v1388_v26 = vmul.f32 0.17677669, %v1339_v18  ;;  %v1387_v10 = vmul.f32 0.17677669, %v1336_v63 }
 0x616   : > { %v4495_v52 = vsel %vm176_vm6, %v1390_v11, -1e+30 }
 0x617   : > { %1429 = vmax.xlane.f32.xlu1 %v4495_v52  ;;  %v4506_v60 = vsel %vm174_vm8, %v1388_v26, -1e+30  ;;  %v4513_v17 = vsel %vm173_vm7, %v1387_v10, -1e+30 }
 0x619   : > { %1427 = vmax.xlane.f32.xlu0 %v4500_v58  ;;  %v2975_v18 = vpop.f32.mrb[40].mxu0 }
 0x61a   : > { %v1393_v22 = vmul.f32 0.17677669, %v2975_v18  ;;  %v1352_v19 = vpop.f32.mrb[41].mxu0 }
 0x61b   : > { %1425 = vmax.xlane.f32.xlu1 %v4506_v60  ;;  %v2976_v11 = vpop.f32.mrb[42].mxu0 }
 0x61c   : > { %v1394_v39 = vmul.f32 0.17677669, %v2976_v11  ;;  %v1355_v63 = vpop.f32.mrb[43].mxu0  ;;  %v4524_v18 = vsel %vm179_vm9, %v1393_v22, -1e+30 }
 0x61d   : > { %1423 = vmax.xlane.f32.xlu0 %v4513_v17  ;;  %v1392_v13 = vmul.f32 0.17677669, %v1355_v63  ;;  %v1391_v11 = vmul.f32 0.17677669, %v1352_v19 }
 0x61e   : > { %v4519_v26 = vsel %vm180_vm10, %v1394_v39, -1e+30 }
 0x61f   : > { %1437 = vmax.xlane.f32.xlu1 %v4519_v26  ;;  %v4530_v10 = vsel %vm5249_vm12, %v1392_v13, -1e+30  ;;  %v4537_v22 = vsel %vm177_vm11, %v1391_v11, -1e+30  ;;  %vm5250_vm12 = vcmp.le.s32.totalorder %v3744_v36, %v5227_v25 }
 0x621   : > { %1435 = vmax.xlane.f32.xlu0 %v4524_v18  ;;  %v2979_v63 = vpop.f32.mrb[44].mxu0 }
 0x622   : > { %v1397_v56 = vmul.f32 0.17677669, %v2979_v63  ;;  %v1368_v2 = vpop.f32.mrb[45].mxu0 }
 0x623   : > { %1433 = vmax.xlane.f32.xlu1 %v4530_v10  ;;  %v2980_v39 = vpop.f32.mrb[46].mxu0  ;;  %v1395_v13 = vmul.f32 0.17677669, %v1368_v2 }
 0x624   : > { %v1371_v20 = vpop.f32.mrb[47].mxu0  ;;  %v4543_v19 = vsel %vm183_vm13, %v1397_v56, -1e+30  ;;  %v1398_v11 = vmul.f32 0.17677669, %v2980_v39 }
 0x625   : > { %1431 = vmax.xlane.f32.xlu0 %v4537_v22  ;;  %v4549_v63 = vsel %vm5250_vm12, %v1395_v13, -1e+30  ;;  %v1396_v6 = vmul.f32 0.17677669, %v1371_v20 }
 0x626   : > { %v4559_v2 = vsel %vm184_vm15, %v1398_v11, -1e+30 }
 0x627   : > { %v4565_v56 = vsel %vm182_vm14, %v1396_v6, -1e+30 }
 0x629   : > { %1443 = vmax.xlane.f32.xlu0 %v4543_v19 }
 0x62d   : > { %1439 = vmax.xlane.f32.xlu0 %v4549_v63 }
 0x634   : > { %1710 = vrot.lane.b32.xlu1 %v4197_v27, %s3568_s14  ;;  %v4568_v27 = vpop.permute.xlu1 %1706 }
 0x643   : > { %1708 = vrot.lane.b32.xlu0 %v4202_v29, %s3568_s14 }
 0x658   : > { %1445 = vmax.xlane.f32.xlu1 %v4559_v2 }
 0x65c   : > { %1441 = vmax.xlane.f32.xlu1 %v4565_v56 }
 0x69a   : > { %v1420_v13 = vpop.xlane.xlu0 %1419 }
 0x69b   : > { %v1449_v29 = vsub.f32 %v4474_v61, %v1420_v13 }
 0x69d   : > { %v1467_v20 = vmul.f32 1.442695, %v1449_v29  ;;  %v1418_v39 = vpop.xlane.xlu1 %1417 }
 0x69e   : > { %v1448_v53 = vsub.f32 %v4480_v24, %v1418_v39  ;;  %v1416_v11 = vpop.xlane.xlu0 %1415 }
 0x69f   : > { %3401 = vpow2.f32 %v1467_v20  ;;  %v1447_v16 = vsub.f32 %v4486_v40, %v1416_v11 }
 0x6a0   : > { %v1465_v30 = vmul.f32 1.442695, %v1448_v53 }
 0x6a1   : > { %v1463_v4 = vmul.f32 1.442695, %v1447_v16 }
 0x6a2   : > { %3403 = vpow2.f32 %v1465_v30  ;;  %v1422_v6 = vpop.xlane.xlu0 %1421 }
 0x6a3   : > { %3405 = vpow2.f32 %v1463_v4  ;;  %v1450_v51 = vsub.f32 %v1402_v45, %v1422_v6 }
 0x6a5   : > { %v1469_v9 = vmul.f32 1.442695, %v1450_v51  ;;  %v1430_v51 = vpop.xlane.xlu1 %1429 }
 0x6a6   : > { %v1428_v4 = vpop.xlane.xlu0 %1427  ;;  %v1454_v6 = vsub.f32 %v4495_v52, %v1430_v51 }
 0x6a7   : > { %3407 = vpow2.f32 %v1469_v9  ;;  %v1453_v16 = vsub.f32 %v4500_v58, %v1428_v4 }
 0x6a8   : > { %v1477_v14 = vmul.f32 1.442695, %v1454_v6 }
 0x6a9   : > { %v4573_v5 = vpop.eup %3401  ;;  %v1426_v30 = vpop.xlane.xlu1 %1425  ;;  %v1475_v45 = vmul.f32 1.442695, %v1453_v16 }
 0x6aa   : > { %1499 = vadd.xlane.f32.xlu1 %v4573_v5  ;;  %v1424_v9 = vpop.xlane.xlu0 %1423  ;;  %v1452_v20 = vsub.f32 %v4506_v60, %v1426_v30 }
 0x6ab   : > { %v1451_v29 = vsub.f32 %v4513_v17, %v1424_v9  ;;  %3409 = vpow2.f32 %v1475_v45 }
 0x6ac   : > { %v4576_v61 = vpop.eup %3403  ;;  %v1473_v62 = vmul.f32 1.442695, %v1452_v20 }
 0x6ad   : > { %v4578_v13 = vpop.eup %3405  ;;  %1497 = vadd.xlane.f32.xlu0 %v4576_v61  ;;  %v1438_v39 = vpop.xlane.xlu1 %1437 }
 0x6ae   : > { %1495 = vadd.xlane.f32.xlu1 %v4578_v13  ;;  %v1436_v24 = vpop.xlane.xlu0 %1435  ;;  %v1458_v52 = vsub.f32 %v4519_v26, %v1438_v39 }
 0x6b1   : > { %v4582_v53 = vpop.eup %3407  ;;  %v1434_v0 = vpop.xlane.xlu1 %1433 }
 0x6b2   : > { %1501 = vadd.xlane.f32.xlu1 %v4582_v53  ;;  %v1432_v40 = vpop.xlane.xlu0 %1431 }
 0x6b3   : > { %v1455_v17 = vsub.f32 %v4537_v22, %v1432_v40  ;;  %v1456_v22 = vsub.f32 %v4530_v10, %v1434_v0 }
 0x6b5   : > { %v1479_v51 = vmul.f32 1.442695, %v1455_v17  ;;  %v4598_v30 = vpop.eup %3409  ;;  %v1481_v40 = vmul.f32 1.442695, %v1456_v22 }
 0x6b6   : > { %v1444_v11 = vpop.xlane.xlu0 %1443 }
 0x6b7   : > { %v1461_v58 = vsub.f32 %v4543_v19, %v1444_v11  ;;  %v1485_v19 = vmul.f32 1.442695, %v1458_v52 }
 0x6b9   : > { %v1491_v60 = vmul.f32 1.442695, %v1461_v58 }
 0x6ba   : > { %v1440_v9 = vpop.xlane.xlu0 %1439 }
 0x6bb   : > { %v1459_v16 = vsub.f32 %v4549_v63, %v1440_v9 }
 0x6c3   : > { %1714 = vrot.lane.b32.xlu1 %v4237_v28, %s3568_s14  ;;  %1712 = vrot.lane.b32.xlu0 %v4242_v12, %s3568_s14  ;;  %v1471_v28 = vmul.f32 1.442695, %v1451_v29  ;;  %v1457_v12 = vsub.f32 %v4524_v18, %v1436_v24  ;;  %v4600_v18 = vpop.permute.xlu1 %1710 }
 0x6c5   : > { %3411 = vpow2.f32 %v1471_v28  ;;  %v1483_v4 = vmul.f32 1.442695, %v1457_v12 }
 0x6c6   : > { %3413 = vpow2.f32 %v1473_v62  ;;  %v1487_v62 = vmul.f32 1.442695, %v1459_v16 }
 0x6c7   : > { %3415 = vpow2.f32 %v1477_v14 }
 0x6c8   : > { %3417 = vpow2.f32 %v1483_v4 }
 0x6c9   : > { %3419 = vpow2.f32 %v1491_v60 }
 0x6ca   : > { %3421 = vpow2.f32 %v1479_v51 }
 0x6cb   : > { %3423 = vpow2.f32 %v1487_v62 }
 0x6cc   : > { %3425 = vpow2.f32 %v1485_v19  ;;  %v1745_v19 = vsel %vm249_vm0, %v4431_v57, 0 }
 0x6cf   : > { %v4604_v14 = vpop.eup %3411 }
 0x6d0   : > { %v4606_v63 = vpop.eup %3413 }
 0x6d1   : > { %v4611_v29 = vpop.eup %3415 }
 0x6d2   : > { %v4613_v0 = vpop.eup %3417 }
 0x6d3   : > { %v4618_v39 = vpop.eup %3419 }
 0x6d4   : > { %v4620_v11 = vpop.eup %3421 }
 0x6d5   : > { %v4624_v6 = vpop.eup %3423 }
 0x6d6   : > { %v4626_v28 = vpop.eup %3425 }
 0x6e2   : > { %1507 = vadd.xlane.f32.xlu0 %v4598_v30 }
 0x6e5   : > { %v1446_v24 = vpop.xlane.xlu1 %1445 }
 0x6e6   : > { %v1462_v26 = vsub.f32 %v4559_v2, %v1446_v24  ;;  %1503 = vadd.xlane.f32.xlu0 %v4604_v14 }
 0x6e7   : > { %1505 = vadd.xlane.f32.xlu1 %v4606_v63 }
 0x6e8   : > { %v1493_v45 = vmul.f32 1.442695, %v1462_v26 }
 0x6e9   : > { %v1442_v20 = vpop.xlane.xlu1 %1441 }
 0x6ea   : > { %3427 = vpow2.f32 %v1493_v45  ;;  %v1460_v10 = vsub.f32 %v4565_v56, %v1442_v20  ;;  %1509 = vadd.xlane.f32.xlu0 %v4611_v29 }
 0x6eb   : > { %1515 = vadd.xlane.f32.xlu1 %v4613_v0  ;;  %3429 = vpow2.f32 %v1481_v40 }
 0x6ec   : > { %v1489_v2 = vmul.f32 1.442695, %v1460_v10 }
 0x6ee   : > { %1523 = vadd.xlane.f32.xlu0 %v4618_v39  ;;  %3431 = vpow2.f32 %v1489_v2 }
 0x6ef   : > { %1511 = vadd.xlane.f32.xlu1 %v4620_v11 }
 0x6f2   : > { %1519 = vadd.xlane.f32.xlu0 %v4624_v6 }
 0x6f3   : > { %1517 = vadd.xlane.f32.xlu1 %v4626_v28 }
 0x6f4   : > { %v4630_v56 = vpop.eup %3427 }
 0x6f5   : > { %v4632_v12 = vpop.eup %3429 }
 0x6f6   : > { %1525 = vadd.xlane.f32.xlu0 %v4630_v56 }
 0x6f7   : > { %1513 = vadd.xlane.f32.xlu1 %v4632_v12 }
 0x6f8   : > { %v4636_v58 = vpop.eup %3431 }
 0x6fb   : > { %1521 = vadd.xlane.f32.xlu1 %v4636_v58 }
 0x70c   : > { %1716 = vrot.lane.b32.xlu0 %v4297_v7, %s3568_s14  ;;  %1718 = vrot.lane.b32.xlu1 %v4302_v48, %s3568_s14  ;;  %v5251_v7 = vld [vmem:[#allocation3_spill] sm:$0xff]  ;;  %v5252_v48 = vld [vmem:[#allocation2_spill] sm:$0xff] }
 0x710   : > { %1688 = vrot.lane.b32.xlu0 %v4307_v47, %s3568_s14  ;;  %1690 = vrot.lane.b32.xlu1 %v4312_v59, %s3568_s14  ;;  %v5253_v47 = vld [vmem:[#allocation5_spill] sm:$0xff]  ;;  %v1709_v59 = vpop.permute.xlu0 %1708 }
 0x714   : > { %1692 = vrot.lane.b32.xlu0 %v4317_v44, %s3568_s14  ;;  %1694 = vrot.lane.b32.xlu1 %v4322_v31, %s3568_s14 }
 0x718   : > { %1696 = vrot.lane.b32.xlu0 %v4327_v33, %s3568_s14  ;;  %1698 = vrot.lane.b32.xlu1 %v4332_v43, %s3568_s14 }
 0x71c   : > { %1700 = vrot.lane.b32.xlu0 %v4337_v8, %s3568_s14  ;;  %1702 = vrot.lane.b32.xlu1 %v4342_v55, %s3568_s14 }
 0x720   : > { %2049 = vrot.lane.b32.xlu0 %v5251_v7, %s3568_s14  ;;  %2051 = vrot.lane.b32.xlu1 %v5252_v48, %s3568_s14 }
 0x724   : > { %2053 = vrot.lane.b32.xlu0 %v5253_v47, %s3568_s14 }
 0x737   : > { %v1500_v44 = vpop.xlane.xlu1 %1499 }
 0x73a   : > { %v1498_v31 = vpop.xlane.xlu0 %1497 }
 0x73b   : > { %3433 = vrcp.f32 %v1498_v31  ;;  %v1496_v33 = vpop.xlane.xlu1 %1495 }
 0x73c   : > { %3435 = vrcp.f32 %v1496_v33 }
 0x73d   : > { %3437 = vrcp.f32 %v1500_v44 }
 0x73e   : > { %v1713_v57 = vpop.permute.xlu0 %1712 }
 0x73f   : > { %v1502_v43 = vpop.xlane.xlu1 %1501 }
 0x740   : > { %3439 = vrcp.f32 %v1502_v43 }
 0x745   : > { %v3434_v8 = vpop.eup %3433 }
 0x746   : > { %v3436_v55 = vpop.eup %3435  ;;  %v1544_v4 = vmul.f32 %v3434_v8, %v4576_v61  ;;  %v1748_v61 = vsel %vm249_vm0, %v4568_v27, 0 }
 0x747   : > { %v1543_v17 = vmul.f32 %v3436_v55, %v4578_v13  ;;  %v3438_v9 = vpop.eup %3437  ;;  %v1754_v13 = vsel %vm249_vm0, %v4600_v18, 0 }
 0x748   : > { %v1545_v52 = vmul.f32 %v3438_v9, %v4573_v5  ;;  %v1751_v5 = vsel %vm249_vm0, %v1709_v59, 0 }
 0x749   : > { %v1559_v60 = vpack.c.bf16 %v1544_v4, %v1543_v17 }
 0x74a   : > { %v3440_v16 = vpop.eup %3439 }
 0x74b   : > { %v1546_v51 = vmul.f32 %v3440_v16, %v4582_v53  ;;  %2997 = vmatprep.mubr.bf16.mxu1 %v1559_v60  ;;  %v1757_v53 = vsel %vm249_vm0, %v1713_v57, 0 }
 0x74d   : > { %v1560_v62 = vpack.c.bf16 %v1546_v51, %v1545_v52 }
 0x74f   : > { %2998 = vmatmul.mubr.bf16.vlgmr.msra.gmra.mrb[32].mxu1 %v1560_v62 }
 0x750   : > { %3014 = vmatpush3.bf16.xpose.msra.mxu1 %v1745_v19 }
 0x751   : > { %3102 = vmatprep.subr.msk.bf16.mxu1 %vm249_vm0, %v4568_v27  ;;  %v1715_v27 = vpop.permute.xlu1 %1714 }
 0x752   : > { %v1760_v40 = vsel %vm249_vm0, %v1715_v27, 0 }
 0x758   : > { %3016 = vmatpush3.bf16.xpose.msra.mxu1 %v1748_v61 }
 0x759   : > { %3103 = vmatprep.subr.msk.bf16.mxu1 %vm249_vm0, %v1709_v59 }
 0x760   : > { %3018 = vmatpush3.bf16.xpose.msra.mxu1 %v1751_v5 }
 0x761   : > { %3104 = vmatprep.subr.msk.bf16.mxu1 %vm249_vm0, %v4600_v18 }
 0x768   : > { %3020 = vmatpush3.bf16.xpose.msra.mxu1 %v1754_v13 }
 0x769   : > { %3105 = vmatprep.subr.msk.bf16.mxu1 %vm249_vm0, %v1713_v57 }
 0x76f   : > { %v1508_v22 = vpop.xlane.xlu0 %1507 }
 0x770   : > { %3022 = vmatpush3.bf16.xpose.msra.mxu1 %v1757_v53 }
 0x771   : > { %3106 = vmatprep.subr.msk.bf16.mxu1 %vm249_vm0, %v1715_v27 }
 0x773   : > { %v1504_v24 = vpop.xlane.xlu0 %1503 }
 0x774   : > { %3441 = vrcp.f32 %v1504_v24  ;;  %v1506_v26 = vpop.xlane.xlu1 %1505 }
 0x775   : > { %3443 = vrcp.f32 %v1506_v26 }
 0x776   : > { %3445 = vrcp.f32 %v1508_v22 }
 0x777   : > { %v1510_v45 = vpop.xlane.xlu0 %1509 }
 0x778   : > { %3447 = vrcp.f32 %v1510_v45  ;;  %3024 = vmatpush3.bf16.xpose.msra.mxu1 %v1760_v40  ;;  %v1516_v18 = vpop.xlane.xlu1 %1515 }
 0x77b   : > { %v1524_v20 = vpop.xlane.xlu0 %1523 }
 0x77c   : > { %v1512_v10 = vpop.xlane.xlu1 %1511 }
 0x77e   : > { %v3442_v2 = vpop.eup %3441 }
 0x77f   : > { %v3444_v7 = vpop.eup %3443  ;;  %v1520_v48 = vpop.xlane.xlu0 %1519  ;;  %v1547_v47 = vmul.f32 %v3442_v2, %v4604_v14 }
 0x780   : > { %v3446_v59 = vpop.eup %3445  ;;  %v1518_v44 = vpop.xlane.xlu1 %1517  ;;  %v1548_v31 = vmul.f32 %v3444_v7, %v4606_v63 }
 0x781   : > { %3449 = vrcp.f32 %v1518_v44  ;;  %v1549_v55 = vmul.f32 %v3446_v59, %v4598_v30 }
 0x782   : > { %v3448_v33 = vpop.eup %3447  ;;  %v1561_v43 = vpack.c.bf16 %v1548_v31, %v1547_v47  ;;  %3451 = vrcp.f32 %v1512_v10 }
 0x783   : > { %v1526_v8 = vpop.xlane.xlu0 %1525  ;;  %v1550_v4 = vmul.f32 %v3448_v33, %v4611_v29  ;;  %3453 = vrcp.f32 %v1516_v18 }
 0x784   : > { %3001 = vmatprep.mubr.bf16.mxu1 %v1561_v43  ;;  %v1514_v17 = vpop.xlane.xlu1 %1513 }
 0x785   : > { %3455 = vrcp.f32 %v1514_v17  ;;  %v1562_v9 = vpack.c.bf16 %v1550_v4, %v1549_v55 }
 0x786   : > { %3457 = vrcp.f32 %v1520_v48 }
 0x787   : > { %3002 = vmatmul.mubr.bf16.gmra.mrb[36].mxu1 %v1562_v9  ;;  %v1717_v14 = vpop.permute.xlu0 %1716 }
 0x788   : > { %v1522_v60 = vpop.xlane.xlu1 %1521  ;;  %v1763_v63 = vsel %vm249_vm0, %v1717_v14, 0  ;;  %3107 = vmatprep.subr.msk.bf16.mxu1 %vm249_vm0, %v1717_v14 }
 0x789   : > { %3459 = vrcp.f32 %v1522_v60  ;;  %3026 = vmatpush3.bf16.xpose.msra.mxu1 %v1763_v63 }
 0x78a   : > { %3461 = vrcp.f32 %v1526_v8 }
 0x78b   : > { %v3450_v16 = vpop.eup %3449  ;;  %3463 = vrcp.f32 %v1524_v20 }
 0x78c   : > { %v1719_v30 = vpop.permute.xlu1 %1718  ;;  %v3452_v29 = vpop.eup %3451  ;;  %v1554_v19 = vmul.f32 %v3450_v16, %v4626_v28 }
 0x78d   : > { %3108 = vmatprep.subr.msk.bf16.mxu1 %vm249_vm0, %v1719_v30  ;;  %v3454_v52 = vpop.eup %3453  ;;  %v1766_v51 = vsel %vm249_vm0, %v1719_v30, 0  ;;  %v1551_v61 = vmul.f32 %v3452_v29, %v4620_v11 }
 0x78e   : > { %v1553_v57 = vmul.f32 %v3454_v52, %v4613_v0  ;;  %v1689_v0 = vpop.permute.xlu0 %1688 }
 0x78f   : > { %v3456_v62 = vpop.eup %3455 }
 0x790   : > { %v1552_v5 = vmul.f32 %v3456_v62, %v4632_v12  ;;  %v3458_v13 = vpop.eup %3457  ;;  %v1564_v27 = vpack.c.bf16 %v1554_v19, %v1553_v57  ;;  %v1691_v20 = vpop.permute.xlu1 %1690 }
 0x791   : > { %3028 = vmatpush3.bf16.xpose.msra.mxu1 %v1766_v51  ;;  %v1555_v26 = vmul.f32 %v3458_v13, %v4624_v6 }
 0x792   : > { %v1563_v53 = vpack.c.bf16 %v1552_v5, %v1551_v61  ;;  %v1693_v10 = vpop.permute.xlu0 %1692 }
 0x793   : > { %v3460_v22 = vpop.eup %3459 }
 0x794   : > { %v3462_v24 = vpop.eup %3461  ;;  %3005 = vmatprep.mubr.bf16.mxu1 %v1563_v53  ;;  %v1556_v40 = vmul.f32 %v3460_v22, %v4636_v58  ;;  %v1695_v6 = vpop.permute.xlu1 %1694 }
 0x795   : > { %3006 = vmatmul.mubr.bf16.gmra.mrb[40].mxu1 %v1564_v27  ;;  %v3464_v45 = vpop.eup %3463  ;;  %v1558_v11 = vmul.f32 %v3462_v24, %v4630_v56 }
 0x796   : > { %v1565_v28 = vpack.c.bf16 %v1556_v40, %v1555_v26  ;;  %v1557_v12 = vmul.f32 %v3464_v45, %v4618_v39  ;;  %v1697_v58 = vpop.permute.xlu0 %1696 }
 0x798   : > { %3009 = vmatprep.mubr.bf16.mxu1 %v1565_v28  ;;  %v1566_v18 = vpack.c.bf16 %v1558_v11, %v1557_v12  ;;  %v1699_v56 = vpop.permute.xlu1 %1698 }
 0x79a   : > { %v1701_v2 = vpop.permute.xlu0 %1700 }
 0x79c   : > { %v1703_v39 = vpop.permute.xlu1 %1702 }
 0x79d   : > { %3010 = vmatmul.mubr.bf16.gmra.mrb[44].mxu1 %v1566_v18 }
 0x79e   : > { %3029 = vmatprep.mubr.msk.bf16.mxu1 %vm249_vm0, %v1689_v0  ;;  %v2050_v33 = vpop.permute.xlu0 %2049 }
 0x79f   : > { %3045 = vmatprep.subr.bf16.mxu0 %v2050_v33 }
 0x7a0   : > { %3046 = vmatpush3.bf16.msra.mxu0 %v2050_v33  ;;  %v2052_v43 = vpop.permute.xlu1 %2051 }
 0x7a1   : > { %3047 = vmatprep.subr.bf16.mxu0 %v2052_v43 }
 0x7a2   : > { %v2054_v8 = vpop.permute.xlu0 %2053 }
 0x7a4   : > { %3048 = vmatpush3.bf16.msra.mxu0 %v2052_v43 }
 0x7a5   : > { %3030 = vmatmul.mubr.msk.bf16.vlgmr.msra.gmra.mrb[48].mxu1 %vm249_vm0, %v1691_v20  ;;  %3049 = vmatprep.subr.bf16.mxu0 %v2054_v8 }
 0x7a6   : > { %3033 = vmatprep.mubr.msk.bf16.mxu1 %vm249_vm0, %v1693_v10 }
 0x7a8   : > { %3050 = vmatpush3.bf16.msra.mxu0 %v2054_v8 }
 0x7ad   : > { %3034 = vmatmul.mubr.msk.bf16.gmra.mrb[52].mxu1 %vm249_vm0, %v1695_v6 }
 0x7ae   : > { %3037 = vmatprep.mubr.msk.bf16.mxu1 %vm249_vm0, %v1697_v58 }
 0x7b5   : > { %3038 = vmatmul.mubr.msk.bf16.gmra.mrb[56].mxu1 %vm249_vm0, %v1699_v56 }
 0x7b6   : > { %3041 = vmatprep.mubr.msk.bf16.mxu1 %vm249_vm0, %v1701_v2 }
 0x7bd   : > { %3042 = vmatmul.mubr.msk.bf16.gmra.mrb[60].mxu1 %vm249_vm0, %v1703_v39 }
 0x822   : > { %v4709_v7 = vpop.f32.mrb[32].mxu1 }
 0x823   : > { %v4711_v48 = vpop.f32.mrb[33].mxu1 }
 0x824   : > { %v4713_v47 = vpop.f32.mrb[34].mxu1 }
 0x825   : > { %v3166_v59 = vpack.i.bf16 %v4713_v47, %v4709_v7  ;;  %v4717_v44 = vpop.f32.mrb[35].mxu1  ;;  %v5270_v47 = vld [vmem:[#allocation6_spill] sm:$0xff] }
 0x826   : > { %v3161_v31 = vpack.i.bf16 %v4717_v44, %v4711_v48 }
 0x85a   : > { %v4721_v55 = vpop.f32.mrb[36].mxu1 }
 0x85b   : > { %v4723_v4 = vpop.f32.mrb[37].mxu1 }
 0x85c   : > { %v4725_v17 = vpop.f32.mrb[38].mxu1 }
 0x85d   : > { %v3176_v9 = vpack.i.bf16 %v4725_v17, %v4721_v55  ;;  %v4729_v14 = vpop.f32.mrb[39].mxu1  ;;  %v5273_v17 = vld [vmem:[#allocation31_spill] sm:$0xff] }
 0x85e   : > { %v3171_v60 = vpack.i.bf16 %v4729_v14, %v4723_v4 }
 0x868   : > { %v4733_v63 = vpop.f32.mrb[40].mxu1 }
 0x869   : > { %v4735_v16 = vpop.f32.mrb[41].mxu1 }
 0x86a   : > { %v4737_v30 = vpop.f32.mrb[42].mxu1 }
 0x86b   : > { %v3186_v29 = vpack.i.bf16 %v4737_v30, %v4733_v63  ;;  %v4741_v52 = vpop.f32.mrb[43].mxu1  ;;  %v5276_v30 = vld [vmem:[#allocation35_spill] sm:$0xff] }
 0x86c   : > { %v3181_v51 = vpack.i.bf16 %v4741_v52, %v4735_v16 }
 0x870   : > { %v4745_v62 = vpop.f32.mrb[44].mxu1 }
 0x871   : > { %v4747_v19 = vpop.f32.mrb[45].mxu1 }
 0x872   : > { %v4749_v61 = vpop.f32.mrb[46].mxu1 }
 0x873   : > { %v3196_v5 = vpack.i.bf16 %v4749_v61, %v4745_v62  ;;  %v4753_v13 = vpop.f32.mrb[47].mxu1 }
 0x874   : > { %v3191_v57 = vpack.i.bf16 %v4753_v13, %v4747_v19 }
 0x878   : > { %v3031_v53 = vpop.f32.mrb[48].mxu1 }
 0x879   : > { %v1867_v22 = vmul.f32 0.17677669, %v3031_v53  ;;  %v1802_v27 = vpop.f32.mrb[49].mxu1 }
 0x87a   : > { %v3032_v24 = vpop.f32.mrb[50].mxu1  ;;  %v1865_v26 = vmul.f32 0.17677669, %v1802_v27 }
 0x87b   : > { %v1805_v40 = vpop.f32.mrb[51].mxu1  ;;  %v4760_v45 = vsel %vm171_vm1, %v1867_v22, -1e+30  ;;  %v1868_v12 = vmul.f32 0.17677669, %v3032_v24  ;;  %vm5254_vm1 = vcmp.le.s32.totalorder %v3744_v36, %v5224_v3 }
 0x87c   : > { %v1866_v28 = vmul.f32 0.17677669, %v1805_v40  ;;  %1901 = vmax.xlane.f32.xlu0 %v4760_v45  ;;  %v4772_v18 = vsel %vm169_vm2, %v1865_v26, -1e+30  ;;  %vm5255_vm2 = vmmov %vm5250_vm12 }
 0x87d   : > { %v4778_v41 = vsel %vm172_vm3, %v1868_v12, -1e+30  ;;  %vm2378_vm3 = vcmask 523264  }
 0x87e   : > { %v4766_v11 = vsel %vm170_vm4, %v1866_v28, -1e+30  ;;  %vm2395_vm4 = vcmask 785408  }
 0x87f   : > { %1899 = vmax.xlane.f32.xlu1 %v4766_v11 }
 0x880   : > { %1897 = vmax.xlane.f32.xlu0 %v4772_v18  ;;  %v3035_v35 = vpop.f32.mrb[52].mxu1 }
 0x881   : > { %v1871_v0 = vmul.f32 0.17677669, %v3035_v35  ;;  %v1818_v20 = vpop.f32.mrb[53].mxu1 }
 0x882   : > { %v3036_v10 = vpop.f32.mrb[54].mxu1  ;;  %v1869_v39 = vmul.f32 0.17677669, %v1818_v20 }
 0x883   : > { %v1872_v6 = vmul.f32 0.17677669, %v3036_v10  ;;  %v1821_v58 = vpop.f32.mrb[55].mxu1  ;;  %v4789_v2 = vsel %vm175_vm5, %v1871_v0, -1e+30 }
 0x884   : > { %1903 = vmax.xlane.f32.xlu0 %v4778_v41  ;;  %v1870_v56 = vmul.f32 0.17677669, %v1821_v58  ;;  %v4802_v49 = vsel %vm173_vm7, %v1869_v39, -1e+30  ;;  %v3554_v10 = vld [vmem:[%s3593_s11 + $0x50] ss:$12 sps:$4 sm:$0xff]  }
 0x885   : > { %v4784_v34 = vsel %vm176_vm6, %v1872_v6, -1e+30 }
 0x886   : > { %1911 = vmax.xlane.f32.xlu1 %v4784_v34  ;;  %v4796_v8 = vsel %vm174_vm8, %v1870_v56, -1e+30  ;;  %v3555_v56 = vld [vmem:[%s3593_s11 + $0x80] ss:$12 sps:$4 sm:$0xff]  }
 0x888   : > { %1909 = vmax.xlane.f32.xlu0 %v4789_v2  ;;  %v3039_v38 = vpop.f32.mrb[56].mxu1 }
 0x889   : > { %v1875_v33 = vmul.f32 0.17677669, %v3039_v38  ;;  %v1834_v43 = vpop.f32.mrb[57].mxu1 }
 0x88a   : > { %1907 = vmax.xlane.f32.xlu1 %v4796_v8  ;;  %v3040_v50 = vpop.f32.mrb[58].mxu1  ;;  %v1873_v26 = vmul.f32 0.17677669, %v1834_v43 }
 0x88b   : > { %v1876_v53 = vmul.f32 0.17677669, %v3040_v50  ;;  %v1837_v22 = vpop.f32.mrb[59].mxu1  ;;  %v4813_v37 = vsel %vm179_vm9, %v1875_v33, -1e+30 }
 0x88c   : > { %1905 = vmax.xlane.f32.xlu0 %v4802_v49  ;;  %v1874_v27 = vmul.f32 0.17677669, %v1837_v22  ;;  %v4826_v12 = vsel %vm177_vm11, %v1873_v26, -1e+30 }
 0x88d   : > { %v4808_v24 = vsel %vm180_vm10, %v1876_v53, -1e+30 }
 0x88e   : > { %1919 = vmax.xlane.f32.xlu1 %v4808_v24  ;;  %v4819_v42 = vsel %vm5254_vm1, %v1874_v27, -1e+30 }
 0x890   : > { %1917 = vmax.xlane.f32.xlu0 %v4813_v37  ;;  %v3043_v54 = vpop.f32.mrb[60].mxu1 }
 0x891   : > { %v1879_v40 = vmul.f32 0.17677669, %v3043_v54  ;;  %v1850_v28 = vpop.f32.mrb[61].mxu1 }
 0x892   : > { %1915 = vmax.xlane.f32.xlu1 %v4819_v42  ;;  %v3044_v1 = vpop.f32.mrb[62].mxu1  ;;  %v1877_v0 = vmul.f32 0.17677669, %v1850_v28 }
 0x893   : > { %v1853_v35 = vpop.f32.mrb[63].mxu1  ;;  %v4832_v3 = vsel %vm183_vm13, %v1879_v40, -1e+30  ;;  %v1880_v21 = vmul.f32 0.17677669, %v3044_v1 }
 0x894   : > { %1913 = vmax.xlane.f32.xlu0 %v4826_v12  ;;  %v4838_v20 = vsel %vm5255_vm2, %v1877_v0, -1e+30  ;;  %v1878_v6 = vmul.f32 0.17677669, %v1853_v35 }
 0x895   : > { %v4848_v58 = vsel %vm184_vm15, %v1880_v21, -1e+30 }
 0x896   : > { %v4854_v25 = vsel %vm182_vm14, %v1878_v6, -1e+30 }
 0x898   : > { %1925 = vmax.xlane.f32.xlu0 %v4832_v3 }
 0x89c   : > { %1921 = vmax.xlane.f32.xlu0 %v4838_v20 }
 0x8a3   : > { %2057 = vrot.lane.b32.xlu1 %v3553_v15, %s3568_s14 }
 0x8b2   : > { %2055 = vrot.lane.b32.xlu0 %v3554_v10, %s3568_s14 }
 0x8c7   : > { %1927 = vmax.xlane.f32.xlu1 %v4848_v58 }
 0x8cb   : > { %1923 = vmax.xlane.f32.xlu1 %v4854_v25 }
 0x8dc   : > { %2059 = vrot.lane.b32.xlu1 %v3555_v56, %s3568_s14 }
 0x909   : > { %v1902_v39 = vpop.xlane.xlu0 %1901 }
 0x90a   : > { %v1931_v38 = vsub.f32 %v4760_v45, %v1902_v39 }
 0x90c   : > { %v1949_v33 = vmul.f32 1.442695, %v1931_v38  ;;  %v1900_v32 = vpop.xlane.xlu1 %1899 }
 0x90d   : > { %v1898_v43 = vpop.xlane.xlu0 %1897  ;;  %v1930_v22 = vsub.f32 %v4766_v11, %v1900_v32 }
 0x90e   : > { %3465 = vpow2.f32 %v1949_v33  ;;  %v1929_v50 = vsub.f32 %v4772_v18, %v1898_v43 }
 0x90f   : > { %v1947_v54 = vmul.f32 1.442695, %v1930_v22 }
 0x910   : > { %v1945_v53 = vmul.f32 1.442695, %v1929_v50 }
 0x911   : > { %v1904_v36 = vpop.xlane.xlu0 %1903 }
 0x912   : > { %3467 = vpow2.f32 %v1945_v53  ;;  %v1932_v46 = vsub.f32 %v4778_v41, %v1904_v36 }
 0x913   : > { %v1912_v27 = vpop.xlane.xlu1 %1911 }
 0x914   : > { %v1951_v26 = vmul.f32 1.442695, %v1932_v46  ;;  %v1936_v11 = vsub.f32 %v4784_v34, %v1912_v27 }
 0x915   : > { %v1910_v40 = vpop.xlane.xlu0 %1909 }
 0x916   : > { %3469 = vpow2.f32 %v1951_v26  ;;  %v1935_v45 = vsub.f32 %v4789_v2, %v1910_v40  ;;  %v1959_v56 = vmul.f32 1.442695, %v1936_v11 }
 0x917   : > { %v1908_v28 = vpop.xlane.xlu1 %1907  ;;  %3471 = vpow2.f32 %v1947_v54 }
 0x918   : > { %v4864_v1 = vpop.eup %3465  ;;  %v1957_v35 = vmul.f32 1.442695, %v1935_v45  ;;  %v1934_v18 = vsub.f32 %v4796_v8, %v1908_v28 }
 0x919   : > { %v1906_v0 = vpop.xlane.xlu0 %1905  ;;  %1981 = vadd.xlane.f32.xlu1 %v4864_v1 }
 0x91a   : > { %3473 = vpow2.f32 %v1957_v35  ;;  %v1955_v41 = vmul.f32 1.442695, %v1934_v18  ;;  %v1933_v15 = vsub.f32 %v4802_v49, %v1906_v0 }
 0x91b   : > { %v1920_v2 = vpop.xlane.xlu1 %1919 }
 0x91c   : > { %v4870_v10 = vpop.eup %3467  ;;  %v1953_v21 = vmul.f32 1.442695, %v1933_v15  ;;  %3475 = vpow2.f32 %v1955_v41  ;;  %v1940_v34 = vsub.f32 %v4808_v24, %v1920_v2  ;;  %v3556_v15 = vld [vmem:[%s3593_s11 + $0xb0] ss:$12 sps:$4 sm:$0xff]  }
 0x91d   : > { %v1918_v6 = vpop.xlane.xlu0 %1917  ;;  %1977 = vadd.xlane.f32.xlu1 %v4870_v10 }
 0x91e   : > { %3477 = vpow2.f32 %v1953_v21  ;;  %v1939_v8 = vsub.f32 %v4813_v37, %v1918_v6  ;;  %v1967_v22 = vmul.f32 1.442695, %v1940_v34  ;;  %v5256_v21 = vld [vmem:[#allocation4_spill] sm:$0xff] }
 0x91f   : > { %3479 = vpow2.f32 %v1959_v56  ;;  %v1916_v49 = vpop.xlane.xlu1 %1915  ;;  %v5257_v2 = vpack.i.bf16 %v4423_v23, %v5256_v21  ;;  %v3557_v6 = vld [vmem:[%s3593_s11 + $0x98] ss:$12 sps:$4 sm:$0xff]  }
 0x920   : > { %v4874_v39 = vpop.eup %3469  ;;  %v1965_v38 = vmul.f32 1.442695, %v1939_v8  ;;  %v1938_v37 = vsub.f32 %v4819_v42, %v1916_v49  ;;  %v5258_v56 = vld [vmem:[#allocation11_spill] sm:$0xff]  ;;  %v5259_v8 = vld [vmem:[#allocation9_spill] sm:$0xff]  ;;  %v5262_v49 = vld [vmem:[#allocation8_spill] sm:$0xff] }
 0x921   : > { %v1914_v33 = vpop.xlane.xlu0 %1913  ;;  %1983 = vadd.xlane.f32.xlu1 %v4874_v39  ;;  %v4879_v32 = vpop.eup %3471  ;;  %v5260_v34 = vpack.i.bf16 %v5258_v56, %v5259_v8 }
 0x922   : > { %v1937_v43 = vsub.f32 %v4826_v12, %v1914_v33  ;;  %3481 = vpow2.f32 %v1965_v38  ;;  %v1963_v26 = vmul.f32 1.442695, %v1938_v37  ;;  %v5261_v33 = vld [vmem:[#allocation10_spill] sm:$0xff]  ;;  %v5265_v37 = vld [vmem:[#allocation28_spill] sm:$0xff] }
 0x923   : > { %v2058_v35 = vpop.permute.xlu1 %2057 }
 0x924   : > { %v4881_v50 = vpop.eup %3473  ;;  %v1961_v53 = vmul.f32 1.442695, %v1937_v43  ;;  %v5263_v43 = vpack.i.bf16 %v5261_v33, %v5262_v49 }
 0x925   : > { %v1926_v36 = vpop.xlane.xlu0 %1925  ;;  %1989 = vadd.xlane.f32.xlu0 %v4881_v50  ;;  %1979 = vadd.xlane.f32.xlu1 %v4879_v32 }
 0x926   : > { %3483 = vpow2.f32 %v1961_v53  ;;  %v1943_v24 = vsub.f32 %v4832_v3, %v1926_v36  ;;  %v4887_v46 = vpop.eup %3475 }
 0x927   : > { %3485 = vpow2.f32 %v1967_v22  ;;  %v5264_v22 = vld [vmem:[#allocation30_spill] sm:$0xff] }
 0x928   : > { %v4889_v12 = vpop.eup %3477  ;;  %v1973_v27 = vmul.f32 1.442695, %v1943_v24  ;;  %v5266_v23 = vpack.i.bf16 %v5264_v22, %v5265_v37 }
 0x929   : > { %1985 = vadd.xlane.f32.xlu0 %v4889_v12  ;;  %v1922_v54 = vpop.xlane.xlu0 %1921  ;;  %1987 = vadd.xlane.f32.xlu1 %v4887_v46  ;;  %v4894_v40 = vpop.eup %3479 }
 0x92a   : > { %3487 = vpow2.f32 %v1973_v27  ;;  %v1941_v42 = vsub.f32 %v4838_v20, %v1922_v54  ;;  %v5267_v27 = vld [vmem:[#allocation34_spill] sm:$0xff] }
 0x92b   : > { %3489 = vpow2.f32 %v1963_v26  ;;  %v5268_v26 = vld [vmem:[#allocation32_spill] sm:$0xff] }
 0x92c   : > { %v1969_v45 = vmul.f32 1.442695, %v1941_v42  ;;  %v4897_v28 = vpop.eup %3481  ;;  %v5269_v54 = vpack.i.bf16 %v5267_v27, %v5268_v26 }
 0x92d   : > { %v2056_v3 = vpop.permute.xlu0 %2055  ;;  %1991 = vadd.xlane.f32.xlu0 %v4894_v40 }
 0x92e   : > { %3491 = vpow2.f32 %v1969_v45  ;;  %3051 = vmatprep.subr.bf16.mxu0 %v2056_v3 }
 0x92f   : > { %3052 = vmatpush3.bf16.msra.mxu0 %v2056_v3 }
 0x930   : > { %v4899_v18 = vpop.eup %3483  ;;  %3053 = vmatprep.subr.bf16.mxu0 %v2058_v35 }
 0x931   : > { %1997 = vadd.xlane.f32.xlu0 %v4897_v28  ;;  %1993 = vadd.xlane.f32.xlu1 %v4899_v18  ;;  %v4903_v20 = vpop.eup %3485 }
 0x933   : > { %3054 = vmatpush3.bf16.msra.mxu0 %v2058_v35 }
 0x934   : > { %v4905_v0 = vpop.eup %3487 }
 0x935   : > { %2005 = vadd.xlane.f32.xlu1 %v4905_v0  ;;  %1999 = vadd.xlane.f32.xlu0 %v4903_v20  ;;  %v4909_v11 = vpop.eup %3489 }
 0x938   : > { %v4911_v41 = vpop.eup %3491 }
 0x939   : > { %2001 = vadd.xlane.f32.xlu1 %v4911_v41  ;;  %1995 = vadd.xlane.f32.xlu0 %v4909_v11 }
 0x94a   : > { %2063 = vrot.lane.b32.xlu1 %v3556_v15, %s3568_s14 }
 0x94e   : > { %3127 = vrot.lane.b32.xlu1 %v5257_v2, %s3568_s14 }
 0x94f   : > { %2061 = vrot.lane.b32.xlu0 %v3557_v6, %s3568_s14 }
 0x952   : > { %3132 = vrot.lane.b32.xlu1 %v5260_v34, %s3568_s14 }
 0x954   : > { %v1928_v38 = vpop.xlane.xlu1 %1927 }
 0x955   : > { %v1944_v42 = vsub.f32 %v4848_v58, %v1928_v38 }
 0x956   : > { %3137 = vrot.lane.b32.xlu1 %v5263_v43, %s3568_s14 }
 0x957   : > { %v1975_v3 = vmul.f32 1.442695, %v1944_v42 }
 0x958   : > { %v1924_v53 = vpop.xlane.xlu1 %1923 }
 0x959   : > { %v1942_v36 = vsub.f32 %v4854_v25, %v1924_v53 }
 0x95a   : > { %3147 = vrot.lane.b32.xlu1 %v5266_v23, %s3568_s14 }
 0x95b   : > { %v1971_v45 = vmul.f32 1.442695, %v1942_v36 }
 0x95c   : > { %v2060_v24 = vpop.permute.xlu1 %2059 }
 0x95d   : > { %3055 = vmatprep.subr.bf16.mxu0 %v2060_v24  ;;  %3493 = vpow2.f32 %v1971_v45 }
 0x95e   : > { %3157 = vrot.lane.b32.xlu1 %v5269_v54, %s3568_s14  ;;  %3056 = vmatpush3.bf16.msra.mxu0 %v2060_v24  ;;  %3495 = vpow2.f32 %v1975_v3 }
 0x962   : > { %3167 = vrot.lane.b32.xlu1 %v3166_v59, %s3567_s13  ;;  %v5271_v59 = vld [vmem:[#allocation7_spill] sm:$0xff] }
 0x963   : > { %v5272_v55 = vpack.i.bf16 %v5270_v47, %v5271_v59 }
 0x966   : > { %3177 = vrot.lane.b32.xlu1 %v3176_v9, %s3567_s13  ;;  %v5274_v9 = vld [vmem:[#allocation29_spill] sm:$0xff] }
 0x967   : > { %v4953_v58 = vpop.eup %3493  ;;  %v5275_v63 = vpack.i.bf16 %v5273_v17, %v5274_v9 }
 0x968   : > { %v4960_v7 = vpop.eup %3495 }
 0x96a   : > { %3187 = vrot.lane.b32.xlu1 %v3186_v29, %s3567_s13  ;;  %v5277_v29 = vld [vmem:[#allocation33_spill] sm:$0xff] }
 0x96b   : > { %v5278_v62 = vpack.i.bf16 %v5276_v30, %v5277_v29 }
 0x96e   : > { %3197 = vrot.lane.b32.xlu1 %v3196_v5, %s3567_s13  ;;  %2003 = vadd.xlane.f32.xlu0 %v4953_v58 }
 0x972   : > { %2007 = vadd.xlane.f32.xlu0 %v4960_v7 }
 0x988   : > { %3122 = vrot.lane.b32.xlu0 %v5272_v55, %s3568_s14 }
 0x98c   : > { %3142 = vrot.lane.b32.xlu0 %v5275_v63, %s3568_s14 }
 0x990   : > { %3152 = vrot.lane.b32.xlu0 %v5278_v62, %s3568_s14 }
 0x994   : > { %3162 = vrot.lane.b32.xlu0 %v3161_v31, %s3567_s13 }
 0x998   : > { %3172 = vrot.lane.b32.xlu0 %v3171_v60, %s3567_s13 }
 0x99c   : > { %3182 = vrot.lane.b32.xlu0 %v3181_v51, %s3567_s13 }
 0x9a0   : > { %3192 = vrot.lane.b32.xlu0 %v3191_v57, %s3567_s13 }
 0x9a6   : > { %v1982_v61 = vpop.xlane.xlu1 %1981 }
 0x9aa   : > { %v1978_v5 = vpop.xlane.xlu1 %1977 }
 0x9ab   : > { %3497 = vrcp.f32 %v1978_v5 }
 0x9ae   : > { %v1984_v25 = vpop.xlane.xlu1 %1983 }
 0x9b2   : > { %v1990_v48 = vpop.xlane.xlu0 %1989  ;;  %v1980_v44 = vpop.xlane.xlu1 %1979 }
 0x9b3   : > { %3499 = vrcp.f32 %v1980_v44 }
 0x9b4   : > { %3501 = vrcp.f32 %v1984_v25 }
 0x9b5   : > { %v3498_v60 = vpop.eup %3497 }
 0x9b6   : > { %v1986_v31 = vpop.xlane.xlu0 %1985  ;;  %v1988_v4 = vpop.xlane.xlu1 %1987  ;;  %v2025_v52 = vmul.f32 %v3498_v60, %v4870_v10 }
 0x9b7   : > { %3503 = vrcp.f32 %v1986_v31 }
 0x9b8   : > { %3505 = vrcp.f32 %v1988_v4 }
 0x9b9   : > { %3507 = vrcp.f32 %v1982_v61 }
 0x9ba   : > { %v1992_v14 = vpop.xlane.xlu0 %1991 }
 0x9bb   : > { %3509 = vrcp.f32 %v1992_v14 }
 0x9bd   : > { %v3500_v35 = vpop.eup %3499 }
 0x9be   : > { %v1998_v15 = vpop.xlane.xlu0 %1997  ;;  %v1994_v16 = vpop.xlane.xlu1 %1993  ;;  %v2026_v51 = vmul.f32 %v3500_v35, %v4879_v32 }
 0x9bf   : > { %v3502_v6 = vpop.eup %3501 }
 0x9c0   : > { %v2041_v19 = vpack.c.bf16 %v2026_v51, %v2025_v52  ;;  %v2028_v32 = vmul.f32 %v3502_v6, %v4874_v39 }
 0x9c1   : > { %v3504_v56 = vpop.eup %3503 }
 0x9c2   : > { %v2000_v13 = vpop.xlane.xlu0 %1999  ;;  %v2006_v57 = vpop.xlane.xlu1 %2005  ;;  %3061 = vmatprep.mubr.bf16.mxu0 %v2041_v19  ;;  %v2029_v49 = vmul.f32 %v3504_v56, %v4889_v12  ;;  %v5281_v19 = vld [vmem:[#allocation27_spill] sm:$0xff] }
 0x9c3   : > { %v3506_v38 = vpop.eup %3505 }
 0x9c4   : > { %v3508_v10 = vpop.eup %3507  ;;  %v2030_v43 = vmul.f32 %v3506_v38, %v4887_v46 }
 0x9c5   : > { %v2027_v53 = vmul.f32 %v3508_v10, %v4864_v1  ;;  %v3510_v37 = vpop.eup %3509 }
 0x9c6   : > { %v1996_v21 = vpop.xlane.xlu0 %1995  ;;  %v2002_v2 = vpop.xlane.xlu1 %2001  ;;  %v2043_v36 = vpack.c.bf16 %v2030_v43, %v2029_v49  ;;  %v2032_v26 = vmul.f32 %v3510_v37, %v4894_v40 }
 0x9c7   : > { %3511 = vrcp.f32 %v1996_v21  ;;  %v2042_v22 = vpack.c.bf16 %v2028_v32, %v2027_v53 }
 0x9c8   : > { %3513 = vrcp.f32 %v1990_v48 }
 0x9c9   : > { %3515 = vrcp.f32 %v1994_v16 }
 0x9ca   : > { %v2062_v8 = vpop.permute.xlu0 %2061  ;;  %v2064_v34 = vpop.permute.xlu1 %2063  ;;  %3517 = vrcp.f32 %v2000_v13 }
 0x9cb   : > { %3057 = vmatprep.subr.bf16.mxu0 %v2062_v8  ;;  %3519 = vrcp.f32 %v1998_v15 }
 0x9cc   : > { %3058 = vmatpush3.bf16.msra.mxu0 %v2062_v8  ;;  %3521 = vrcp.f32 %v2002_v2 }
 0x9cd   : > { %3059 = vmatprep.subr.bf16.mxu0 %v2064_v34 }
 0x9ce   : > { %v4994_v33 = vpop.permute.xlu1 %3127 }
 0x9d0   : > { %3060 = vmatpush3.bf16.msra.mxu0 %v2064_v34 }
 0x9d1   : > { %v3512_v24 = vpop.eup %3511 }
 0x9d2   : > { %v4999_v23 = vpop.permute.xlu1 %3132  ;;  %v3514_v39 = vpop.eup %3513  ;;  %v2034_v46 = vmul.f32 %v3512_v24, %v4909_v11  ;;  %v5279_v11 = vld [vmem:[#allocation26_spill] sm:$0xff] }
 0x9d3   : > { %3062 = vmatmul.mubr.bf16.vlgmr.msra.gmra.mrb[48].mxu0 %v2042_v22  ;;  %v3516_v27 = vpop.eup %3515  ;;  %v2031_v1 = vmul.f32 %v3514_v39, %v4881_v50 }
 0x9d4   : > { %3065 = vmatprep.mubr.bf16.mxu0 %v2043_v36  ;;  %v2033_v54 = vmul.f32 %v3516_v27, %v4899_v18  ;;  %v3518_v45 = vpop.eup %3517  ;;  %v5280_v18 = vld [vmem:[#allocation24_spill] sm:$0xff] }
 0x9d5   : > { %v2044_v42 = vpack.c.bf16 %v2032_v26, %v2031_v1  ;;  %v3520_v59 = vpop.eup %3519  ;;  %v2036_v55 = vmul.f32 %v3518_v45, %v4903_v20 }
 0x9d6   : > { %v5002_v12 = vpop.permute.xlu1 %3137  ;;  %v2045_v47 = vpack.c.bf16 %v2034_v46, %v2033_v54  ;;  %v2035_v63 = vmul.f32 %v3520_v59, %v4897_v28  ;;  %v3522_v5 = vpop.eup %3521 }
 0x9d7   : > { %v2037_v48 = vmul.f32 %v3522_v5, %v4911_v41 }
 0x9d8   : > { %v2046_v29 = vpack.c.bf16 %v2036_v55, %v2035_v63 }
 0x9da   : > { %v5007_v3 = vpop.permute.xlu1 %3147 }
 0x9db   : > { %3066 = vmatmul.mubr.bf16.gmra.mrb[52].mxu0 %v2044_v42 }
 0x9dc   : > { %3069 = vmatprep.mubr.bf16.mxu0 %v2045_v47 }
 0x9de   : > { %v3158_v17 = vpop.permute.xlu1 %3157 }
 0x9df   : > { %v3160_v40 = vunpack.i.h.bf16 %v3158_v17  ;;  %v3159_v9 = vunpack.i.l.bf16 %v3158_v17  ;;  %v3130_v17 = vunpack.i.h.bf16 %v4994_v33 }
 0x9e1   : > { %v5013_v50 = vsel %vm249_vm0, %v5279_v11, %v3160_v40  ;;  %v5017_v30 = vsel %vm249_vm0, %v5280_v18, %v3159_v9  ;;  %v3129_v40 = vunpack.i.l.bf16 %v4994_v33  ;;  %v3135_v33 = vunpack.i.h.bf16 %v4999_v23 }
 0x9e2   : > { %v3168_v54 = vpop.permute.xlu1 %3167 }
 0x9e3   : > { %3070 = vmatmul.mubr.bf16.gmra.mrb[56].mxu0 %v2046_v29  ;;  %v3170_v63 = vunpack.i.h.bf16 %v3168_v54  ;;  %v3169_v11 = vunpack.i.l.bf16 %v3168_v54 }
 0x9e6   : > { %v3178_v45 = vpop.permute.xlu1 %3177 }
 0x9ea   : > { %v5045_v59 = vpop.permute.xlu1 %3187 }
 0x9ee   : > { %v5051_v9 = vpop.permute.xlu1 %3197 }
 0x9fb   : > { %v2004_v62 = vpop.xlane.xlu0 %2003 }
 0x9fc   : > { %3523 = vrcp.f32 %v2004_v62 }
 0x9fd   : > { %3525 = vrcp.f32 %v2006_v57  ;;  %v5282_v57 = vld [vmem:[#allocation25_spill] sm:$0xff] }
 0x9ff   : > { %v2008_v20 = vpop.xlane.xlu0 %2007 }
 0xa00   : > { %3527 = vrcp.f32 %v2008_v20  ;;  %v5283_v20 = vld [vmem:[#allocation14_spill] sm:$0xff] }
 0xa01   : > { %v2365_v5 = vsel %vm249_vm0, %v5283_v20, %v3130_v17 }
 0xa03   : > { %v5019_v61 = vpop.permute.xlu0 %3122 }
 0xa04   : > { %v3125_v29 = vunpack.i.h.bf16 %v5019_v61  ;;  %v3124_v62 = vunpack.i.l.bf16 %v5019_v61 }
 0xa06   : > { %v3524_v28 = vpop.eup %3523 }
 0xa07   : > { %v5021_v25 = vpop.permute.xlu0 %3142  ;;  %v2038_v44 = vmul.f32 %v3524_v28, %v4953_v58  ;;  %v3526_v31 = vpop.eup %3525 }
 0xa08   : > { %v2039_v35 = vmul.f32 %v3526_v31, %v4905_v0 }
 0xa09   : > { %v2047_v4 = vpack.c.bf16 %v2038_v44, %v2037_v48  ;;  %v5284_v44 = vld [vmem:[#allocation12_spill] sm:$0xff] }
 0xa0a   : > { %v3528_v14 = vpop.eup %3527  ;;  %v2364_v31 = vsel %vm249_vm0, %v5284_v44, %v3129_v40 }
 0xa0b   : > { %v3153_v60 = vpop.permute.xlu0 %3152  ;;  %3073 = vmatprep.mubr.bf16.mxu0 %v2047_v4  ;;  %v2040_v15 = vmul.f32 %v3528_v14, %v4960_v7  ;;  %v3134_v4 = vunpack.i.l.bf16 %v4999_v23 }
 0xa0c   : > { %v3155_v16 = vunpack.i.h.bf16 %v3153_v60  ;;  %v3154_v52 = vunpack.i.l.bf16 %v3153_v60  ;;  %v2381_v60 = vsel %vm2378_vm3, %v2364_v31, %v3169_v11  ;;  %v3190_v31 = vunpack.i.h.bf16 %v5045_v59 }
 0xa0d   : > { %v2048_v51 = vpack.c.bf16 %v2040_v15, %v2039_v35  ;;  %v2382_v35 = vsel %vm2378_vm3, %v2365_v5, %v3170_v63  ;;  %v3149_v5 = vunpack.i.l.bf16 %v5007_v3 }
 0xa0e   : > { %v5029_v13 = vsel %vm249_vm0, %v5281_v19, %v3155_v16  ;;  %v5033_v41 = vsel %vm249_vm0, %v5282_v57, %v3154_v52  ;;  %v5285_v52 = vld [vmem:[#allocation15_spill] sm:$0xff]  ;;  %v5286_v19 = vld [vmem:[#allocation13_spill] sm:$0xff] }
 0xa0f   : > { %3074 = vmatmul.mubr.bf16.gmra.mrb[60].mxu0 %v2048_v51  ;;  %v3163_v42 = vpop.permute.xlu0 %3162  ;;  %v2363_v51 = vsel %vm249_vm0, %v5285_v52, %v3125_v29  ;;  %v2362_v57 = vsel %vm249_vm0, %v5286_v19, %v3124_v62 }
 0xa10   : > { %v3165_v28 = vunpack.i.h.bf16 %v3163_v42  ;;  %v3164_v48 = vunpack.i.l.bf16 %v3163_v42 }
 0xa12   : > { %v2379_v23 = vsel %vm2378_vm3, %v2362_v57, %v3164_v48 }
 0xa13   : > { %v5043_v47 = vpop.permute.xlu0 %3172 }
 0xa17   : > { %v5047_v55 = vpop.permute.xlu0 %3182 }
 0xa1b   : > { %v5053_v18 = vpop.permute.xlu0 %3192 }
 0xaa6   : > { %v3063_v58 = vpop.f32.mrb[48].mxu0 }
 0xaa7   : > { %v2107_v21 = vpop.f32.mrb[49].mxu0 }
 0xaa8   : > { %v3064_v2 = vpop.f32.mrb[50].mxu0 }
 0xaa9   : > { %v3201_v6 = vpack.i.bf16 %v3064_v2, %v3063_v58  ;;  %v2110_v56 = vpop.f32.mrb[51].mxu0  ;;  %v2380_v2 = vsel %vm2378_vm3, %v2363_v51, %v3165_v28 }
 0xaaa   : > { %v3206_v0 = vpack.i.bf16 %v2110_v56, %v2107_v21 }
 0xaab   : > { %3202 = vrot.lane.b32.xlu1 %v3201_v6, %s3566_s12 }
 0xaac   : > { %3207 = vrot.lane.b32.xlu0 %v3206_v0, %s3566_s12  ;;  %v3140_v0 = vunpack.i.h.bf16 %v5002_v12 }
 0xaae   : > { %v3067_v7 = vpop.f32.mrb[52].mxu0 }
 0xaaf   : > { %v2123_v8 = vpop.f32.mrb[53].mxu0 }
 0xab0   : > { %v3068_v34 = vpop.f32.mrb[54].mxu0 }
 0xab1   : > { %v3211_v38 = vpack.i.bf16 %v3068_v34, %v3067_v7  ;;  %v2126_v10 = vpop.f32.mrb[55].mxu0 }
 0xab2   : > { %v3216_v32 = vpack.i.bf16 %v2126_v10, %v2123_v8 }
 0xab3   : > { %3212 = vrot.lane.b32.xlu1 %v3211_v38, %s3566_s12  ;;  %v3139_v38 = vunpack.i.l.bf16 %v5002_v12  ;;  %v5290_v12 = vld [vmem:[#allocation16_spill] sm:$0xff] }
 0xab4   : > { %3217 = vrot.lane.b32.xlu0 %v3216_v32, %s3566_s12  ;;  %v3180_v32 = vunpack.i.h.bf16 %v3178_v45 }
 0xab6   : > { %v3071_v49 = vpop.f32.mrb[56].mxu0 }
 0xab7   : > { %v2139_v43 = vpop.f32.mrb[57].mxu0 }
 0xab8   : > { %v3072_v53 = vpop.f32.mrb[58].mxu0 }
 0xab9   : > { %v3221_v22 = vpack.i.bf16 %v3072_v53, %v3071_v49  ;;  %v2142_v37 = vpop.f32.mrb[59].mxu0  ;;  %v3179_v49 = vunpack.i.l.bf16 %v3178_v45  ;;  %v3174_v53 = vunpack.i.l.bf16 %v5043_v47 }
 0xaba   : > { %v3226_v36 = vpack.i.bf16 %v2142_v37, %v2139_v43  ;;  %v3175_v43 = vunpack.i.h.bf16 %v5043_v47 }
 0xabb   : > { %3222 = vrot.lane.b32.xlu1 %v3221_v22, %s3566_s12  ;;  %v5287_v22 = vld [vmem:[#allocation19_spill] sm:$0xff] }
 0xabc   : > { %3227 = vrot.lane.b32.xlu0 %v3226_v36, %s3566_s12  ;;  %v2367_v37 = vsel %vm249_vm0, %v5287_v22, %v3135_v33  ;;  %v5288_v36 = vld [vmem:[#allocation17_spill] sm:$0xff]  ;;  %v3189_v33 = vunpack.i.l.bf16 %v5045_v59  ;;  %v3195_v22 = vunpack.i.h.bf16 %v5053_v18 }
 0xabd   : > { %v2384_v29 = vsel %vm2378_vm3, %v2367_v37, %v3175_v43  ;;  %v3200_v43 = vunpack.i.h.bf16 %v5051_v9  ;;  %v3194_v37 = vunpack.i.l.bf16 %v5053_v18 }
 0xabe   : > { %v2392_v18 = vsel %vm2378_vm3, %v5029_v13, %v3195_v22 }
 0xae2   : > { %v3075_v24 = vpop.f32.mrb[60].mxu0 }
 0xae3   : > { %v2155_v39 = vpop.f32.mrb[61].mxu0 }
 0xae4   : > { %v3076_v27 = vpop.f32.mrb[62].mxu0 }
 0xae5   : > { %v3236_v26 = vpack.i.bf16 %v3076_v27, %v3075_v24  ;;  %v2158_v46 = vpop.f32.mrb[63].mxu0  ;;  %v2366_v24 = vsel %vm249_vm0, %v5288_v36, %v3134_v4 }
 0xae6   : > { %v3231_v1 = vpack.i.bf16 %v2158_v46, %v2155_v39  ;;  %v5289_v39 = vld [vmem:[#allocation18_spill] sm:$0xff]  ;;  %v2368_v46 = vsel %vm249_vm0, %v5290_v12, %v3139_v38  ;;  %v2383_v11 = vsel %vm2378_vm3, %v2366_v24, %v3174_v53  ;;  %v3199_v53 = vunpack.i.l.bf16 %v5051_v9 }
 0xae7   : > { %3237 = vrot.lane.b32.xlu1 %v3236_v26, %s3566_s12  ;;  %v2369_v27 = vsel %vm249_vm0, %v5289_v39, %v3140_v0  ;;  %v2385_v47 = vsel %vm2378_vm3, %v2368_v46, %v3179_v49  ;;  %v2394_v12 = vsel %vm2378_vm3, %v5013_v50, %v3200_v43  ;;  %v2391_v9 = vsel %vm2378_vm3, %v5033_v41, %v3194_v37 }
 0xae8   : > { %3232 = vrot.lane.b32.xlu0 %v3231_v1, %s3566_s12  ;;  %v3150_v1 = vunpack.i.h.bf16 %v5007_v3  ;;  %v2386_v17 = vsel %vm2378_vm3, %v2369_v27, %v3180_v32  ;;  %v5291_v3 = vld [vmem:[#allocation22_spill] sm:$0xff] }
 0xb1d   : > { %v3203_v14 = vpop.permute.xlu1 %3202 }
 0xb1e   : > { %v3205_v61 = vunpack.i.h.bf16 %v3203_v14  ;;  %v3204_v15 = vunpack.i.l.bf16 %v3203_v14  ;;  %v3208_v16 = vpop.permute.xlu0 %3207  ;;  %v3145_v14 = vunpack.i.h.bf16 %v5021_v25 }
 0xb1f   : > { %v3210_v58 = vunpack.i.h.bf16 %v3208_v16  ;;  %v3209_v21 = vunpack.i.l.bf16 %v3208_v16  ;;  %v5292_v16 = vld [vmem:[#allocation20_spill] sm:$0xff] }
 0xb20   : > { %v2398_v6 = vsel %vm2395_vm4, %v2381_v60, %v3204_v15  ;;  %v2399_v56 = vsel %vm2395_vm4, %v2382_v35, %v3205_v61  ;;  %v3144_v60 = vunpack.i.l.bf16 %v5021_v25  ;;  %v3185_v35 = vunpack.i.h.bf16 %v5047_v55 }
 0xb21   : > { %v2654_v7 = vpack.c.bf16 %v2399_v56, %v2398_v6  ;;  %v2397_v8 = vsel %vm2395_vm4, %v2380_v2, %v3210_v58  ;;  %v2396_v34 = vsel %vm2395_vm4, %v2379_v23, %v3209_v21  ;;  %v3184_v61 = vunpack.i.l.bf16 %v5047_v55  ;;  %v5293_v21 = vld [vmem:[#allocation23_spill] sm:$0xff]  ;;  %v5294_v23 = vld [vmem:[#allocation21_spill] sm:$0xff] }
 0xb22   : > { %v2649_v10 = vpack.c.bf16 %v2397_v8, %v2396_v34  ;;  %v2373_v15 = vsel %vm249_vm0, %v5291_v3, %v3150_v1  ;;  %v2372_v52 = vsel %vm249_vm0, %v5292_v16, %v3149_v5  ;;  %v2371_v55 = vsel %vm249_vm0, %v5293_v21, %v3145_v14 }
 0xb23   : > { %2686 = vst [vmem:[%s5075_s18 + $0x8] sm:$0xff] %v2654_v7   ;;  %v2389_v59 = vsel %vm2378_vm3, %v2372_v52, %v3189_v33  ;;  %v2390_v19 = vsel %vm2378_vm3, %v2373_v15, %v3190_v31  ;;  %v2370_v2 = vsel %vm249_vm0, %v5294_v23, %v3144_v60  ;;  %v2388_v7 = vsel %vm2378_vm3, %v2371_v55, %v3185_v35 }
 0xb24   : > { %2650 = vst [vmem:[%s5075_s18] sm:$0xff] %v2649_v10   ;;  %v2387_v0 = vsel %vm2378_vm3, %v2370_v2, %v3184_v61 }
 0xb25   : > { %v3213_v26 = vpop.permute.xlu1 %3212 }
 0xb26   : > { %v3215_v54 = vunpack.i.h.bf16 %v3213_v26  ;;  %v3214_v42 = vunpack.i.l.bf16 %v3213_v26  ;;  %v3218_v45 = vpop.permute.xlu0 %3217  ;;  %v2393_v26 = vsel %vm2378_vm3, %v5017_v30, %v3199_v53 }
 0xb27   : > { %v3220_v40 = vunpack.i.h.bf16 %v3218_v45  ;;  %v3219_v63 = vunpack.i.l.bf16 %v3218_v45 }
 0xb28   : > { %v2402_v62 = vsel %vm2395_vm4, %v2385_v47, %v3214_v42  ;;  %v2403_v20 = vsel %vm2395_vm4, %v2386_v17, %v3215_v54 }
 0xb29   : > { %v2664_v28 = vpack.c.bf16 %v2403_v20, %v2402_v62  ;;  %v2400_v48 = vsel %vm2395_vm4, %v2383_v11, %v3219_v63  ;;  %v2401_v44 = vsel %vm2395_vm4, %v2384_v29, %v3220_v40 }
 0xb2a   : > { %v2659_v4 = vpack.c.bf16 %v2401_v44, %v2400_v48 }
 0xb2b   : > { %2688 = vst [vmem:[%s5075_s18 + $0x18] sm:$0xff] %v2664_v28  }
 0xb2c   : > { %2687 = vst [vmem:[%s5075_s18 + $0x10] sm:$0xff] %v2659_v4  }
 0xb2d   : > { %v3223_v51 = vpop.permute.xlu1 %3222 }
 0xb2e   : > { %v3225_v57 = vunpack.i.h.bf16 %v3223_v51  ;;  %v3224_v25 = vunpack.i.l.bf16 %v3223_v51  ;;  %v3228_v58 = vpop.permute.xlu0 %3227 }
 0xb2f   : > { %v3230_v6 = vunpack.i.h.bf16 %v3228_v58  ;;  %v3229_v56 = vunpack.i.l.bf16 %v3228_v58 }
 0xb30   : > { %v2406_v8 = vsel %vm2395_vm4, %v2389_v59, %v3224_v25  ;;  %v2407_v34 = vsel %vm2395_vm4, %v2390_v19, %v3225_v57 }
 0xb31   : > { %v2674_v38 = vpack.c.bf16 %v2407_v34, %v2406_v8  ;;  %v2405_v10 = vsel %vm2395_vm4, %v2388_v7, %v3230_v6  ;;  %v2404_v32 = vsel %vm2395_vm4, %v2387_v0, %v3229_v56 }
 0xb32   : > { %v2669_v49 = vpack.c.bf16 %v2405_v10, %v2404_v32 }
 0xb33   : > { %2690 = vst [vmem:[%s5075_s18 + $0x28] sm:$0xff] %v2674_v38  }
 0xb34   : > { %2689 = vst [vmem:[%s5075_s18 + $0x20] sm:$0xff] %v2669_v49  }
 0xb59   : > { %v3238_v36 = vpop.permute.xlu1 %3237 }
 0xb5a   : > { %v3240_v24 = vunpack.i.h.bf16 %v3238_v36  ;;  %v3239_v39 = vunpack.i.l.bf16 %v3238_v36  ;;  %v3233_v27 = vpop.permute.xlu0 %3232 }
 0xb5b   : > { %v3235_v46 = vunpack.i.h.bf16 %v3233_v27  ;;  %v3234_v1 = vunpack.i.l.bf16 %v3233_v27 }
 0xb5c   : > { %v2410_v54 = vsel %vm2395_vm4, %v2393_v26, %v3239_v39  ;;  %v2411_v42 = vsel %vm2395_vm4, %v2394_v12, %v3240_v24 }
 0xb5d   : > { %v2684_v45 = vpack.c.bf16 %v2411_v42, %v2410_v54  ;;  %v2409_v47 = vsel %vm2395_vm4, %v2392_v18, %v3235_v46  ;;  %v2408_v30 = vsel %vm2395_vm4, %v2391_v9, %v3234_v1 }
 0xb5e   : > { %v2679_v17 = vpack.c.bf16 %v2409_v47, %v2408_v30 }
 0xb5f   : > { %2692 = vst [vmem:[%s5075_s18 + $0x38] sm:$0xff] %v2684_v45  }
 0xb60   : > { %2691 = vst [vmem:[%s5075_s18 + $0x30] sm:$0xff] %v2679_v17  }
 0xb61 PF: > { %s11_s6 = sadd.s32 1, %s3564_s6  }
 0xb62   : > { %p8_p4 = scmp.ge.s32.totalorder %s11_s6, 4  }
 0xb64   :  { %10 = sbr.rel (!%p8_p4) target bundleno = 1 (0x1), region = 54 }

</bundles_post_ra>
